<compile_context>
chip_gen: v7x
topology: tpu7x:2x2x1
jax: 0.10.0
libtpu: 0.0.40
codegen_flags: <defaults>
</compile_context>

<pallas_src>
import jax
import jax.numpy as jnp
from jax.experimental import pallas as pl
from jax.experimental.pallas import tpu as pltpu

FEAT_DIM = 1000     # resnet50 feature dim (logical)
FEAT_PAD = 1024     # padded to a multiple of 128 lanes
HID_DIM = 1024


# ---------------------------------------------------------------------------
# Kernel
# ---------------------------------------------------------------------------
def _siamese_kernel(imgA_ref, imgB_ref, wp_ref, bp_ref,
                    w1a_ref, w1c_ref, b1_ref, w2t_ref, b2_ref, out_ref):
    inv_hw = 1.0 / imgA_ref.shape[-1]

    def backbone(img_ref):
        # img_ref: [B, C, H*W] lane-dense. Global average pool -> [B, C].
        x = img_ref[...].astype(jnp.float32)
        pooled = x.sum(axis=-1) * inv_hw
        # Stand-in projection to the (padded) resnet50 feature dim.
        return (jnp.dot(pooled, wp_ref[...],
                        preferred_element_type=jnp.float32)
                + bp_ref[...])                                   # [B, FEAT_PAD]

    fa = backbone(imgA_ref)
    fb = backbone(imgB_ref)

    # Elementwise feature combination stays f32 (v5e VPU has no bf16).
    comb_a = fa * fa - fb * fb          # torch.subtract(square(A), square(B))
    comb_c = fa * fb                    # torch.multiply(A, B)

    # concat([comb_a, comb_c], -1) @ W1 == comb_a @ W1[:F] + comb_c @ W1[F:]
    # Weights are bf16 (halves HBM traffic); accumulate in f32 on the MXU.
    h = (jnp.dot(comb_a.astype(jnp.bfloat16), w1a_ref[...],
                 preferred_element_type=jnp.float32)
         + jnp.dot(comb_c.astype(jnp.bfloat16), w1c_ref[...],
                   preferred_element_type=jnp.float32)
         + b1_ref[...])
    h = jnp.maximum(h, 0.0)                                               # ReLU

    # Linear(1024, 1): lane-dense w2^T [1,1024]; mul + lane-reduce (VPU/XLU),
    # no wasted 1-output-lane MXU push.
    logits = jnp.sum(h * w2t_ref[...], axis=-1, keepdims=True) + b2_ref[0, 0]
    out_ref[...] = jax.nn.sigmoid(logits).astype(out_ref.dtype)           # Sigmoid


# ---------------------------------------------------------------------------
# Wrapper
# ---------------------------------------------------------------------------
def siamese_forward(imageA, imageB, kparams):
    B, C, H, W = imageA.shape
    imgA = imageA.reshape(B, C, H * W)     # lane-dense spatial axis
    imgB = imageB.reshape(B, C, H * W)

    args = (imgA, imgB, kparams["wp"], kparams["bp"],
            kparams["w1a"], kparams["w1c"], kparams["b1"],
            kparams["w2t"], kparams["b2"])

    vmem = pl.BlockSpec(memory_space=pltpu.MemorySpace.VMEM)
    smem = pl.BlockSpec(memory_space=pltpu.MemorySpace.SMEM)
    in_specs = [vmem] * (len(args) - 1) + [smem]        # b2 scalar lives in SMEM

    bytes_accessed = sum(a.size * a.dtype.itemsize for a in args) + B * 4
    flops = (2 * 2 * B * C * FEAT_PAD            # two backbone projections
             + 2 * 2 * B * FEAT_PAD * HID_DIM    # two W1-half matmuls
             + 2 * B * HID_DIM)                  # final reduction

    return pl.pallas_call(
        _siamese_kernel,
        out_shape=jax.ShapeDtypeStruct((B, 1), jnp.float32),
        in_specs=in_specs,
        out_specs=vmem,
        compiler_params=pltpu.CompilerParams(vmem_limit_bytes=32 * 1024 * 1024),
        cost_estimate=pl.CostEstimate(flops=flops, transcendentals=B,
                                      bytes_accessed=bytes_accessed),
    )(*args)


# ---------------------------------------------------------------------------
# Parameters
# ---------------------------------------------------------------------------
def make_params(key, in_channels):
    """Raw f32 params mirroring the PyTorch module layout."""
    ks = jax.random.split(key, 6)
    return {
        # stand-in backbone projection  (GAP features -> 1000)
        "wp": jax.random.normal(ks[0], (in_channels, FEAT_DIM), jnp.float32) * 0.1,
        "bp": jax.random.normal(ks[1], (1, FEAT_DIM), jnp.float32) * 0.01,
        # classifier: Linear(2000, 1024) -> ReLU -> Linear(1024, 1) -> Sigmoid
        "w1": jax.random.normal(ks[2], (2 * FEAT_DIM, HID_DIM), jnp.float32) * 0.02,
        "b1": jax.random.normal(ks[3], (1, HID_DIM), jnp.float32) * 0.01,
        "w2": jax.random.normal(ks[4], (HID_DIM, 1), jnp.float32) * 0.02,
        "b2": jax.random.normal(ks[5], (1, 1), jnp.float32) * 0.01,
    }


def prepare_kernel_params(p):
    """One-time layout prep: split W1, zero-pad FEAT_DIM -> 1024, cast W1 halves
    to bf16, transpose W2 to lane-dense [1, HID_DIM]. Done once, NOT per call."""
    pad_f = FEAT_PAD - FEAT_DIM
    wp = jnp.pad(p["wp"], ((0, 0), (0, pad_f)))                 # [C, 1024]
    bp = jnp.pad(p["bp"], ((0, 0), (0, pad_f)))                 # [1, 1024]
    w1a = jnp.pad(p["w1"][:FEAT_DIM, :], ((0, pad_f), (0, 0)))  # [1024, 1024]
    w1c = jnp.pad(p["w1"][FEAT_DIM:, :], ((0, pad_f), (0, 0)))  # [1024, 1024]
    return {
        "wp": wp,
        "bp": bp,
        "w1a": w1a.astype(jnp.bfloat16),
        "w1c": w1c.astype(jnp.bfloat16),
        "b1": p["b1"],
        "w2t": jnp.transpose(p["w2"]),                          # [1, 1024]
        "b2": p["b2"],
    }


# ---------------------------------------------------------------------------
# Pure-JAX references
# ---------------------------------------------------------------------------
def reference_f32(imageA, imageB, p):
    """Mirrors the PyTorch forward in full f32 with the raw params."""
    def backbone(img):
        pooled = jnp.mean(img, axis=(2, 3))
        return pooled @ p["wp"] + p["bp"]
    fa = backbone(imageA)
    fb = backbone(imageB)
    combined = jnp.concatenate([fa * fa - fb * fb, fa * fb], axis=-1)
    h = jnp.maximum(combined @ p["w1"] + p["b1"], 0.0)
    return jax.nn.sigmoid(h @ p["w2"] + p["b2"])


def reference_mirrored(imageA, imageB, kp):
    """Mirrors the kernel math exactly (padded feat dim, bf16 W1 halves)."""
    def backbone(img):
        pooled = jnp.mean(img, axis=(2, 3))
        return pooled @ kp["wp"] + kp["bp"]
    fa = backbone(imageA)
    fb = backbone(imageB)
    comb_a = (fa * fa - fb * fb).astype(jnp.bfloat16)
    comb_c = (fa * fb).astype(jnp.bfloat16)
    h = (jnp.dot(comb_a, kp["w1a"], preferred_element_type=jnp.float32)
         + jnp.dot(comb_c, kp["w1c"], preferred_element_type=jnp.float32)
         + kp["b1"])
    h = jnp.maximum(h, 0.0)
    logits = jnp.sum(h * kp["w2t"], axis=-1, keepdims=True) + kp["b2"][0, 0]
    return jax.nn.sigmoid(logits)


# ---------------------------------------------------------------------------
if __name__ == "__main__":
    B, C, H, W = 2, 4, 16, 16
    key = jax.random.PRNGKey(0)
    k_img_a, k_img_b, k_params = jax.random.split(key, 3)

    imageA = jax.random.normal(k_img_a, (B, C, H, W), jnp.float32)
    imageB = jax.random.normal(k_img_b, (B, C, H, W), jnp.float32)
    raw_params = make_params(k_params, C)
    kparams = jax.block_until_ready(prepare_kernel_params(raw_params))

    out = jax.block_until_ready(siamese_forward(imageA, imageB, kparams))
    assert out.shape == (B, 1), out.shape

    ref_bf16 = jax.block_until_ready(reference_mirrored(imageA, imageB, kparams))
    ref_f32 = jax.block_until_ready(reference_f32(imageA, imageB, raw_params))
    assert jnp.allclose(out, ref_bf16, atol=1e-4, rtol=1e-4), (out, ref_bf16)
    assert jnp.allclose(out, ref_f32, atol=2e-3, rtol=2e-3), (out, ref_f32)
    print("KERNEL_OK")
</pallas_src>

<mosaic_0001>
module attributes {stable_mosaic.version = 11 : i64} {
  func.func @_siamese_kernel(%arg0: memref<2x4x256xf32, #tpu.memory_space<vmem>>, %arg1: memref<2x4x256xf32, #tpu.memory_space<vmem>>, %arg2: memref<4x1024xf32, #tpu.memory_space<vmem>>, %arg3: memref<1x1024xf32, #tpu.memory_space<vmem>>, %arg4: memref<1024x1024xbf16, #tpu.memory_space<vmem>>, %arg5: memref<1024x1024xbf16, #tpu.memory_space<vmem>>, %arg6: memref<1x1024xf32, #tpu.memory_space<vmem>>, %arg7: memref<1x1024xf32, #tpu.memory_space<vmem>>, %arg8: memref<1x1xf32, #tpu.memory_space<smem>>, %arg9: memref<2x1xf32, #tpu.memory_space<vmem>>) attributes {dimension_semantics = [], scalar_prefetch = 0 : i64, scratch_operands = 0 : i64, tpu.core_type = #tpu.core_type<tc>} {
    %c0 = arith.constant 0 : index
    %c0_0 = arith.constant 0 : index
    %c0_1 = arith.constant 0 : index
    %0 = vector.load %arg0[%c0, %c0_0, %c0_1] : memref<2x4x256xf32, #tpu.memory_space<vmem>>, vector<2x4x256xf32>
    %cst = arith.constant dense<0.000000e+00> : vector<2x4xf32>
    %1 = vector.multi_reduction <add>, %0, %cst [2] : vector<2x4x256xf32> to vector<2x4xf32>
    %cst_2 = arith.constant 3.906250e-03 : f32
    %2 = vector.broadcast %cst_2 : f32 to vector<2x4xf32>
    %3 = arith.mulf %1, %2 : vector<2x4xf32>
    %c0_3 = arith.constant 0 : index
    %c0_4 = arith.constant 0 : index
    %4 = vector.load %arg2[%c0_3, %c0_4] : memref<4x1024xf32, #tpu.memory_space<vmem>>, vector<4x1024xf32>
    %cst_5 = arith.constant dense<0.000000e+00> : vector<2x1024xf32>
    %5 = tpu.matmul %3, %4, %cst_5 {dimension_numbers = #tpu.dot_dimension_numbers<[1], [0], [0], [1], [0, 0, 1, 1], [], []>} : vector<2x4xf32>, vector<4x1024xf32>, vector<2x1024xf32> -> vector<2x1024xf32>
    %c0_6 = arith.constant 0 : index
    %c0_7 = arith.constant 0 : index
    %6 = vector.load %arg3[%c0_6, %c0_7] : memref<1x1024xf32, #tpu.memory_space<vmem>>, vector<1x1024xf32>
    %7 = vector.broadcast %6 : vector<1x1024xf32> to vector<2x1024xf32>
    %8 = arith.addf %5, %7 : vector<2x1024xf32>
    %c0_8 = arith.constant 0 : index
    %c0_9 = arith.constant 0 : index
    %c0_10 = arith.constant 0 : index
    %9 = vector.load %arg1[%c0_8, %c0_9, %c0_10] : memref<2x4x256xf32, #tpu.memory_space<vmem>>, vector<2x4x256xf32>
    %cst_11 = arith.constant dense<0.000000e+00> : vector<2x4xf32>
    %10 = vector.multi_reduction <add>, %9, %cst_11 [2] : vector<2x4x256xf32> to vector<2x4xf32>
    %cst_12 = arith.constant 3.906250e-03 : f32
    %11 = vector.broadcast %cst_12 : f32 to vector<2x4xf32>
    %12 = arith.mulf %10, %11 : vector<2x4xf32>
    %c0_13 = arith.constant 0 : index
    %c0_14 = arith.constant 0 : index
    %13 = vector.load %arg2[%c0_13, %c0_14] : memref<4x1024xf32, #tpu.memory_space<vmem>>, vector<4x1024xf32>
    %cst_15 = arith.constant dense<0.000000e+00> : vector<2x1024xf32>
    %14 = tpu.matmul %12, %13, %cst_15 {dimension_numbers = #tpu.dot_dimension_numbers<[1], [0], [0], [1], [0, 0, 1, 1], [], []>} : vector<2x4xf32>, vector<4x1024xf32>, vector<2x1024xf32> -> vector<2x1024xf32>
    %c0_16 = arith.constant 0 : index
    %c0_17 = arith.constant 0 : index
    %15 = vector.load %arg3[%c0_16, %c0_17] : memref<1x1024xf32, #tpu.memory_space<vmem>>, vector<1x1024xf32>
    %16 = vector.broadcast %15 : vector<1x1024xf32> to vector<2x1024xf32>
    %17 = arith.addf %14, %16 : vector<2x1024xf32>
    %18 = arith.mulf %8, %8 : vector<2x1024xf32>
    %19 = arith.mulf %17, %17 : vector<2x1024xf32>
    %20 = arith.subf %18, %19 : vector<2x1024xf32>
    %21 = arith.mulf %8, %17 : vector<2x1024xf32>
    %22 = arith.truncf %20 : vector<2x1024xf32> to vector<2x1024xbf16>
    %c0_18 = arith.constant 0 : index
    %c0_19 = arith.constant 0 : index
    %23 = vector.load %arg4[%c0_18, %c0_19] : memref<1024x1024xbf16, #tpu.memory_space<vmem>>, vector<1024x1024xbf16>
    %cst_20 = arith.constant dense<0.000000e+00> : vector<2x1024xf32>
    %24 = tpu.matmul %22, %23, %cst_20 {dimension_numbers = #tpu.dot_dimension_numbers<[1], [0], [0], [1], [0, 0, 1, 1], [], []>} : vector<2x1024xbf16>, vector<1024x1024xbf16>, vector<2x1024xf32> -> vector<2x1024xf32>
    %25 = arith.truncf %21 : vector<2x1024xf32> to vector<2x1024xbf16>
    %c0_21 = arith.constant 0 : index
    %c0_22 = arith.constant 0 : index
    %26 = vector.load %arg5[%c0_21, %c0_22] : memref<1024x1024xbf16, #tpu.memory_space<vmem>>, vector<1024x1024xbf16>
    %cst_23 = arith.constant dense<0.000000e+00> : vector<2x1024xf32>
    %27 = tpu.matmul %25, %26, %cst_23 {dimension_numbers = #tpu.dot_dimension_numbers<[1], [0], [0], [1], [0, 0, 1, 1], [], []>} : vector<2x1024xbf16>, vector<1024x1024xbf16>, vector<2x1024xf32> -> vector<2x1024xf32>
    %28 = arith.addf %24, %27 : vector<2x1024xf32>
    %c0_24 = arith.constant 0 : index
    %c0_25 = arith.constant 0 : index
    %29 = vector.load %arg6[%c0_24, %c0_25] : memref<1x1024xf32, #tpu.memory_space<vmem>>, vector<1x1024xf32>
    %30 = vector.broadcast %29 : vector<1x1024xf32> to vector<2x1024xf32>
    %31 = arith.addf %28, %30 : vector<2x1024xf32>
    %cst_26 = arith.constant 0.000000e+00 : f32
    %32 = vector.broadcast %cst_26 : f32 to vector<2x1024xf32>
    %33 = arith.maximumf %31, %32 : vector<2x1024xf32>
    %c0_27 = arith.constant 0 : index
    %c0_28 = arith.constant 0 : index
    %34 = vector.load %arg7[%c0_27, %c0_28] : memref<1x1024xf32, #tpu.memory_space<vmem>>, vector<1x1024xf32>
    %35 = vector.broadcast %34 : vector<1x1024xf32> to vector<2x1024xf32>
    %36 = arith.mulf %33, %35 : vector<2x1024xf32>
    %cst_29 = arith.constant dense<0.000000e+00> : vector<2xf32>
    %37 = vector.multi_reduction <add>, %36, %cst_29 [1] : vector<2x1024xf32> to vector<2xf32>
    %38 = vector.shape_cast %37 : vector<2xf32> to vector<2x1xf32>
    %c0_30 = arith.constant 0 : index
    %c0_31 = arith.constant 0 : index
    %39 = memref.load %arg8[%c0_30, %c0_31] : memref<1x1xf32, #tpu.memory_space<smem>>
    %40 = vector.broadcast %39 : f32 to vector<2x1xf32>
    %41 = arith.addf %38, %40 : vector<2x1xf32>
    %42 = arith.negf %41 : vector<2x1xf32>
    %43 = math.exp %42 : vector<2x1xf32>
    %cst_32 = arith.constant 1.000000e+00 : f32
    %44 = vector.broadcast %cst_32 : f32 to vector<2x1xf32>
    %45 = arith.addf %44, %43 : vector<2x1xf32>
    %46 = arith.divf %44, %45 : vector<2x1xf32>
    %c0_33 = arith.constant 0 : index
    %c0_34 = arith.constant 0 : index
    %47 = vector.load %arg9[%c0_33, %c0_34] : memref<2x1xf32, #tpu.memory_space<vmem>>, vector<2x1xf32>
    tpu.vector_store %arg9[%c0_33, %c0_34], %46 {strides = array<i32>} : memref<2x1xf32, #tpu.memory_space<vmem>>, vector<2x1xf32>,
    return
  }
}

</mosaic_0001>

<bundles_post_ra>
// kernel: tpu_custom_call.1
= control target key start
LH: loop header
LB: loop body
LE: loop exit
PB: predicated region body
PF: predicated region fallthrough
CT: control target
= control target key end

     0   :  { %15 = vsyncpa [#allocation4], 0  ;;  %s10297_s0 = inlined_call_operand.hbm [shape: f32[2,4,256], index: 0, kind: input, shape index: {}]   ;;  %s10298_s1 = inlined_call_operand.hbm [shape: f32[2,4,256], index: 1, kind: input, shape index: {}]   ;;  %s10299_s2 = inlined_call_operand.hbm [shape: f32[4,1024], index: 2, kind: input, shape index: {}]   ;;  %s10300_s3 = inlined_call_operand.hbm [shape: f32[1,1024], index: 3, kind: input, shape index: {}]   ;;  %s10301_s4 = inlined_call_operand.hbm [shape: bf16[1024,1024], index: 4, kind: input, shape index: {}]   ;;  %s10302_s5 = inlined_call_operand.hbm [shape: bf16[1024,1024], index: 5, kind: input, shape index: {}]   ;;  %s10303_s6 = inlined_call_operand.hbm [shape: f32[1,1024], index: 6, kind: input, shape index: {}]   ;;  %s10304_s7 = inlined_call_operand.hbm [shape: f32[1,1024], index: 7, kind: input, shape index: {}]   ;;  %s10305_s8 = inlined_call_operand.<no memory space> [shape: f32[1,1], index: 8, kind: input, shape index: {}]   ;;  %s10306_s9 = inlined_call_operand.vmem [shape: f32[2,1], index: 9, kind: output, shape index: {}]  }
   0x1   :  { %16 = vsyncpa [#allocation6], 0 }
   0x2   :  { %17 = vsyncpa [#allocation9], 0 }
   0x3   :  { %18 = vsyncpa [#allocation12], 0 }
   0x4   :  { %19 = vsyncpa [#allocation15], 0  ;;  %s9755_s30 = smov [#allocation5]   ;;  %s9756_s11 = smov [#allocation8]  }
   0x5   :  { %s37_s10 = sshll.u32 %s9755_s30, 4  ;;  %s60_s12 = sshll.u32 %s9756_s11, 4  ;;  %s38_s10 = int_to_ptr.vmem [resolvable:$true] %s37_s10  ;;  %s61_s12 = int_to_ptr.vmem [resolvable:$true] %s60_s12 }
   0x6   :  { %s9569_s15 = scalar_lea.hbm %s10298_s1, 256 }
   0x7   :  { %p9570_p0 = scmp.ne.s32.totalorder %s10298_s1, %s9569_s15  ;;  %p9573_p1 = scmp.lt.u32.totalorder %s9569_s15, %s10298_s1 }
   0x9   :  { %p9575_p2 = pnand %p9573_p1, %p9570_p0 }
   0xb   :  { %9578 = shalt.err (!%p9575_p2)
}
   0xc   :  { %s9579_s20 = scalar_lea.vmem %s38_s10, 256  ;;  %p9584_p4 = scmp.lt.s32.totalorder %s38_s10, %s38_s10 }
   0xd   :  { %p9580_p3 = scmp.ne.s32.totalorder %s38_s10, %s9579_s20  ;;  %p9585_p5 = scmp.lt.s32.totalorder %s9579_s20, %s9579_s20 }
   0xf   :  { %p9586_p6 = por %p9585_p5, %p9584_p4 }
  0x11   :  { %p9587_p7 = pnand %p9586_p6, %p9580_p3 }
  0x13   :  { %9590 = shalt.err (!%p9587_p7)
}
  0x14   :  { %s9757_s21 = smov 128   ;;  %s9758_s22 = smov 8  }
  0x15   :  { %43 = dma.hbm_to_vmem [thread:$0]  %s10298_s1, 256, %s38_s10, [#allocation6], %s9757_s21, %s9757_s21, %s9758_s22  }
  0x16   :  { %s9591_s27 = scalar_lea.hbm %s10300_s3, 128 }
  0x17   :  { %p9592_p8 = scmp.ne.s32.totalorder %s10300_s3, %s9591_s27  ;;  %p9595_p9 = scmp.lt.u32.totalorder %s9591_s27, %s10300_s3 }
  0x19   :  { %p9597_p10 = pnand %p9595_p9, %p9592_p8 }
  0x1b   :  { %9600 = shalt.err (!%p9597_p10)
}
  0x1c   :  { %s9601_s13 = scalar_lea.vmem %s61_s12, 128  ;;  %p9606_p12 = scmp.lt.s32.totalorder %s61_s12, %s61_s12 }
  0x1d   :  { %p9602_p11 = scmp.ne.s32.totalorder %s61_s12, %s9601_s13  ;;  %p9607_p13 = scmp.lt.s32.totalorder %s9601_s13, %s9601_s13 }
  0x1f   :  { %p9608_p0 = por %p9607_p13, %p9606_p12 }
  0x21   :  { %p9609_p1 = pnand %p9608_p0, %p9602_p11 }
  0x23   :  { %9612 = shalt.err (!%p9609_p1)
}
  0x24   :  { %63 = dma.hbm_to_vmem [thread:$0]  %s10300_s3, 128, %s61_s12, [#allocation9]  }
  0x25   :  { %s9759_s14 = smov [#allocation11]   ;;  %s9760_s16 = smov [#allocation3]  }
  0x26   :  { %s81_s15 = sshll.u32 %s9759_s14, 4  ;;  %s25_s17 = sshll.u32 %s9760_s16, 4  ;;  %s82_s15 = int_to_ptr.vmem [resolvable:$true] %s81_s15  ;;  %s9845_s17 = int_to_ptr.vmem [resolvable:$true] %s25_s17 }
  0x27   :  { %s9613_s20 = scalar_lea.hbm %s10302_s5, 65536 }
  0x28   :  { %p9614_p2 = scmp.ne.s32.totalorder %s10302_s5, %s9613_s20  ;;  %p9617_p3 = scmp.lt.u32.totalorder %s9613_s20, %s10302_s5 }
  0x2a   :  { %p9619_p4 = pnand %p9617_p3, %p9614_p2 }
  0x2c   :  { %9622 = shalt.err (!%p9619_p4)
}
  0x2d   :  { %s9623_s3 = scalar_lea.vmem %s82_s15, 65536  ;;  %p9628_p6 = scmp.lt.s32.totalorder %s82_s15, %s82_s15 }
  0x2e   :  { %p9624_p5 = scmp.ne.s32.totalorder %s82_s15, %s9623_s3  ;;  %p9629_p7 = scmp.lt.s32.totalorder %s9623_s3, %s9623_s3 }
  0x30   :  { %p9630_p8 = por %p9629_p7, %p9628_p6 }
  0x32   :  { %p9631_p9 = pnand %p9630_p8, %p9624_p5 }
  0x34   :  { %9634 = shalt.err (!%p9631_p9)
}
  0x35   :  { %s9761_s12 = smov 512   ;;  %s9762_s27 = smov 32  }
  0x36   :  { %87 = dma.hbm_to_vmem [thread:$0]  %s10302_s5, 65536, %s82_s15, [#allocation12], %s9761_s12, %s9761_s12, %s9762_s27  }
  0x37   :  { %s9635_s13 = scalar_lea.hbm %s10297_s0, 256 }
  0x38   :  { %p9636_p10 = scmp.ne.s32.totalorder %s10297_s0, %s9635_s13  ;;  %p9639_p11 = scmp.lt.u32.totalorder %s9635_s13, %s10297_s0 }
  0x3a   :  { %p9641_p12 = pnand %p9639_p11, %p9636_p10 }
  0x3c   :  { %9644 = shalt.err (!%p9641_p12)
}
  0x3d   :  { %s9645_s18 = scalar_lea.vmem %s9845_s17, 256  ;;  %p9650_p0 = scmp.lt.s32.totalorder %s9845_s17, %s9845_s17 }
  0x3e   :  { %p9646_p13 = scmp.ne.s32.totalorder %s9845_s17, %s9645_s18  ;;  %p9651_p1 = scmp.lt.s32.totalorder %s9645_s18, %s9645_s18 }
  0x40   :  { %p9652_p2 = por %p9651_p1, %p9650_p0 }
  0x42   :  { %p9653_p3 = pnand %p9652_p2, %p9646_p13 }
  0x44   :  { %9656 = shalt.err (!%p9653_p3)
}
  0x45   :  { %31 = dma.hbm_to_vmem [thread:$0]  %s10297_s0, 256, %s9845_s17, [#allocation4], %s9757_s21, %s9757_s21, %s9758_s22  }
  0x46   :  { %s9763_s19 = smov [#allocation7]   ;;  %s9764_s23 = smov [#allocation10]  }
  0x47   :  { %s50_s20 = sshll.u32 %s9763_s19, 4  ;;  %s69_s24 = sshll.u32 %s9764_s23, 4  ;;  %s51_s20 = int_to_ptr.vmem [resolvable:$true] %s50_s20  ;;  %s9882_s24 = int_to_ptr.vmem [resolvable:$true] %s69_s24 }
  0x48   :  { %s9657_s3 = scalar_lea.hbm %s10299_s2, 512 }
  0x49   :  { %p9658_p4 = scmp.ne.s32.totalorder %s10299_s2, %s9657_s3  ;;  %p9661_p5 = scmp.lt.u32.totalorder %s9657_s3, %s10299_s2 }
  0x4b   :  { %p9663_p6 = pnand %p9661_p5, %p9658_p4 }
  0x4d   :  { %9666 = shalt.err (!%p9663_p6)
}
  0x4e   :  { %s9667_s0 = scalar_lea.vmem %s51_s20, 512  ;;  %p9672_p8 = scmp.lt.s32.totalorder %s51_s20, %s51_s20 }
  0x4f   :  { %p9668_p7 = scmp.ne.s32.totalorder %s51_s20, %s9667_s0  ;;  %p9673_p9 = scmp.lt.s32.totalorder %s9667_s0, %s9667_s0 }
  0x51   :  { %p9674_p10 = por %p9673_p9, %p9672_p8 }
  0x53   :  { %p9675_p11 = pnand %p9674_p10, %p9668_p7 }
  0x55   :  { %9678 = shalt.err (!%p9675_p11)
}
  0x56   :  { %53 = dma.hbm_to_vmem [thread:$0]  %s10299_s2, 512, %s51_s20, [#allocation6]  }
  0x57   :  { %s9679_s1 = scalar_lea.hbm %s10301_s4, 65536 }
  0x58   :  { %p9680_p12 = scmp.ne.s32.totalorder %s10301_s4, %s9679_s1  ;;  %p9683_p13 = scmp.lt.u32.totalorder %s9679_s1, %s10301_s4 }
  0x5a   :  { %p9685_p0 = pnand %p9683_p13, %p9680_p12 }
  0x5c   :  { %9688 = shalt.err (!%p9685_p0)
}
  0x5d   :  { %s9689_s5 = scalar_lea.vmem %s9882_s24, 65536  ;;  %p9694_p2 = scmp.lt.s32.totalorder %s9882_s24, %s9882_s24 }
  0x5e   :  { %p9690_p1 = scmp.ne.s32.totalorder %s9882_s24, %s9689_s5  ;;  %p9695_p3 = scmp.lt.s32.totalorder %s9689_s5, %s9689_s5 }
  0x60   :  { %p9696_p4 = por %p9695_p3, %p9694_p2 }
  0x62   :  { %p9697_p5 = pnand %p9696_p4, %p9690_p1 }
  0x64   :  { %9700 = shalt.err (!%p9697_p5)
}
  0x65   :  { %75 = dma.hbm_to_vmem [thread:$0]  %s10301_s4, 65536, %s9882_s24, [#allocation9], %s9761_s12, %s9761_s12, %s9762_s27  }
  0x66   :  { %s9765_s19 = smov [#allocation13]   ;;  %s9766_s23 = smov [#allocation14]  }
  0x67   :  { %s94_s20 = sshll.u32 %s9765_s19, 4  ;;  %s104_s25 = sshll.u32 %s9766_s23, 4  ;;  %s95_s20 = int_to_ptr.vmem [resolvable:$true] %s94_s20  ;;  %s105_s25 = int_to_ptr.vmem [resolvable:$true] %s104_s25 }
  0x68   :  { %s9701_s28 = scalar_lea.hbm %s10303_s6, 128 }
  0x69   :  { %p9702_p6 = scmp.ne.s32.totalorder %s10303_s6, %s9701_s28  ;;  %p9705_p7 = scmp.lt.u32.totalorder %s9701_s28, %s10303_s6 }
  0x6b   :  { %p9707_p8 = pnand %p9705_p7, %p9702_p6 }
  0x6d   :  { %9710 = shalt.err (!%p9707_p8)
}
  0x6e   :  { %s9711_s4 = scalar_lea.vmem %s95_s20, 128  ;;  %p9716_p10 = scmp.lt.s32.totalorder %s95_s20, %s95_s20 }
  0x6f   :  { %p9712_p9 = scmp.ne.s32.totalorder %s95_s20, %s9711_s4  ;;  %p9717_p11 = scmp.lt.s32.totalorder %s9711_s4, %s9711_s4 }
  0x71   :  { %p9718_p12 = por %p9717_p11, %p9716_p10 }
  0x73   :  { %p9719_p13 = pnand %p9718_p12, %p9712_p9 }
  0x75   :  { %9722 = shalt.err (!%p9719_p13)
}
  0x76   :  { %97 = dma.hbm_to_vmem [thread:$0]  %s10303_s6, 128, %s95_s20, [#allocation12]  }
  0x77   :  { %s9723_s22 = scalar_lea.hbm %s10304_s7, 128 }
  0x78   :  { %p9724_p0 = scmp.ne.s32.totalorder %s10304_s7, %s9723_s22  ;;  %p9727_p1 = scmp.lt.u32.totalorder %s9723_s22, %s10304_s7 }
  0x7a   :  { %p9729_p2 = pnand %p9727_p1, %p9724_p0 }
  0x7c   :  { %9732 = shalt.err (!%p9729_p2)
}
  0x7d   :  { %s9733_s14 = scalar_lea.vmem %s105_s25, 128  ;;  %p9738_p4 = scmp.lt.s32.totalorder %s105_s25, %s105_s25 }
  0x7e   :  { %p9734_p3 = scmp.ne.s32.totalorder %s105_s25, %s9733_s14  ;;  %p9739_p5 = scmp.lt.s32.totalorder %s9733_s14, %s9733_s14 }
  0x80   :  { %p9740_p6 = por %p9739_p5, %p9738_p4 }
  0x82   :  { %p9741_p7 = pnand %p9740_p6, %p9734_p3 }
  0x84   :  { %9744 = shalt.err (!%p9741_p7)
}
  0x85   :  { %107 = dma.hbm_to_vmem [thread:$0]  %s10304_s7, 128, %s105_s25, [#allocation15]  }
  0x86   :  { %9745 = dma.done.wait [#allocation4], 256  }
  0x87   :  { %9746 = vsyncadd [#allocation4], 4294967040 }
  0x88   :  { %9747 = dma.done.wait [#allocation6], 768  }
  0x89   :  { %9748 = vsyncadd [#allocation6], 4294966528 }
  0x8a   :  { %9749 = dma.done.wait [#allocation9], 65664  }
  0x8b   :  { %9750 = vsyncadd [#allocation9], 4294901632 }
  0x8c   :  { %9751 = dma.done.wait [#allocation12], 65664  }
  0x8d   :  { %9752 = vsyncadd [#allocation12], 4294901632 }
  0x8e   :  { %9753 = dma.done.wait [#allocation15], 128  }
  0x8f   :  { %9754 = vsyncadd [#allocation15], 4294967168  ;;  %vm142_vm0 = vcmask 1043456   ;;  %v134_v0 = vld [vmem:[#allocation3] sm:$0xff]  ;;  %v526_v1 = vld [vmem:[#allocation5] sm:$0xff]  ;;  %v9767_v26 = vmov 0.0   ;;  %v161_v29 = vlaneseq }
  0x90   :  { %v135_v2 = vld [vmem:[#allocation3 + $0x8] sm:$0xff]  ;;  %v138_v3 = vcombine.high %v134_v0, %v134_v0  ;;  %v143_v4 = vsel %vm142_vm0, %v134_v0, 0.0  ;;  %v530_v5 = vcombine.high %v526_v1, %v526_v1  ;;  %v534_v6 = vsel %vm142_vm0, %v526_v1, 0.0  ;;  %v527_v7 = vld [vmem:[#allocation5 + $0x8] sm:$0xff]  ;;  %v155_v20 = vld [vmem:[#allocation7] sm:$0xff]  ;;  %306 = vmatprep.mubr.f32.mxu0 %v9767_v26  ;;  %377 = vmatprep.mubr.f32.mxu1 %v9767_v26 }
  0x91   :  { %v139_v8 = vcombine.high %v135_v2, %v135_v2  ;;  %v531_v9 = vcombine.high %v527_v7, %v527_v7  ;;  %v148_v12 = vsel %vm142_vm0, %v135_v2, 0.0  ;;  %v539_v13 = vsel %vm142_vm0, %v527_v7, 0.0  ;;  %v156_v21 = vld [vmem:[#allocation7 + $0x8] sm:$0xff]  ;;  %v157_v24 = vld [vmem:[#allocation7 + $0x10] sm:$0xff]  ;;  %v158_v27 = vld [vmem:[#allocation7 + $0x18] sm:$0xff] }
  0x92   :  { %v144_v10 = vsel %vm142_vm0, %v138_v3, 0.0  ;;  %v535_v11 = vsel %vm142_vm0, %v530_v5, 0.0  ;;  %v219_v22 = vcombine.high %v155_v20, %v155_v20  ;;  %v220_v23 = vcombine.high %v156_v21, %v156_v21  ;;  %v1403_v46 = vld [vmem:[#allocation11] sm:$0xff] }
  0x93   :  { %v145_v14 = vadd.f32 %v144_v10, %v143_v4  ;;  %v536_v15 = vadd.f32 %v535_v11, %v534_v6  ;;  %v149_v16 = vsel %vm142_vm0, %v139_v8, 0.0  ;;  %v540_v17 = vsel %vm142_vm0, %v531_v9, 0.0  ;;  %v1407_v47 = vld [vmem:[#allocation11 + $0x20] sm:$0xff] }
  0x94   :  { %v150_v18 = vadd.f32 %v149_v16, %v148_v12  ;;  %v541_v19 = vadd.f32 %v540_v17, %v539_v13  ;;  %8493 = vmatprep.subr.msk.mxu0 %vm142_vm0, %v219_v22  ;;  %8496 = vmatprep.subr.msk.mxu1 %vm142_vm0, %v220_v23  ;;  %v221_v25 = vcombine.high %v157_v24, %v157_v24  ;;  %v9954_v30 = vshrl.u32 %v161_v29, 7  ;;  %v1531_v48 = vld [vmem:[#allocation11 + $0x400] sm:$0xff] }
  0x95   :  { %146 = vadd.xlane.f32.xlu0 %v145_v14  ;;  %537 = vadd.xlane.f32.xlu1 %v536_v15  ;;  %v222_v28 = vcombine.high %v158_v27, %v158_v27  ;;  %v204_v31 = vand.u32 127, %v161_v29  ;;  %vm213_vm1 = vcmask 1041409   ;;  %vm223_vm2 = vcmask 31744   ;;  %v1535_v49 = vld [vmem:[#allocation11 + $0x420] sm:$0xff] }
  0x96   :  { %8494 = vmatpush1.msk.msra.mxu0 %vm142_vm0, %v155_v20  ;;  %8497 = vmatpush1.msk.msra.mxu1 %vm142_vm0, %v156_v21  ;;  %v1411_v50 = vld [vmem:[#allocation11 + $0x40] sm:$0xff]  ;;  %v8518_v52 = vcombine.high %v1403_v46, %v1407_v47  ;;  %v8646_v53 = vcombine.high %v1531_v48, %v1535_v49  ;;  %v8517_v57 = vcombine.low %v1403_v46, %v1407_v47  ;;  %vm8455_vm3 = vcmask 1041408  }
  0x97   :  { %8499 = vmatprep.subr.msk.mxu0 %vm142_vm0, %v221_v25  ;;  %8502 = vmatprep.subr.msk.mxu1 %vm142_vm0, %v222_v28  ;;  %v207_v34 = vsub.s32 %v204_v31, %v9954_v30  ;;  %v1415_v54 = vld [vmem:[#allocation11 + $0x60] sm:$0xff]  ;;  %v8645_v58 = vcombine.low %v1531_v48, %v1535_v49  ;;  %vm8482_vm4 = vcmask 1024  }
  0x98   :  { %v1539_v55 = vld [vmem:[#allocation11 + $0x440] sm:$0xff]  ;;  %v8526_v59 = vcombine.high %v1411_v50, %v1415_v54  ;;  %v8525_v1 = vcombine.low %v1411_v50, %v1415_v54 }
  0x99   :  { %151 = vadd.xlane.f32.xlu0 %v150_v18  ;;  %542 = vadd.xlane.f32.xlu1 %v541_v19  ;;  %v1543_v56 = vld [vmem:[#allocation11 + $0x460] sm:$0xff] }
  0x9a   :  { %v8654_v60 = vcombine.high %v1539_v55, %v1543_v56  ;;  %v1419_v61 = vld [vmem:[#allocation11 + $0x80] sm:$0xff]  ;;  %v8653_v2 = vcombine.low %v1539_v55, %v1543_v56 }
  0x9b   :  { %v1423_v62 = vld [vmem:[#allocation11 + $0xa0] sm:$0xff] }
  0x9c   :  { %v1547_v63 = vld [vmem:[#allocation11 + $0x480] sm:$0xff]  ;;  %v8534_v3 = vcombine.high %v1419_v61, %v1423_v62  ;;  %v8533_v9 = vcombine.low %v1419_v61, %v1423_v62 }
  0x9d   :  { %v1551_v0 = vld [vmem:[#allocation11 + $0x4a0] sm:$0xff] }
  0x9e   :  { %v8662_v4 = vcombine.high %v1547_v63, %v1551_v0  ;;  %v1427_v5 = vld [vmem:[#allocation11 + $0xc0] sm:$0xff]  ;;  %v8661_v10 = vcombine.low %v1547_v63, %v1551_v0 }
  0x9f   :  { %v1431_v6 = vld [vmem:[#allocation11 + $0xe0] sm:$0xff] }
  0xa0   :  { %v1555_v7 = vld [vmem:[#allocation11 + $0x4c0] sm:$0xff]  ;;  %v8542_v11 = vcombine.high %v1427_v5, %v1431_v6  ;;  %v8541_v17 = vcombine.low %v1427_v5, %v1431_v6 }
  0xa1   :  { %v1559_v8 = vld [vmem:[#allocation11 + $0x4e0] sm:$0xff] }
  0xa2   :  { %v8670_v12 = vcombine.high %v1555_v7, %v1559_v8  ;;  %v1435_v13 = vld [vmem:[#allocation11 + $0x100] sm:$0xff]  ;;  %v8669_v18 = vcombine.low %v1555_v7, %v1559_v8 }
  0xa3   :  { %v1439_v14 = vld [vmem:[#allocation11 + $0x120] sm:$0xff] }
  0xa4   :  { %v1563_v15 = vld [vmem:[#allocation11 + $0x500] sm:$0xff]  ;;  %v8550_v19 = vcombine.high %v1435_v13, %v1439_v14 }
  0xa5   :  { %v1567_v16 = vld [vmem:[#allocation11 + $0x520] sm:$0xff] }
  0xa6   :  { %v1451_v29 = vld [vmem:[#allocation11 + $0x180] sm:$0xff] }
  0xa7   :  { %v1455_v31 = vld [vmem:[#allocation11 + $0x1a0] sm:$0xff] }
  0xa8   :  { %v1467_v46 = vld [vmem:[#allocation11 + $0x200] sm:$0xff] }
  0xa9   :  { %v1471_v47 = vld [vmem:[#allocation11 + $0x220] sm:$0xff] }
  0xaa   :  { %v1595_v48 = vld [vmem:[#allocation11 + $0x600] sm:$0xff] }
  0xab   :  { %v1599_v49 = vld [vmem:[#allocation11 + $0x620] sm:$0xff] }
  0xac   :  { %v1475_v54 = vld [vmem:[#allocation11 + $0x240] sm:$0xff] }
  0xad   :  { %v1479_v55 = vld [vmem:[#allocation11 + $0x260] sm:$0xff] }
  0xae   :  { %v1603_v56 = vld [vmem:[#allocation11 + $0x640] sm:$0xff] }
  0xaf   :  { %v1483_v62 = vld [vmem:[#allocation11 + $0x280] sm:$0xff] }
  0xb0   :  { %v1487_v63 = vld [vmem:[#allocation11 + $0x2a0] sm:$0xff] }
  0xb1   :  { %v1611_v0 = vld [vmem:[#allocation11 + $0x680] sm:$0xff] }
  0xb2   :  { %v1491_v6 = vld [vmem:[#allocation11 + $0x2c0] sm:$0xff] }
  0xb3   :  { %v1495_v7 = vld [vmem:[#allocation11 + $0x2e0] sm:$0xff] }
  0xb4   :  { %v1619_v8 = vld [vmem:[#allocation11 + $0x6c0] sm:$0xff] }
 0x122   :  { %v147_v32 = vpop.xlane.xlu0 %146  ;;  %v538_v33 = vpop.xlane.xlu1 %537 }
 0x123   :  { %v153_v35 = vmul.f32 0.00390625, %v147_v32  ;;  %v544_v41 = vmul.f32 0.00390625, %v538_v33  ;;  %v1579_v32 = vld [vmem:[#allocation11 + $0x580] sm:$0xff] }
 0x124   :  { %v1583_v33 = vld [vmem:[#allocation11 + $0x5a0] sm:$0xff] }
 0x125   :  { %v208_v39 = vrot.slane %v153_v35, %v207_v34  ;;  %v551_v44 = vrot.slane %v544_v41, %v207_v34  ;;  %v1591_v41 = vld [vmem:[#allocation11 + $0x5e0] sm:$0xff] }
 0x126   :  { %v152_v36 = vpop.xlane.xlu0 %151  ;;  %v543_v38 = vpop.xlane.xlu1 %542 }
 0x127   :  { %v154_v37 = vmul.f32 0.00390625, %v152_v36  ;;  %v545_v42 = vmul.f32 0.00390625, %v543_v38  ;;  %v8566_v36 = vcombine.high %v1451_v29, %v1455_v31  ;;  %v1459_v38 = vld [vmem:[#allocation11 + $0x1c0] sm:$0xff] }
 0x129   :  { %v212_v40 = vrot.slane %v154_v37, %v207_v34  ;;  %v555_v45 = vrot.slane %v545_v42, %v207_v34  ;;  %v8694_v37 = vcombine.high %v1579_v32, %v1583_v33  ;;  %v8565_v42 = vcombine.low %v1451_v29, %v1455_v31 }
 0x12b   :  { %v214_v43 = vsel %vm213_vm1, %v212_v40, %v208_v39  ;;  %v556_v51 = vsel %vm213_vm1, %v555_v45, %v551_v44  ;;  %v1463_v39 = vld [vmem:[#allocation11 + $0x1e0] sm:$0xff] }
 0x12c   :  { %8495 = vmatmul.mubr.msk.f32.vlgmr.msra.gmra.mrb[0].mxu0 %vm223_vm2, %v214_v43  ;;  %8498 = vmatmul.mubr.msk.f32.vlgmr.msra.gmra.mrb[0].mxu1 %vm223_vm2, %v214_v43  ;;  %v1587_v40 = vld [vmem:[#allocation11 + $0x5c0] sm:$0xff]  ;;  %v8574_v44 = vcombine.high %v1459_v38, %v1463_v39  ;;  %v8573_v50 = vcombine.low %v1459_v38, %v1463_v39 }
 0x12d   :  { %8500 = vmatpush1.msk.msra.mxu0 %vm142_vm0, %v157_v24  ;;  %8503 = vmatpush1.msk.msra.mxu1 %vm142_vm0, %v158_v27  ;;  %v8702_v45 = vcombine.high %v1587_v40, %v1591_v41 }
 0x12e   :  { %448 = vmatprep.mubr.f32.mxu0 %v9767_v26  ;;  %519 = vmatprep.mubr.f32.mxu1 %v9767_v26 }
 0x12f   :  { %8505 = vmatprep.subr.msk.mxu0 %vm142_vm0, %v219_v22  ;;  %8508 = vmatprep.subr.msk.mxu1 %vm142_vm0, %v220_v23  ;;  %v1447_v22 = vld [vmem:[#allocation11 + $0x160] sm:$0xff] }
 0x130   :  { %8501 = vmatmul.mubr.msk.f32.vlgmr.msra.gmra.mrb[2].mxu0 %vm223_vm2, %v214_v43  ;;  %8504 = vmatmul.mubr.msk.f32.vlgmr.msra.gmra.mrb[2].mxu1 %vm223_vm2, %v214_v43  ;;  %v1571_v23 = vld [vmem:[#allocation11 + $0x540] sm:$0xff]  ;;  %v8693_v43 = vcombine.low %v1579_v32, %v1583_v33 }
 0x131   :  { %8506 = vmatpush1.msk.msra.mxu0 %vm142_vm0, %v155_v20  ;;  %8509 = vmatpush1.msk.msra.mxu1 %vm142_vm0, %v156_v21  ;;  %v8678_v20 = vcombine.high %v1563_v15, %v1567_v16  ;;  %v1443_v21 = vld [vmem:[#allocation11 + $0x140] sm:$0xff] }
 0x132   :  { %623 = vmatprep.mubr.f32.mxu0 %v9767_v26  ;;  %694 = vmatprep.mubr.f32.mxu1 %v9767_v26  ;;  %v8557_v34 = vcombine.low %v1443_v21, %v1447_v22  ;;  %v1515_v33 = vld [vmem:[#allocation11 + $0x380] sm:$0xff] }
 0x133   :  { %8511 = vmatprep.subr.msk.mxu0 %vm142_vm0, %v221_v25  ;;  %8514 = vmatprep.subr.msk.mxu1 %vm142_vm0, %v222_v28  ;;  %v8549_v25 = vcombine.low %v1435_v13, %v1439_v14  ;;  %v8605_v14 = vcombine.low %v1491_v6, %v1495_v7 }
 0x134   :  { %8507 = vmatmul.mubr.msk.f32.vlgmr.msra.gmra.mrb[4].mxu0 %vm223_vm2, %v556_v51  ;;  %8510 = vmatmul.mubr.msk.f32.vlgmr.msra.gmra.mrb[4].mxu1 %vm223_vm2, %v556_v51 }
 0x135   :  { %8512 = vmatpush1.msk.msra.mxu0 %vm142_vm0, %v157_v24  ;;  %765 = vmatprep.mubr.f32.mxu0 %v9767_v26  ;;  %v1575_v24 = vld [vmem:[#allocation11 + $0x560] sm:$0xff] }
 0x136   :  { %8515 = vmatpush1.msk.msra.mxu1 %vm142_vm0, %v158_v27  ;;  %836 = vmatprep.mubr.f32.mxu1 %v9767_v26  ;;  %v8677_v26 = vcombine.low %v1563_v15, %v1567_v16  ;;  %v8558_v27 = vcombine.high %v1443_v21, %v1447_v22  ;;  %v8686_v28 = vcombine.high %v1571_v23, %v1575_v24  ;;  %v1499_v16 = vld [vmem:[#allocation11 + $0x300] sm:$0xff] }
 0x137   :  { %4475 = vmatprep.subr.bf16.mxu0 %v8518_v52  ;;  %4516 = vmatprep.subr.bf16.mxu1 %v8646_v53  ;;  %v8685_v35 = vcombine.low %v1571_v23, %v1575_v24  ;;  %v8582_v52 = vcombine.high %v1467_v46, %v1471_v47  ;;  %v8710_v53 = vcombine.high %v1595_v48, %v1599_v49  ;;  %v1507_v24 = vld [vmem:[#allocation11 + $0x340] sm:$0xff] }
 0x138   :  { %8513 = vmatmul.mubr.msk.f32.vlgmr.msra.gmra.mrb[6].mxu0 %vm223_vm2, %v556_v51  ;;  %8516 = vmatmul.mubr.msk.f32.vlgmr.msra.gmra.mrb[6].mxu1 %vm223_vm2, %v556_v51  ;;  %v8701_v51 = vcombine.low %v1587_v40, %v1591_v41  ;;  %v1523_v41 = vld [vmem:[#allocation11 + $0x3c0] sm:$0xff] }
 0x139   :  { %4476 = vmatpush1.bf16.msra.mxu0 %v8517_v57  ;;  %4517 = vmatpush1.bf16.msra.mxu1 %v8645_v58  ;;  %v1607_v57 = vld [vmem:[#allocation11 + $0x660] sm:$0xff]  ;;  %v8581_v58 = vcombine.low %v1467_v46, %v1471_v47 }
 0x13a   :  { %4477 = vmatprep.subr.bf16.mxu0 %v8526_v59  ;;  %4518 = vmatprep.subr.bf16.mxu1 %v8654_v60  ;;  %v8709_v59 = vcombine.low %v1595_v48, %v1599_v49  ;;  %v8590_v60 = vcombine.high %v1475_v54, %v1479_v55  ;;  %v8718_v61 = vcombine.high %v1603_v56, %v1607_v57  ;;  %v9977_v49 = vld [vmem:[#allocation11 + $0x800] sm:$0xff] }
 0x13d   :  { %4478 = vmatpush1.bf16.msra.mxu0 %v8525_v1  ;;  %4519 = vmatpush1.bf16.msra.mxu1 %v8653_v2  ;;  %v1615_v1 = vld [vmem:[#allocation11 + $0x6a0] sm:$0xff]  ;;  %v8589_v2 = vcombine.low %v1475_v54, %v1479_v55 }
 0x13e   :  { %4479 = vmatprep.subr.bf16.mxu0 %v8534_v3  ;;  %4520 = vmatprep.subr.bf16.mxu1 %v8662_v4  ;;  %v8717_v3 = vcombine.low %v1603_v56, %v1607_v57  ;;  %v8598_v4 = vcombine.high %v1483_v62, %v1487_v63  ;;  %v8726_v5 = vcombine.high %v1611_v0, %v1615_v1  ;;  %v9994_v57 = vsub.s32 0, %v9954_v30 }
 0x141   :  { %4480 = vmatpush1.bf16.msra.mxu0 %v8533_v9  ;;  %4521 = vmatpush1.bf16.msra.mxu1 %v8661_v10  ;;  %v1623_v9 = vld [vmem:[#allocation11 + $0x6e0] sm:$0xff]  ;;  %v8597_v10 = vcombine.low %v1483_v62, %v1487_v63 }
 0x142   :  { %4481 = vmatprep.subr.bf16.mxu0 %v8542_v11  ;;  %4522 = vmatprep.subr.bf16.mxu1 %v8670_v12  ;;  %v8725_v11 = vcombine.low %v1611_v0, %v1615_v1  ;;  %v8606_v12 = vcombine.high %v1491_v6, %v1495_v7  ;;  %v8734_v13 = vcombine.high %v1619_v8, %v1623_v9  ;;  %v10010_v6 = vsub.s32 4, %v9954_v30 }
 0x143   :  { %v8733_v15 = vcombine.low %v1619_v8, %v1623_v9  ;;  %v10013_v7 = vsub.s32 6, %v9954_v30  ;;  %v10016_v8 = vsub.s32 5, %v9954_v30  ;;  %v10019_v9 = vsub.s32 7, %v9954_v30 }
 0x145   :  { %4482 = vmatpush1.bf16.msra.mxu0 %v8541_v17  ;;  %4523 = vmatpush1.bf16.msra.mxu1 %v8669_v18  ;;  %v1503_v17 = vld [vmem:[#allocation11 + $0x320] sm:$0xff] }
 0x146   :  { %4483 = vmatprep.subr.bf16.mxu0 %v8550_v19  ;;  %4524 = vmatprep.subr.bf16.mxu1 %v8678_v20  ;;  %v1627_v18 = vld [vmem:[#allocation11 + $0x700] sm:$0xff]  ;;  %v8614_v19 = vcombine.high %v1499_v16, %v1503_v17  ;;  %v8613_v21 = vcombine.low %v1499_v16, %v1503_v17 }
 0x147   :  { %v1631_v20 = vld [vmem:[#allocation11 + $0x720] sm:$0xff] }
 0x148   :  { %v8741_v22 = vcombine.low %v1627_v18, %v1631_v20  ;;  %v8742_v23 = vcombine.high %v1627_v18, %v1631_v20  ;;  %v10023_v17 = vld [vmem:[#allocation11 + $0x860] sm:$0xff] }
 0x149   :  { %4484 = vmatpush1.bf16.msra.mxu0 %v8549_v25  ;;  %4525 = vmatpush1.bf16.msra.mxu1 %v8677_v26  ;;  %v1511_v25 = vld [vmem:[#allocation11 + $0x360] sm:$0xff] }
 0x14a   :  { %4485 = vmatprep.subr.bf16.mxu0 %v8558_v27  ;;  %4526 = vmatprep.subr.bf16.mxu1 %v8686_v28  ;;  %v1635_v26 = vld [vmem:[#allocation11 + $0x740] sm:$0xff]  ;;  %v8622_v27 = vcombine.high %v1507_v24, %v1511_v25  ;;  %v8621_v29 = vcombine.low %v1507_v24, %v1511_v25 }
 0x14b   :  { %v1639_v28 = vld [vmem:[#allocation11 + $0x760] sm:$0xff] }
 0x14c   :  { %v8749_v31 = vcombine.low %v1635_v26, %v1639_v28  ;;  %v8750_v32 = vcombine.high %v1635_v26, %v1639_v28  ;;  %v10025_v18 = vld [vmem:[#allocation11 + $0xc40] sm:$0xff] }
 0x14d   :  { %4486 = vmatpush1.bf16.msra.mxu0 %v8557_v34  ;;  %4527 = vmatpush1.bf16.msra.mxu1 %v8685_v35  ;;  %v1519_v34 = vld [vmem:[#allocation11 + $0x3a0] sm:$0xff] }
 0x14e   :  { %4487 = vmatprep.subr.bf16.mxu0 %v8566_v36  ;;  %4528 = vmatprep.subr.bf16.mxu1 %v8694_v37  ;;  %v1643_v35 = vld [vmem:[#allocation11 + $0x780] sm:$0xff]  ;;  %v8630_v36 = vcombine.high %v1515_v33, %v1519_v34  ;;  %v8629_v38 = vcombine.low %v1515_v33, %v1519_v34 }
 0x14f   :  { %v1647_v37 = vld [vmem:[#allocation11 + $0x7a0] sm:$0xff] }
 0x150   :  { %v8757_v39 = vcombine.low %v1643_v35, %v1647_v37  ;;  %v8758_v40 = vcombine.high %v1643_v35, %v1647_v37 }
 0x151   :  { %4488 = vmatpush1.bf16.msra.mxu0 %v8565_v42  ;;  %4529 = vmatpush1.bf16.msra.mxu1 %v8693_v43  ;;  %v1527_v42 = vld [vmem:[#allocation11 + $0x3e0] sm:$0xff] }
 0x152   :  { %4489 = vmatprep.subr.bf16.mxu0 %v8574_v44  ;;  %4530 = vmatprep.subr.bf16.mxu1 %v8702_v45  ;;  %v1651_v43 = vld [vmem:[#allocation11 + $0x7c0] sm:$0xff]  ;;  %v8638_v44 = vcombine.high %v1523_v41, %v1527_v42  ;;  %v8637_v46 = vcombine.low %v1523_v41, %v1527_v42 }
 0x153   :  { %v1655_v45 = vld [vmem:[#allocation11 + $0x7e0] sm:$0xff] }
 0x154   :  { %v8765_v47 = vcombine.low %v1651_v43, %v1655_v45  ;;  %v8766_v48 = vcombine.high %v1651_v43, %v1655_v45 }
 0x155   :  { %4490 = vmatpush1.bf16.msra.mxu0 %v8573_v50  ;;  %4531 = vmatpush1.bf16.msra.mxu1 %v8701_v51  ;;  %v9979_v50 = vld [vmem:[#allocation11 + $0x820] sm:$0xff] }
 0x156   :  { %4491 = vmatprep.subr.bf16.mxu0 %v8582_v52  ;;  %4532 = vmatprep.subr.bf16.mxu1 %v8710_v53  ;;  %v9981_v51 = vld [vmem:[#allocation11 + $0xc00] sm:$0xff]  ;;  %v8774_v52 = vcombine.high %v9977_v49, %v9979_v50  ;;  %v8773_v54 = vcombine.low %v9977_v49, %v9979_v50 }
 0x157   :  { %v9985_v53 = vld [vmem:[#allocation11 + $0xc20] sm:$0xff] }
 0x158   :  { %v8901_v55 = vcombine.low %v9981_v51, %v9985_v53  ;;  %v8902_v56 = vcombine.high %v9981_v51, %v9985_v53  ;;  %v1683_v50 = vld [vmem:[#allocation11 + $0x8c0] sm:$0xff] }
 0x159   :  { %4492 = vmatpush1.bf16.msra.mxu0 %v8581_v58  ;;  %4533 = vmatpush1.bf16.msra.mxu1 %v8709_v59  ;;  %v9997_v58 = vsub.s32 2, %v9954_v30  ;;  %v10000_v59 = vsub.s32 1, %v9954_v30  ;;  %v1811_v51 = vld [vmem:[#allocation11 + $0xcc0] sm:$0xff] }
 0x15a   :  { %4493 = vmatprep.subr.bf16.mxu0 %v8590_v60  ;;  %4534 = vmatprep.subr.bf16.mxu1 %v8718_v61  ;;  %v10003_v60 = vsub.s32 3, %v9954_v30  ;;  %v159_v61 = vld [vmem:[#allocation8] sm:$0xff]  ;;  %v1815_v53 = vld [vmem:[#allocation11 + $0xce0] sm:$0xff] }
 0x15b   :  { %v164_v62 = vrot.slane %v159_v61, %v9994_v57  ;;  %v172_v0 = vrot.slane %v159_v61, %v9997_v58  ;;  %v180_v20 = vrot.slane %v159_v61, %v10010_v6  ;;  %v192_v24 = vrot.slane %v159_v61, %v10019_v9 }
 0x15d   :  { %4494 = vmatpush1.bf16.msra.mxu0 %v8589_v2  ;;  %4535 = vmatpush1.bf16.msra.mxu1 %v8717_v3  ;;  %v168_v2 = vrot.slane %v159_v61, %v10000_v59  ;;  %v176_v3 = vrot.slane %v159_v61, %v10003_v60 }
 0x15e   :  { %4495 = vmatprep.subr.bf16.mxu0 %v8598_v4  ;;  %4536 = vmatprep.subr.bf16.mxu1 %v8726_v5 }
 0x161   :  { %4496 = vmatpush1.bf16.msra.mxu0 %v8597_v10  ;;  %4537 = vmatpush1.bf16.msra.mxu1 %v8725_v11  ;;  %v10021_v10 = vld [vmem:[#allocation11 + $0x840] sm:$0xff] }
 0x162   :  { %4497 = vmatprep.subr.bf16.mxu0 %v8606_v12  ;;  %4538 = vmatprep.subr.bf16.mxu1 %v8734_v13  ;;  %v8782_v25 = vcombine.high %v10021_v10, %v10023_v17 }
 0x165   :  { %4498 = vmatpush1.bf16.msra.mxu0 %v8605_v14  ;;  %4539 = vmatpush1.bf16.msra.mxu1 %v8733_v15 }
 0x166   :  { %4499 = vmatprep.subr.bf16.mxu0 %v8614_v19  ;;  %4540 = vmatprep.subr.bf16.mxu1 %v8742_v23  ;;  %v10027_v19 = vld [vmem:[#allocation11 + $0xc60] sm:$0xff]  ;;  %v184_v23 = vrot.slane %v159_v61, %v10016_v8 }
 0x167   :  { %v8910_v26 = vcombine.high %v10025_v18, %v10027_v19 }
 0x169   :  { %4500 = vmatpush1.bf16.msra.mxu0 %v8613_v21  ;;  %4541 = vmatpush1.bf16.msra.mxu1 %v8741_v22  ;;  %v188_v21 = vrot.slane %v159_v61, %v10013_v7 }
 0x16a   :  { %4501 = vmatprep.subr.bf16.mxu0 %v8622_v27  ;;  %4542 = vmatprep.subr.bf16.mxu1 %v8750_v32 }
 0x16d   :  { %4502 = vmatpush1.bf16.msra.mxu0 %v8621_v29  ;;  %4543 = vmatpush1.bf16.msra.mxu1 %v8749_v31 }
 0x16e   :  { %4503 = vmatprep.subr.bf16.mxu0 %v8630_v36  ;;  %4544 = vmatprep.subr.bf16.mxu1 %v8758_v40 }
 0x171   :  { %4504 = vmatpush1.bf16.msra.mxu0 %v8629_v38  ;;  %4545 = vmatpush1.bf16.msra.mxu1 %v8757_v39 }
 0x172   :  { %4505 = vmatprep.subr.bf16.mxu0 %v8638_v44  ;;  %4546 = vmatprep.subr.bf16.mxu1 %v8766_v48 }
 0x175   :  { %4506 = vmatpush1.bf16.msra.mxu0 %v8637_v46  ;;  %4547 = vmatpush1.bf16.msra.mxu1 %v8765_v47 }
 0x176   :  { %4557 = vmatprep.subr.bf16.mxu0 %v8774_v52  ;;  %4598 = vmatprep.subr.bf16.mxu1 %v8902_v56 }
 0x1ff   :  { %v308_v63 = vpop.f32.mrb[0].mxu0  ;;  %v379_v1 = vpop.f32.mrb[0].mxu1 }
 0x200   :  { %v310_v4 = vpop.f32.mrb[1].mxu0  ;;  %v381_v5 = vpop.f32.mrb[1].mxu1  ;;  %v309_v11 = vadd.f32 %v308_v63, %v164_v62  ;;  %v380_v12 = vadd.f32 %v379_v1, %v172_v0 }
 0x201   :  { %v311_v13 = vadd.f32 %v310_v4, %v168_v2  ;;  %v382_v14 = vadd.f32 %v381_v5, %v176_v3 }
 0x202   :  { %v843_v27 = vmul.f32 %v309_v11, %v309_v11  ;;  %v845_v28 = vmul.f32 %v380_v12, %v380_v12 }
 0x203   :  { %v450_v15 = vpop.f32.mrb[2].mxu0  ;;  %v521_v16 = vpop.f32.mrb[2].mxu1  ;;  %v844_v29 = vmul.f32 %v311_v13, %v311_v13  ;;  %v846_v31 = vmul.f32 %v382_v14, %v382_v14 }
 0x204   :  { %v452_v30 = vpop.f32.mrb[3].mxu0  ;;  %v523_v22 = vpop.f32.mrb[3].mxu1  ;;  %v451_v34 = vadd.f32 %v450_v15, %v180_v20  ;;  %v522_v35 = vadd.f32 %v521_v16, %v188_v21 }
 0x205   :  { %v453_v40 = vadd.f32 %v452_v30, %v184_v23  ;;  %v524_v41 = vadd.f32 %v523_v22, %v192_v24 }
 0x206   :  { %v847_v4 = vmul.f32 %v451_v34, %v451_v34  ;;  %v849_v5 = vmul.f32 %v522_v35, %v522_v35 }
 0x207   :  { %v625_v32 = vpop.f32.mrb[4].mxu0  ;;  %v696_v33 = vpop.f32.mrb[4].mxu1 }
 0x208   :  { %v626_v36 = vadd.f32 %v625_v32, %v164_v62  ;;  %v697_v37 = vadd.f32 %v696_v33, %v172_v0  ;;  %v627_v38 = vpop.f32.mrb[5].mxu0  ;;  %v698_v39 = vpop.f32.mrb[5].mxu1 }
 0x209   :  { %v628_v42 = vadd.f32 %v627_v38, %v168_v2  ;;  %v699_v43 = vadd.f32 %v698_v39, %v176_v3 }
 0x20a   :  { %v851_v44 = vmul.f32 %v626_v36, %v626_v36  ;;  %v867_v45 = vmul.f32 %v626_v36, %v309_v11  ;;  %v853_v46 = vmul.f32 %v697_v37, %v697_v37  ;;  %v869_v47 = vmul.f32 %v697_v37, %v380_v12 }
 0x20b   :  { %v852_v48 = vmul.f32 %v628_v42, %v628_v42  ;;  %v868_v52 = vmul.f32 %v628_v42, %v311_v13  ;;  %v854_v56 = vmul.f32 %v699_v43, %v699_v43  ;;  %v870_v61 = vmul.f32 %v699_v43, %v382_v14  ;;  %v767_v63 = vpop.f32.mrb[6].mxu0  ;;  %v838_v1 = vpop.f32.mrb[6].mxu1  ;;  %v1675_v42 = vld [vmem:[#allocation11 + $0x880] sm:$0xff] }
 0x20c   :  { %v10037_v62 = vsub.f32 %v843_v27, %v851_v44  ;;  %v10039_v0 = vsub.f32 %v845_v28, %v853_v46  ;;  %v769_v15 = vpop.f32.mrb[7].mxu0  ;;  %v840_v16 = vpop.f32.mrb[7].mxu1  ;;  %v848_v13 = vmul.f32 %v453_v40, %v453_v40  ;;  %v850_v14 = vmul.f32 %v524_v41, %v524_v41  ;;  %v1679_v43 = vld [vmem:[#allocation11 + $0x8a0] sm:$0xff] }
 0x20d   :  { %v10041_v2 = vsub.f32 %v844_v29, %v852_v48  ;;  %v10043_v3 = vpack.c.bf16 %v868_v52, %v868_v52  ;;  %v10045_v11 = vsub.f32 %v846_v31, %v854_v56  ;;  %v10047_v12 = vpack.c.bf16 %v870_v61, %v870_v61  ;;  %v1807_v44 = vld [vmem:[#allocation11 + $0xca0] sm:$0xff] }
 0x20e   :  { %v768_v30 = vadd.f32 %v767_v63, %v180_v20  ;;  %v839_v22 = vadd.f32 %v838_v1, %v188_v21  ;;  %v10049_v32 = vpack.c.bf16 %v867_v45, %v867_v45  ;;  %v10051_v27 = vpack.c.bf16 %v869_v47, %v869_v47  ;;  %v1691_v52 = vld [vmem:[#allocation11 + $0x900] sm:$0xff] }
 0x20f   :  { %v770_v28 = vadd.f32 %v769_v15, %v184_v23  ;;  %v841_v33 = vadd.f32 %v840_v16, %v192_v24  ;;  %4507 = vmatprep.mubr.bf16.mxu0 %v10043_v3  ;;  %4548 = vmatprep.mubr.bf16.mxu1 %v10047_v12  ;;  %v8909_v47 = vcombine.low %v10025_v18, %v10027_v19  ;;  %v1695_v56 = vld [vmem:[#allocation11 + $0x920] sm:$0xff] }
 0x210   :  { %v855_v29 = vmul.f32 %v768_v30, %v768_v30  ;;  %v10054_v36 = vmul.f32 %v768_v30, %v451_v34  ;;  %v857_v37 = vmul.f32 %v839_v22, %v839_v22  ;;  %v10056_v31 = vmul.f32 %v839_v22, %v522_v35  ;;  %4508 = vmatmul.mubr.bf16.vlgmr.msra.gmra.mrb[8].mxu0 %v10049_v32  ;;  %v1803_v35 = vld [vmem:[#allocation11 + $0xc80] sm:$0xff] }
 0x211   :  { %v856_v38 = vmul.f32 %v770_v28, %v770_v28  ;;  %v872_v39 = vmul.f32 %v770_v28, %v453_v40  ;;  %v858_v20 = vmul.f32 %v841_v33, %v841_v33  ;;  %v874_v21 = vmul.f32 %v841_v33, %v524_v41  ;;  %4549 = vmatmul.mubr.bf16.vlgmr.msra.gmra.mrb[8].mxu1 %v10051_v27  ;;  %v1819_v61 = vld [vmem:[#allocation11 + $0xd00] sm:$0xff] }
 0x212   :  { %v10060_v23 = vsub.f32 %v847_v4, %v855_v29  ;;  %v10062_v24 = vsub.f32 %v849_v5, %v857_v37  ;;  %v8781_v34 = vcombine.low %v10021_v10, %v10023_v17  ;;  %4558 = vmatpush1.bf16.msra.mxu0 %v8773_v54  ;;  %4599 = vmatpush1.bf16.msra.mxu1 %v8901_v55  ;;  %v1687_v54 = vld [vmem:[#allocation11 + $0x8e0] sm:$0xff] }
 0x213   :  { %v10067_v45 = vsub.f32 %v848_v13, %v856_v38  ;;  %v10069_v40 = vpack.c.bf16 %v872_v39, %v872_v39  ;;  %v10071_v41 = vsub.f32 %v850_v14, %v858_v20  ;;  %v10073_v46 = vpack.c.bf16 %v874_v21, %v874_v21  ;;  %4559 = vmatprep.subr.bf16.mxu0 %v8782_v25  ;;  %v1823_v18 = vld [vmem:[#allocation11 + $0xd20] sm:$0xff] }
 0x214   :  { %v8790_v48 = vcombine.high %v1675_v42, %v1679_v43  ;;  %4600 = vmatprep.subr.bf16.mxu1 %v8910_v26  ;;  %v8918_v49 = vcombine.high %v1803_v35, %v1807_v44  ;;  %v8789_v55 = vcombine.low %v1675_v42, %v1679_v43  ;;  %v8917_v10 = vcombine.low %v1803_v35, %v1807_v44  ;;  %v1699_v4 = vld [vmem:[#allocation11 + $0x940] sm:$0xff] }
 0x215   :  { %4589 = vmatprep.mubr.bf16.mxu0 %v10069_v40  ;;  %4630 = vmatprep.mubr.bf16.mxu1 %v10073_v46  ;;  %v8798_v17 = vcombine.high %v1683_v50, %v1687_v54  ;;  %v8926_v25 = vcombine.high %v1811_v51, %v1815_v53  ;;  %v8797_v19 = vcombine.low %v1683_v50, %v1687_v54  ;;  %v1703_v5 = vld [vmem:[#allocation11 + $0x960] sm:$0xff] }
 0x216   :  { %4560 = vmatpush1.bf16.msra.mxu0 %v8781_v34  ;;  %4601 = vmatpush1.bf16.msra.mxu1 %v8909_v47  ;;  %v8925_v26 = vcombine.low %v1811_v51, %v1815_v53  ;;  %v8806_v63 = vcombine.high %v1691_v52, %v1695_v56  ;;  %v8934_v1 = vcombine.high %v1819_v61, %v1823_v18  ;;  %v1827_v15 = vld [vmem:[#allocation11 + $0xd40] sm:$0xff] }
 0x217   :  { %4561 = vmatprep.subr.bf16.mxu0 %v8790_v48  ;;  %4602 = vmatprep.subr.bf16.mxu1 %v8918_v49  ;;  %v1831_v16 = vld [vmem:[#allocation11 + $0xd60] sm:$0xff]  ;;  %v8805_v13 = vcombine.low %v1691_v52, %v1695_v56  ;;  %v8933_v14 = vcombine.low %v1819_v61, %v1823_v18  ;;  %v8814_v30 = vcombine.high %v1699_v4, %v1703_v5 }
 0x218   :  { %v8942_v22 = vcombine.high %v1827_v15, %v1831_v16  ;;  %v1707_v28 = vld [vmem:[#allocation11 + $0x980] sm:$0xff]  ;;  %v8813_v38 = vcombine.low %v1699_v4, %v1703_v5  ;;  %v8941_v39 = vcombine.low %v1827_v15, %v1831_v16 }
 0x219   :  { %v1711_v33 = vld [vmem:[#allocation11 + $0x9a0] sm:$0xff] }
 0x21a   :  { %4562 = vmatpush1.bf16.msra.mxu0 %v8789_v55  ;;  %4603 = vmatpush1.bf16.msra.mxu1 %v8917_v10  ;;  %v1835_v29 = vld [vmem:[#allocation11 + $0xd80] sm:$0xff]  ;;  %v8822_v20 = vcombine.high %v1707_v28, %v1711_v33  ;;  %v8821_v44 = vcombine.low %v1707_v28, %v1711_v33 }
 0x21b   :  { %4563 = vmatprep.subr.bf16.mxu0 %v8798_v17  ;;  %4604 = vmatprep.subr.bf16.mxu1 %v8926_v25  ;;  %v1839_v37 = vld [vmem:[#allocation11 + $0xda0] sm:$0xff] }
 0x21c   :  { %v8950_v21 = vcombine.high %v1835_v29, %v1839_v37  ;;  %v1715_v42 = vld [vmem:[#allocation11 + $0x9c0] sm:$0xff]  ;;  %v8949_v47 = vcombine.low %v1835_v29, %v1839_v37 }
 0x21d   :  { %v1719_v43 = vld [vmem:[#allocation11 + $0x9e0] sm:$0xff] }
 0x21e   :  { %4564 = vmatpush1.bf16.msra.mxu0 %v8797_v19  ;;  %4605 = vmatpush1.bf16.msra.mxu1 %v8925_v26  ;;  %v1843_v34 = vld [vmem:[#allocation11 + $0xdc0] sm:$0xff]  ;;  %v8830_v48 = vcombine.high %v1715_v42, %v1719_v43  ;;  %v8829_v55 = vcombine.low %v1715_v42, %v1719_v43 }
 0x21f   :  { %4565 = vmatprep.subr.bf16.mxu0 %v8806_v63  ;;  %4606 = vmatprep.subr.bf16.mxu1 %v8934_v1  ;;  %v1847_v35 = vld [vmem:[#allocation11 + $0xde0] sm:$0xff] }
 0x220   :  { %v8958_v49 = vcombine.high %v1843_v34, %v1847_v35  ;;  %v1723_v50 = vld [vmem:[#allocation11 + $0xa00] sm:$0xff]  ;;  %v8957_v10 = vcombine.low %v1843_v34, %v1847_v35 }
 0x221   :  { %v1727_v54 = vld [vmem:[#allocation11 + $0xa20] sm:$0xff] }
 0x222   :  { %4566 = vmatpush1.bf16.msra.mxu0 %v8805_v13  ;;  %4607 = vmatpush1.bf16.msra.mxu1 %v8933_v14  ;;  %v1851_v51 = vld [vmem:[#allocation11 + $0xe00] sm:$0xff]  ;;  %v8838_v17 = vcombine.high %v1723_v50, %v1727_v54  ;;  %v8837_v19 = vcombine.low %v1723_v50, %v1727_v54 }
 0x223   :  { %4567 = vmatprep.subr.bf16.mxu0 %v8814_v30  ;;  %4608 = vmatprep.subr.bf16.mxu1 %v8942_v22  ;;  %v1855_v53 = vld [vmem:[#allocation11 + $0xe20] sm:$0xff] }
 0x224   :  { %v8966_v25 = vcombine.high %v1851_v51, %v1855_v53  ;;  %v1731_v52 = vld [vmem:[#allocation11 + $0xa40] sm:$0xff]  ;;  %v8965_v26 = vcombine.low %v1851_v51, %v1855_v53 }
 0x225   :  { %v1735_v56 = vld [vmem:[#allocation11 + $0xa60] sm:$0xff] }
 0x226   :  { %4568 = vmatpush1.bf16.msra.mxu0 %v8813_v38  ;;  %4609 = vmatpush1.bf16.msra.mxu1 %v8941_v39  ;;  %v1859_v61 = vld [vmem:[#allocation11 + $0xe40] sm:$0xff]  ;;  %v8846_v63 = vcombine.high %v1731_v52, %v1735_v56  ;;  %v8845_v13 = vcombine.low %v1731_v52, %v1735_v56 }
 0x227   :  { %4569 = vmatprep.subr.bf16.mxu0 %v8822_v20  ;;  %4610 = vmatprep.subr.bf16.mxu1 %v8950_v21  ;;  %v1863_v18 = vld [vmem:[#allocation11 + $0xe60] sm:$0xff] }
 0x228   :  { %v8974_v1 = vcombine.high %v1859_v61, %v1863_v18  ;;  %v1739_v4 = vld [vmem:[#allocation11 + $0xa80] sm:$0xff]  ;;  %v8973_v14 = vcombine.low %v1859_v61, %v1863_v18 }
 0x229   :  { %v1743_v5 = vld [vmem:[#allocation11 + $0xaa0] sm:$0xff] }
 0x22a   :  { %4570 = vmatpush1.bf16.msra.mxu0 %v8821_v44  ;;  %4611 = vmatpush1.bf16.msra.mxu1 %v8949_v47  ;;  %v1867_v15 = vld [vmem:[#allocation11 + $0xe80] sm:$0xff]  ;;  %v8854_v30 = vcombine.high %v1739_v4, %v1743_v5  ;;  %v8853_v38 = vcombine.low %v1739_v4, %v1743_v5 }
 0x22b   :  { %4571 = vmatprep.subr.bf16.mxu0 %v8830_v48  ;;  %4612 = vmatprep.subr.bf16.mxu1 %v8958_v49  ;;  %v1871_v16 = vld [vmem:[#allocation11 + $0xea0] sm:$0xff] }
 0x22c   :  { %v8982_v22 = vcombine.high %v1867_v15, %v1871_v16  ;;  %v1747_v28 = vld [vmem:[#allocation11 + $0xac0] sm:$0xff]  ;;  %v8981_v39 = vcombine.low %v1867_v15, %v1871_v16 }
 0x22d   :  { %v1751_v33 = vld [vmem:[#allocation11 + $0xae0] sm:$0xff] }
 0x22e   :  { %4572 = vmatpush1.bf16.msra.mxu0 %v8829_v55  ;;  %4613 = vmatpush1.bf16.msra.mxu1 %v8957_v10  ;;  %v1875_v29 = vld [vmem:[#allocation11 + $0xec0] sm:$0xff]  ;;  %v8862_v20 = vcombine.high %v1747_v28, %v1751_v33  ;;  %v8861_v44 = vcombine.low %v1747_v28, %v1751_v33  ;;  %v1404_v28 = vld [vmem:[#allocation11 + $0x8] sm:$0xff] }
 0x22f   :  { %4573 = vmatprep.subr.bf16.mxu0 %v8838_v17  ;;  %4614 = vmatprep.subr.bf16.mxu1 %v8966_v25  ;;  %v1879_v37 = vld [vmem:[#allocation11 + $0xee0] sm:$0xff]  ;;  %v1408_v33 = vld [vmem:[#allocation11 + $0x28] sm:$0xff] }
 0x230   :  { %v8990_v21 = vcombine.high %v1875_v29, %v1879_v37  ;;  %v1755_v42 = vld [vmem:[#allocation11 + $0xb00] sm:$0xff]  ;;  %v8989_v47 = vcombine.low %v1875_v29, %v1879_v37  ;;  %v1532_v29 = vld [vmem:[#allocation11 + $0x408] sm:$0xff] }
 0x231   :  { %v1759_v43 = vld [vmem:[#allocation11 + $0xb20] sm:$0xff]  ;;  %v1536_v37 = vld [vmem:[#allocation11 + $0x428] sm:$0xff] }
 0x232   :  { %4574 = vmatpush1.bf16.msra.mxu0 %v8837_v19  ;;  %4615 = vmatpush1.bf16.msra.mxu1 %v8965_v26  ;;  %v1883_v34 = vld [vmem:[#allocation11 + $0xf00] sm:$0xff]  ;;  %v8870_v48 = vcombine.high %v1755_v42, %v1759_v43  ;;  %v8869_v55 = vcombine.low %v1755_v42, %v1759_v43  ;;  %v1412_v42 = vld [vmem:[#allocation11 + $0x48] sm:$0xff] }
 0x233   :  { %4575 = vmatprep.subr.bf16.mxu0 %v8846_v63  ;;  %4616 = vmatprep.subr.bf16.mxu1 %v8974_v1  ;;  %v1887_v35 = vld [vmem:[#allocation11 + $0xf20] sm:$0xff]  ;;  %v1416_v43 = vld [vmem:[#allocation11 + $0x68] sm:$0xff] }
 0x234   :  { %v8998_v49 = vcombine.high %v1883_v34, %v1887_v35  ;;  %v1763_v50 = vld [vmem:[#allocation11 + $0xb40] sm:$0xff]  ;;  %v8997_v10 = vcombine.low %v1883_v34, %v1887_v35  ;;  %v8519_v34 = vcombine.low %v1404_v28, %v1408_v33  ;;  %v1540_v35 = vld [vmem:[#allocation11 + $0x448] sm:$0xff] }
 0x235   :  { %v1767_v54 = vld [vmem:[#allocation11 + $0xb60] sm:$0xff] }
 0x236   :  { %4576 = vmatpush1.bf16.msra.mxu0 %v8845_v13  ;;  %4617 = vmatpush1.bf16.msra.mxu1 %v8973_v14  ;;  %v1891_v51 = vld [vmem:[#allocation11 + $0xf40] sm:$0xff]  ;;  %v8878_v17 = vcombine.high %v1763_v50, %v1767_v54  ;;  %v8877_v19 = vcombine.low %v1763_v50, %v1767_v54  ;;  %v8528_v50 = vcombine.high %v1412_v42, %v1416_v43  ;;  %v1420_v54 = vld [vmem:[#allocation11 + $0x88] sm:$0xff] }
 0x237   :  { %4577 = vmatprep.subr.bf16.mxu0 %v8854_v30  ;;  %4618 = vmatprep.subr.bf16.mxu1 %v8982_v22  ;;  %v1895_v53 = vld [vmem:[#allocation11 + $0xf60] sm:$0xff] }
 0x238   :  { %v9006_v25 = vcombine.high %v1891_v51, %v1895_v53  ;;  %v1771_v52 = vld [vmem:[#allocation11 + $0xb80] sm:$0xff]  ;;  %v9005_v26 = vcombine.low %v1891_v51, %v1895_v53  ;;  %v1424_v51 = vld [vmem:[#allocation11 + $0xa8] sm:$0xff] }
 0x239   :  { %v1775_v56 = vld [vmem:[#allocation11 + $0xba0] sm:$0xff] }
 0x23a   :  { %4578 = vmatpush1.bf16.msra.mxu0 %v8853_v38  ;;  %4619 = vmatpush1.bf16.msra.mxu1 %v8981_v39  ;;  %v1899_v61 = vld [vmem:[#allocation11 + $0xf80] sm:$0xff]  ;;  %v8886_v63 = vcombine.high %v1771_v52, %v1775_v56  ;;  %v8885_v13 = vcombine.low %v1771_v52, %v1775_v56  ;;  %v1428_v52 = vld [vmem:[#allocation11 + $0xc8] sm:$0xff] }
 0x23b   :  { %4579 = vmatprep.subr.bf16.mxu0 %v8862_v20  ;;  %4620 = vmatprep.subr.bf16.mxu1 %v8990_v21  ;;  %v1903_v18 = vld [vmem:[#allocation11 + $0xfa0] sm:$0xff]  ;;  %v8520_v20 = vcombine.high %v1404_v28, %v1408_v33  ;;  %v8648_v21 = vcombine.high %v1532_v29, %v1536_v37  ;;  %v1432_v56 = vld [vmem:[#allocation11 + $0xe8] sm:$0xff] }
 0x23c   :  { %v9014_v1 = vcombine.high %v1899_v61, %v1903_v18  ;;  %v1779_v4 = vld [vmem:[#allocation11 + $0xbc0] sm:$0xff]  ;;  %v9013_v14 = vcombine.low %v1899_v61, %v1903_v18  ;;  %v1556_v61 = vld [vmem:[#allocation11 + $0x4c8] sm:$0xff] }
 0x23d   :  { %v1783_v5 = vld [vmem:[#allocation11 + $0xbe0] sm:$0xff]  ;;  %v1560_v18 = vld [vmem:[#allocation11 + $0x4e8] sm:$0xff] }
 0x23e   :  { %4580 = vmatpush1.bf16.msra.mxu0 %v8861_v44  ;;  %4621 = vmatpush1.bf16.msra.mxu1 %v8989_v47  ;;  %v1907_v15 = vld [vmem:[#allocation11 + $0xfc0] sm:$0xff]  ;;  %v8894_v30 = vcombine.high %v1779_v4, %v1783_v5  ;;  %v8893_v38 = vcombine.low %v1779_v4, %v1783_v5  ;;  %v1544_v44 = vld [vmem:[#allocation11 + $0x468] sm:$0xff]  ;;  %v10093_v47 = vpack.c.bf16 %v10054_v36, %v10054_v36 }
 0x23f   :  { %4581 = vmatprep.subr.bf16.mxu0 %v8870_v48  ;;  %4622 = vmatprep.subr.bf16.mxu1 %v8998_v49  ;;  %v1911_v16 = vld [vmem:[#allocation11 + $0xfe0] sm:$0xff]  ;;  %v8647_v48 = vcombine.low %v1532_v29, %v1536_v37  ;;  %v10097_v49 = vpack.c.bf16 %v10056_v31, %v10056_v31  ;;  %v8656_v53 = vcombine.high %v1540_v35, %v1544_v44  ;;  %v1436_v4 = vld [vmem:[#allocation11 + $0x108] sm:$0xff] }
 0x240   :  { %v9022_v22 = vcombine.high %v1907_v15, %v1911_v16  ;;  %v9021_v39 = vcombine.low %v1907_v15, %v1911_v16  ;;  %v8527_v36 = vcombine.low %v1412_v42, %v1416_v43  ;;  %v1440_v5 = vld [vmem:[#allocation11 + $0x128] sm:$0xff] }
 0x241   :  { %v1564_v15 = vld [vmem:[#allocation11 + $0x508] sm:$0xff] }
 0x242   :  { %4582 = vmatpush1.bf16.msra.mxu0 %v8869_v55  ;;  %4623 = vmatpush1.bf16.msra.mxu1 %v8997_v10  ;;  %v1548_v55 = vld [vmem:[#allocation11 + $0x488] sm:$0xff] }
 0x243   :  { %4583 = vmatprep.subr.bf16.mxu0 %v8878_v17  ;;  %4624 = vmatprep.subr.bf16.mxu1 %v9006_v25  ;;  %v1552_v10 = vld [vmem:[#allocation11 + $0x4a8] sm:$0xff]  ;;  %v8655_v17 = vcombine.low %v1540_v35, %v1544_v44  ;;  %v8536_v25 = vcombine.high %v1420_v54, %v1424_v51 }
 0x244   :  { %v8664_v31 = vcombine.high %v1548_v55, %v1552_v10  ;;  %v1568_v16 = vld [vmem:[#allocation11 + $0x528] sm:$0xff] }
 0x245   :  { %v1444_v28 = vld [vmem:[#allocation11 + $0x148] sm:$0xff] }
 0x246   :  { %4584 = vmatpush1.bf16.msra.mxu0 %v8877_v19  ;;  %4625 = vmatpush1.bf16.msra.mxu1 %v9005_v26  ;;  %v8535_v19 = vcombine.low %v1420_v54, %v1424_v51  ;;  %v8663_v26 = vcombine.low %v1548_v55, %v1552_v10  ;;  %v1448_v33 = vld [vmem:[#allocation11 + $0x168] sm:$0xff] }
 0x247   :  { %4585 = vmatprep.subr.bf16.mxu0 %v8886_v63  ;;  %4626 = vmatprep.subr.bf16.mxu1 %v9014_v1  ;;  %v8544_v63 = vcombine.high %v1428_v52, %v1432_v56  ;;  %v8672_v1 = vcombine.high %v1556_v61, %v1560_v18  ;;  %v1572_v29 = vld [vmem:[#allocation11 + $0x548] sm:$0xff]  ;;  %v8559_v44 = vcombine.low %v1444_v28, %v1448_v33 }
 0x248   :  { %v1576_v37 = vld [vmem:[#allocation11 + $0x568] sm:$0xff] }
 0x249   :  { %v1452_v42 = vld [vmem:[#allocation11 + $0x188] sm:$0xff] }
 0x24a   :  { %4586 = vmatpush1.bf16.msra.mxu0 %v8885_v13  ;;  %4627 = vmatpush1.bf16.msra.mxu1 %v9013_v14  ;;  %v8543_v13 = vcombine.low %v1428_v52, %v1432_v56  ;;  %v8671_v14 = vcombine.low %v1556_v61, %v1560_v18  ;;  %v1456_v43 = vld [vmem:[#allocation11 + $0x1a8] sm:$0xff] }
 0x24b   :  { %4587 = vmatprep.subr.bf16.mxu0 %v8894_v30  ;;  %4628 = vmatprep.subr.bf16.mxu1 %v9022_v22  ;;  %v8552_v30 = vcombine.high %v1436_v4, %v1440_v5  ;;  %v8680_v22 = vcombine.high %v1564_v15, %v1568_v16  ;;  %v1584_v35 = vld [vmem:[#allocation11 + $0x5a8] sm:$0xff] }
 0x24c   :  { %v1460_v51 = vld [vmem:[#allocation11 + $0x1c8] sm:$0xff] }
 0x24d   :  { %v1588_v55 = vld [vmem:[#allocation11 + $0x5c8] sm:$0xff] }
 0x24e   :  { %4588 = vmatpush1.bf16.msra.mxu0 %v8893_v38  ;;  %4629 = vmatpush1.bf16.msra.mxu1 %v9021_v39  ;;  %v8551_v38 = vcombine.low %v1436_v4, %v1440_v5  ;;  %v8679_v39 = vcombine.low %v1564_v15, %v1568_v16  ;;  %v1592_v10 = vld [vmem:[#allocation11 + $0x5e8] sm:$0xff] }
 0x24f   :  { %4639 = vmatprep.subr.bf16.mxu0 %v8520_v20  ;;  %4680 = vmatprep.subr.bf16.mxu1 %v8648_v21  ;;  %v8560_v20 = vcombine.high %v1444_v28, %v1448_v33  ;;  %v8688_v21 = vcombine.high %v1572_v29, %v1576_v37  ;;  %v1468_v52 = vld [vmem:[#allocation11 + $0x208] sm:$0xff] }
 0x250   :  { %v1472_v56 = vld [vmem:[#allocation11 + $0x228] sm:$0xff] }
 0x251   :  { %4590 = vmatmul.mubr.bf16.vlgmr.msra.gmra.mrb[12].mxu0 %v10093_v47  ;;  %4631 = vmatmul.mubr.bf16.vlgmr.msra.gmra.mrb[12].mxu1 %v10097_v49  ;;  %v1596_v61 = vld [vmem:[#allocation11 + $0x608] sm:$0xff] }
 0x252   :  { %4640 = vmatpush1.bf16.msra.mxu0 %v8519_v34  ;;  %4671 = vmatprep.mubr.bf16.mxu0 %v10043_v3  ;;  %v1580_v34 = vld [vmem:[#allocation11 + $0x588] sm:$0xff] }
 0x253   :  { %4681 = vmatpush1.bf16.msra.mxu1 %v8647_v48  ;;  %4712 = vmatprep.mubr.bf16.mxu1 %v10047_v12  ;;  %v8687_v48 = vcombine.low %v1572_v29, %v1576_v37  ;;  %v8696_v54 = vcombine.high %v1580_v34, %v1584_v35  ;;  %v1600_v18 = vld [vmem:[#allocation11 + $0x628] sm:$0xff] }
 0x254   :  { %4641 = vmatprep.subr.bf16.mxu0 %v8528_v50  ;;  %4682 = vmatprep.subr.bf16.mxu1 %v8656_v53  ;;  %v8568_v50 = vcombine.high %v1452_v42, %v1456_v43  ;;  %v1464_v53 = vld [vmem:[#allocation11 + $0x1e8] sm:$0xff] }
 0x255   :  { %v1476_v4 = vld [vmem:[#allocation11 + $0x248] sm:$0xff] }
 0x256   :  { %4642 = vmatpush1.bf16.msra.mxu0 %v8527_v36  ;;  %v8567_v36 = vcombine.low %v1452_v42, %v1456_v43  ;;  %v1480_v5 = vld [vmem:[#allocation11 + $0x268] sm:$0xff] }
 0x257   :  { %4683 = vmatpush1.bf16.msra.mxu1 %v8655_v17  ;;  %4643 = vmatprep.subr.bf16.mxu0 %v8536_v25  ;;  %v8695_v17 = vcombine.low %v1580_v34, %v1584_v35  ;;  %v8576_v25 = vcombine.high %v1460_v51, %v1464_v53  ;;  %v1604_v15 = vld [vmem:[#allocation11 + $0x648] sm:$0xff] }
 0x258   :  { %4684 = vmatprep.subr.bf16.mxu1 %v8664_v31  ;;  %v8704_v31 = vcombine.high %v1588_v55, %v1592_v10  ;;  %v1608_v16 = vld [vmem:[#allocation11 + $0x668] sm:$0xff] }
 0x259   :  { %v1484_v28 = vld [vmem:[#allocation11 + $0x288] sm:$0xff] }
 0x25a   :  { %4644 = vmatpush1.bf16.msra.mxu0 %v8535_v19  ;;  %v8575_v19 = vcombine.low %v1460_v51, %v1464_v53  ;;  %v1488_v33 = vld [vmem:[#allocation11 + $0x2a8] sm:$0xff] }
 0x25b   :  { %4685 = vmatpush1.bf16.msra.mxu1 %v8663_v26  ;;  %4645 = vmatprep.subr.bf16.mxu0 %v8544_v63  ;;  %v8703_v26 = vcombine.low %v1588_v55, %v1592_v10  ;;  %v8584_v63 = vcombine.high %v1468_v52, %v1472_v56  ;;  %v1612_v29 = vld [vmem:[#allocation11 + $0x688] sm:$0xff] }
 0x25c   :  { %4686 = vmatprep.subr.bf16.mxu1 %v8672_v1  ;;  %v8712_v1 = vcombine.high %v1596_v61, %v1600_v18  ;;  %v1616_v37 = vld [vmem:[#allocation11 + $0x6a8] sm:$0xff] }
 0x25d   :  { %v1492_v42 = vld [vmem:[#allocation11 + $0x2c8] sm:$0xff] }
 0x25e   :  { %4646 = vmatpush1.bf16.msra.mxu0 %v8543_v13  ;;  %v8583_v13 = vcombine.low %v1468_v52, %v1472_v56  ;;  %v1496_v43 = vld [vmem:[#allocation11 + $0x2e8] sm:$0xff] }
 0x25f   :  { %4687 = vmatpush1.bf16.msra.mxu1 %v8671_v14  ;;  %4647 = vmatprep.subr.bf16.mxu0 %v8552_v30  ;;  %v8711_v14 = vcombine.low %v1596_v61, %v1600_v18  ;;  %v8592_v30 = vcombine.high %v1476_v4, %v1480_v5  ;;  %v1620_v34 = vld [vmem:[#allocation11 + $0x6c8] sm:$0xff] }
 0x260   :  { %4688 = vmatprep.subr.bf16.mxu1 %v8680_v22  ;;  %v8720_v22 = vcombine.high %v1604_v15, %v1608_v16  ;;  %v1624_v35 = vld [vmem:[#allocation11 + $0x6e8] sm:$0xff] }
 0x261   :  { %v1500_v51 = vld [vmem:[#allocation11 + $0x308] sm:$0xff] }
 0x262   :  { %4648 = vmatpush1.bf16.msra.mxu0 %v8551_v38  ;;  %v8591_v38 = vcombine.low %v1476_v4, %v1480_v5  ;;  %v1504_v53 = vld [vmem:[#allocation11 + $0x328] sm:$0xff] }
 0x263   :  { %4689 = vmatpush1.bf16.msra.mxu1 %v8679_v39  ;;  %4649 = vmatprep.subr.bf16.mxu0 %v8560_v20  ;;  %v8719_v39 = vcombine.low %v1604_v15, %v1608_v16  ;;  %v8600_v20 = vcombine.high %v1484_v28, %v1488_v33  ;;  %v1628_v55 = vld [vmem:[#allocation11 + $0x708] sm:$0xff] }
 0x264   :  { %4690 = vmatprep.subr.bf16.mxu1 %v8688_v21  ;;  %v8728_v21 = vcombine.high %v1612_v29, %v1616_v37  ;;  %v1632_v10 = vld [vmem:[#allocation11 + $0x728] sm:$0xff] }
 0x265   :  { %v1508_v52 = vld [vmem:[#allocation11 + $0x348] sm:$0xff] }
 0x266   :  { %4650 = vmatpush1.bf16.msra.mxu0 %v8559_v44  ;;  %v8599_v44 = vcombine.low %v1484_v28, %v1488_v33  ;;  %v1512_v56 = vld [vmem:[#allocation11 + $0x368] sm:$0xff] }
 0x267   :  { %4691 = vmatpush1.bf16.msra.mxu1 %v8687_v48  ;;  %4651 = vmatprep.subr.bf16.mxu0 %v8568_v50  ;;  %v8727_v48 = vcombine.low %v1612_v29, %v1616_v37  ;;  %v8608_v50 = vcombine.high %v1492_v42, %v1496_v43  ;;  %v1636_v61 = vld [vmem:[#allocation11 + $0x748] sm:$0xff] }
 0x268   :  { %4692 = vmatprep.subr.bf16.mxu1 %v8696_v54  ;;  %v8736_v54 = vcombine.high %v1620_v34, %v1624_v35  ;;  %v1640_v18 = vld [vmem:[#allocation11 + $0x768] sm:$0xff] }
 0x269   :  { %v1516_v4 = vld [vmem:[#allocation11 + $0x388] sm:$0xff] }
 0x26a   :  { %4652 = vmatpush1.bf16.msra.mxu0 %v8567_v36  ;;  %v8607_v36 = vcombine.low %v1492_v42, %v1496_v43  ;;  %v1520_v5 = vld [vmem:[#allocation11 + $0x3a8] sm:$0xff] }
 0x26b   :  { %4693 = vmatpush1.bf16.msra.mxu1 %v8695_v17  ;;  %4653 = vmatprep.subr.bf16.mxu0 %v8576_v25  ;;  %v8735_v17 = vcombine.low %v1620_v34, %v1624_v35  ;;  %v8616_v25 = vcombine.high %v1500_v51, %v1504_v53  ;;  %v1644_v15 = vld [vmem:[#allocation11 + $0x788] sm:$0xff] }
 0x26c   :  { %4694 = vmatprep.subr.bf16.mxu1 %v8704_v31  ;;  %v8744_v31 = vcombine.high %v1628_v55, %v1632_v10  ;;  %v1648_v16 = vld [vmem:[#allocation11 + $0x7a8] sm:$0xff] }
 0x26d   :  { %v1524_v28 = vld [vmem:[#allocation11 + $0x3c8] sm:$0xff] }
 0x26e   :  { %4654 = vmatpush1.bf16.msra.mxu0 %v8575_v19  ;;  %v8615_v19 = vcombine.low %v1500_v51, %v1504_v53  ;;  %v1528_v33 = vld [vmem:[#allocation11 + $0x3e8] sm:$0xff] }
 0x26f   :  { %4695 = vmatpush1.bf16.msra.mxu1 %v8703_v26  ;;  %4655 = vmatprep.subr.bf16.mxu0 %v8584_v63  ;;  %v8743_v26 = vcombine.low %v1628_v55, %v1632_v10  ;;  %v8624_v63 = vcombine.high %v1508_v52, %v1512_v56  ;;  %v1652_v29 = vld [vmem:[#allocation11 + $0x7c8] sm:$0xff] }
 0x270   :  { %4696 = vmatprep.subr.bf16.mxu1 %v8712_v1  ;;  %v8752_v1 = vcombine.high %v1636_v61, %v1640_v18  ;;  %v1656_v37 = vld [vmem:[#allocation11 + $0x7e8] sm:$0xff] }
 0x271   :  { %v1660_v42 = vld [vmem:[#allocation11 + $0x808] sm:$0xff] }
 0x272   :  { %4656 = vmatpush1.bf16.msra.mxu0 %v8583_v13  ;;  %v8623_v13 = vcombine.low %v1508_v52, %v1512_v56  ;;  %v1664_v43 = vld [vmem:[#allocation11 + $0x828] sm:$0xff] }
 0x273   :  { %4697 = vmatpush1.bf16.msra.mxu1 %v8711_v14  ;;  %4657 = vmatprep.subr.bf16.mxu0 %v8592_v30  ;;  %v8751_v14 = vcombine.low %v1636_v61, %v1640_v18  ;;  %v8632_v30 = vcombine.high %v1516_v4, %v1520_v5  ;;  %v1788_v34 = vld [vmem:[#allocation11 + $0xc08] sm:$0xff]  ;;  %v8775_v55 = vcombine.low %v1660_v42, %v1664_v43 }
 0x274   :  { %4698 = vmatprep.subr.bf16.mxu1 %v8720_v22  ;;  %v8760_v22 = vcombine.high %v1644_v15, %v1648_v16  ;;  %v1792_v35 = vld [vmem:[#allocation11 + $0xc28] sm:$0xff] }
 0x275   :  { %v1668_v51 = vld [vmem:[#allocation11 + $0x848] sm:$0xff] }
 0x276   :  { %4658 = vmatpush1.bf16.msra.mxu0 %v8591_v38  ;;  %v8631_v38 = vcombine.low %v1516_v4, %v1520_v5  ;;  %v1672_v53 = vld [vmem:[#allocation11 + $0x868] sm:$0xff] }
 0x277   :  { %4699 = vmatpush1.bf16.msra.mxu1 %v8719_v39  ;;  %4659 = vmatprep.subr.bf16.mxu0 %v8600_v20  ;;  %v8759_v39 = vcombine.low %v1644_v15, %v1648_v16  ;;  %v8640_v20 = vcombine.high %v1524_v28, %v1528_v33  ;;  %v1796_v10 = vld [vmem:[#allocation11 + $0xc48] sm:$0xff] }
 0x278   :  { %4700 = vmatprep.subr.bf16.mxu1 %v8728_v21  ;;  %v8768_v21 = vcombine.high %v1652_v29, %v1656_v37  ;;  %v1680_v52 = vld [vmem:[#allocation11 + $0x8a8] sm:$0xff] }
 0x279   :  { %v1804_v61 = vld [vmem:[#allocation11 + $0xc88] sm:$0xff] }
 0x27a   :  { %4660 = vmatpush1.bf16.msra.mxu0 %v8599_v44  ;;  %v8639_v44 = vcombine.low %v1524_v28, %v1528_v33  ;;  %v1808_v18 = vld [vmem:[#allocation11 + $0xca8] sm:$0xff] }
 0x27b   :  { %4701 = vmatpush1.bf16.msra.mxu1 %v8727_v48  ;;  %4661 = vmatprep.subr.bf16.mxu0 %v8608_v50  ;;  %v8767_v48 = vcombine.low %v1652_v29, %v1656_v37  ;;  %v8776_v50 = vcombine.high %v1660_v42, %v1664_v43  ;;  %v1684_v4 = vld [vmem:[#allocation11 + $0x8c8] sm:$0xff] }
 0x27c   :  { %4702 = vmatprep.subr.bf16.mxu1 %v8736_v54  ;;  %v8904_v54 = vcombine.high %v1788_v34, %v1792_v35  ;;  %v1688_v5 = vld [vmem:[#allocation11 + $0x8e8] sm:$0xff] }
 0x27d   :  { %v1812_v15 = vld [vmem:[#allocation11 + $0xcc8] sm:$0xff] }
 0x27e   :  { %4662 = vmatpush1.bf16.msra.mxu0 %v8607_v36  ;;  %v1800_v36 = vld [vmem:[#allocation11 + $0xc68] sm:$0xff] }
 0x27f   :  { %4703 = vmatpush1.bf16.msra.mxu1 %v8735_v17  ;;  %4663 = vmatprep.subr.bf16.mxu0 %v8616_v25  ;;  %v8903_v17 = vcombine.low %v1788_v34, %v1792_v35  ;;  %v8784_v25 = vcombine.high %v1668_v51, %v1672_v53  ;;  %v8912_v56 = vcombine.high %v1796_v10, %v1800_v36  ;;  %v1816_v16 = vld [vmem:[#allocation11 + $0xce8] sm:$0xff] }
 0x280   :  { %4704 = vmatprep.subr.bf16.mxu1 %v8744_v31  ;;  %v1676_v31 = vld [vmem:[#allocation11 + $0x888] sm:$0xff] }
 0x281   :  { %v1692_v28 = vld [vmem:[#allocation11 + $0x908] sm:$0xff] }
 0x282   :  { %4664 = vmatpush1.bf16.msra.mxu0 %v8615_v19  ;;  %v8783_v19 = vcombine.low %v1668_v51, %v1672_v53  ;;  %v1696_v33 = vld [vmem:[#allocation11 + $0x928] sm:$0xff] }
 0x283   :  { %4705 = vmatpush1.bf16.msra.mxu1 %v8743_v26  ;;  %4665 = vmatprep.subr.bf16.mxu0 %v8624_v63  ;;  %v8911_v26 = vcombine.low %v1796_v10, %v1800_v36  ;;  %v8792_v63 = vcombine.high %v1676_v31, %v1680_v52  ;;  %v1820_v29 = vld [vmem:[#allocation11 + $0xd08] sm:$0xff] }
 0x284   :  { %4706 = vmatprep.subr.bf16.mxu1 %v8752_v1  ;;  %v8920_v1 = vcombine.high %v1804_v61, %v1808_v18  ;;  %v1824_v37 = vld [vmem:[#allocation11 + $0xd28] sm:$0xff] }
 0x285   :  { %v1700_v42 = vld [vmem:[#allocation11 + $0x948] sm:$0xff] }
 0x286   :  { %4666 = vmatpush1.bf16.msra.mxu0 %v8623_v13  ;;  %v8791_v13 = vcombine.low %v1676_v31, %v1680_v52  ;;  %v1704_v43 = vld [vmem:[#allocation11 + $0x968] sm:$0xff] }
 0x287   :  { %4707 = vmatpush1.bf16.msra.mxu1 %v8751_v14  ;;  %4667 = vmatprep.subr.bf16.mxu0 %v8632_v30  ;;  %v8919_v14 = vcombine.low %v1804_v61, %v1808_v18  ;;  %v8800_v30 = vcombine.high %v1684_v4, %v1688_v5  ;;  %v1828_v34 = vld [vmem:[#allocation11 + $0xd48] sm:$0xff]  ;;  %v8815_v36 = vcombine.low %v1700_v42, %v1704_v43 }
 0x288   :  { %4708 = vmatprep.subr.bf16.mxu1 %v8760_v22  ;;  %v8928_v22 = vcombine.high %v1812_v15, %v1816_v16  ;;  %v1832_v35 = vld [vmem:[#allocation11 + $0xd68] sm:$0xff] }
 0x289   :  { %v1708_v51 = vld [vmem:[#allocation11 + $0x988] sm:$0xff] }
 0x28a   :  { %4668 = vmatpush1.bf16.msra.mxu0 %v8631_v38  ;;  %v8799_v38 = vcombine.low %v1684_v4, %v1688_v5  ;;  %v1712_v53 = vld [vmem:[#allocation11 + $0x9a8] sm:$0xff] }
 0x28b   :  { %4709 = vmatpush1.bf16.msra.mxu1 %v8759_v39  ;;  %4669 = vmatprep.subr.bf16.mxu0 %v8640_v20  ;;  %v8927_v39 = vcombine.low %v1812_v15, %v1816_v16  ;;  %v8808_v20 = vcombine.high %v1692_v28, %v1696_v33  ;;  %v1840_v10 = vld [vmem:[#allocation11 + $0xda8] sm:$0xff] }
 0x28c   :  { %4710 = vmatprep.subr.bf16.mxu1 %v8768_v21  ;;  %v8936_v21 = vcombine.high %v1820_v29, %v1824_v37  ;;  %v1716_v52 = vld [vmem:[#allocation11 + $0x9c8] sm:$0xff] }
 0x28d   :  { %v1844_v61 = vld [vmem:[#allocation11 + $0xdc8] sm:$0xff] }
 0x28e   :  { %4670 = vmatpush1.bf16.msra.mxu0 %v8639_v44  ;;  %v8807_v44 = vcombine.low %v1692_v28, %v1696_v33  ;;  %v1848_v18 = vld [vmem:[#allocation11 + $0xde8] sm:$0xff] }
 0x28f   :  { %4711 = vmatpush1.bf16.msra.mxu1 %v8767_v48  ;;  %4721 = vmatprep.subr.bf16.mxu0 %v8776_v50  ;;  %v8935_v48 = vcombine.low %v1820_v29, %v1824_v37  ;;  %v8816_v50 = vcombine.high %v1700_v42, %v1704_v43  ;;  %v1724_v4 = vld [vmem:[#allocation11 + $0xa08] sm:$0xff] }
 0x290   :  { %4762 = vmatprep.subr.bf16.mxu1 %v8904_v54  ;;  %v8944_v54 = vcombine.high %v1828_v34, %v1832_v35  ;;  %v1728_v5 = vld [vmem:[#allocation11 + $0xa28] sm:$0xff] }
 0x291   :  { %4672 = vmatmul.mubr.bf16.vlgmr.msra.gmra.mrb[16].mxu0 %v10049_v32  ;;  %v1852_v15 = vld [vmem:[#allocation11 + $0xe08] sm:$0xff] }
 0x292   :  { %4713 = vmatmul.mubr.bf16.vlgmr.msra.gmra.mrb[16].mxu1 %v10051_v27  ;;  %4722 = vmatpush1.bf16.msra.mxu0 %v8775_v55  ;;  %v1836_v55 = vld [vmem:[#allocation11 + $0xd88] sm:$0xff] }
 0x293   :  { %4753 = vmatprep.mubr.bf16.mxu0 %v10069_v40  ;;  %4763 = vmatpush1.bf16.msra.mxu1 %v8903_v17  ;;  %v8943_v17 = vcombine.low %v1828_v34, %v1832_v35  ;;  %v8952_v31 = vcombine.high %v1836_v55, %v1840_v10  ;;  %v1856_v16 = vld [vmem:[#allocation11 + $0xe28] sm:$0xff] }
 0x294   :  { %4794 = vmatprep.mubr.bf16.mxu1 %v10073_v46  ;;  %4723 = vmatprep.subr.bf16.mxu0 %v8784_v25  ;;  %v8824_v25 = vcombine.high %v1708_v51, %v1712_v53  ;;  %v1732_v28 = vld [vmem:[#allocation11 + $0xa48] sm:$0xff] }
 0x295   :  { %4764 = vmatprep.subr.bf16.mxu1 %v8912_v56  ;;  %v1720_v56 = vld [vmem:[#allocation11 + $0x9e8] sm:$0xff] }
 0x296   :  { %4724 = vmatpush1.bf16.msra.mxu0 %v8783_v19  ;;  %v8823_v19 = vcombine.low %v1708_v51, %v1712_v53  ;;  %v1736_v33 = vld [vmem:[#allocation11 + $0xa68] sm:$0xff] }
 0x297   :  { %4765 = vmatpush1.bf16.msra.mxu1 %v8911_v26  ;;  %4725 = vmatprep.subr.bf16.mxu0 %v8792_v63  ;;  %v8951_v26 = vcombine.low %v1836_v55, %v1840_v10  ;;  %v8832_v63 = vcombine.high %v1716_v52, %v1720_v56  ;;  %v1860_v29 = vld [vmem:[#allocation11 + $0xe48] sm:$0xff] }
 0x298   :  { %4766 = vmatprep.subr.bf16.mxu1 %v8920_v1  ;;  %v8960_v1 = vcombine.high %v1844_v61, %v1848_v18  ;;  %v1864_v37 = vld [vmem:[#allocation11 + $0xe68] sm:$0xff] }
 0x299   :  { %v1740_v42 = vld [vmem:[#allocation11 + $0xa88] sm:$0xff] }
 0x29a   :  { %4726 = vmatpush1.bf16.msra.mxu0 %v8791_v13  ;;  %v8831_v13 = vcombine.low %v1716_v52, %v1720_v56  ;;  %v1744_v43 = vld [vmem:[#allocation11 + $0xaa8] sm:$0xff] }
 0x29b   :  { %4767 = vmatpush1.bf16.msra.mxu1 %v8919_v14  ;;  %4727 = vmatprep.subr.bf16.mxu0 %v8800_v30  ;;  %v8959_v14 = vcombine.low %v1844_v61, %v1848_v18  ;;  %v8840_v30 = vcombine.high %v1724_v4, %v1728_v5  ;;  %v1868_v34 = vld [vmem:[#allocation11 + $0xe88] sm:$0xff] }
 0x29c   :  { %4768 = vmatprep.subr.bf16.mxu1 %v8928_v22  ;;  %v8968_v22 = vcombine.high %v1852_v15, %v1856_v16  ;;  %v1872_v35 = vld [vmem:[#allocation11 + $0xea8] sm:$0xff] }
 0x29d   :  { %v1748_v51 = vld [vmem:[#allocation11 + $0xac8] sm:$0xff] }
 0x29e   :  { %4728 = vmatpush1.bf16.msra.mxu0 %v8799_v38  ;;  %v8839_v38 = vcombine.low %v1724_v4, %v1728_v5  ;;  %v1752_v53 = vld [vmem:[#allocation11 + $0xae8] sm:$0xff] }
 0x29f   :  { %4769 = vmatpush1.bf16.msra.mxu1 %v8927_v39  ;;  %4729 = vmatprep.subr.bf16.mxu0 %v8808_v20  ;;  %v8967_v39 = vcombine.low %v1852_v15, %v1856_v16  ;;  %v8848_v20 = vcombine.high %v1732_v28, %v1736_v33  ;;  %v1876_v55 = vld [vmem:[#allocation11 + $0xec8] sm:$0xff] }
 0x2a0   :  { %4770 = vmatprep.subr.bf16.mxu1 %v8936_v21  ;;  %v8976_v21 = vcombine.high %v1860_v29, %v1864_v37  ;;  %v1880_v10 = vld [vmem:[#allocation11 + $0xee8] sm:$0xff] }
 0x2a1   :  { %v1756_v52 = vld [vmem:[#allocation11 + $0xb08] sm:$0xff] }
 0x2a2   :  { %4730 = vmatpush1.bf16.msra.mxu0 %v8807_v44  ;;  %v8847_v44 = vcombine.low %v1732_v28, %v1736_v33  ;;  %v1760_v56 = vld [vmem:[#allocation11 + $0xb28] sm:$0xff] }
 0x2a3   :  { %4771 = vmatpush1.bf16.msra.mxu1 %v8935_v48  ;;  %4731 = vmatprep.subr.bf16.mxu0 %v8816_v50  ;;  %v8975_v48 = vcombine.low %v1860_v29, %v1864_v37  ;;  %v8856_v50 = vcombine.high %v1740_v42, %v1744_v43  ;;  %v1884_v61 = vld [vmem:[#allocation11 + $0xf08] sm:$0xff] }
 0x2a4   :  { %4772 = vmatprep.subr.bf16.mxu1 %v8944_v54  ;;  %v8984_v54 = vcombine.high %v1868_v34, %v1872_v35  ;;  %v1888_v18 = vld [vmem:[#allocation11 + $0xf28] sm:$0xff] }
 0x2a5   :  { %v1764_v4 = vld [vmem:[#allocation11 + $0xb48] sm:$0xff] }
 0x2a6   :  { %4732 = vmatpush1.bf16.msra.mxu0 %v8815_v36  ;;  %v8855_v36 = vcombine.low %v1740_v42, %v1744_v43  ;;  %v1768_v5 = vld [vmem:[#allocation11 + $0xb68] sm:$0xff] }
 0x2a7   :  { %4773 = vmatpush1.bf16.msra.mxu1 %v8943_v17  ;;  %4733 = vmatprep.subr.bf16.mxu0 %v8824_v25  ;;  %v8983_v17 = vcombine.low %v1868_v34, %v1872_v35  ;;  %v8864_v25 = vcombine.high %v1748_v51, %v1752_v53  ;;  %v1892_v15 = vld [vmem:[#allocation11 + $0xf48] sm:$0xff] }
 0x2a8   :  { %4774 = vmatprep.subr.bf16.mxu1 %v8952_v31  ;;  %v8992_v31 = vcombine.high %v1876_v55, %v1880_v10  ;;  %v1896_v16 = vld [vmem:[#allocation11 + $0xf68] sm:$0xff] }
 0x2a9   :  { %v1772_v28 = vld [vmem:[#allocation11 + $0xb88] sm:$0xff] }
 0x2aa   :  { %4734 = vmatpush1.bf16.msra.mxu0 %v8823_v19  ;;  %v8863_v19 = vcombine.low %v1748_v51, %v1752_v53  ;;  %v1776_v33 = vld [vmem:[#allocation11 + $0xba8] sm:$0xff]  ;;  %v1405_v51 = vld [vmem:[#allocation11 + $0x10] sm:$0xff] }
 0x2ab   :  { %4775 = vmatpush1.bf16.msra.mxu1 %v8951_v26  ;;  %4735 = vmatprep.subr.bf16.mxu0 %v8832_v63  ;;  %v8991_v26 = vcombine.low %v1876_v55, %v1880_v10  ;;  %v8872_v63 = vcombine.high %v1756_v52, %v1760_v56  ;;  %v1900_v29 = vld [vmem:[#allocation11 + $0xf88] sm:$0xff]  ;;  %v1409_v53 = vld [vmem:[#allocation11 + $0x30] sm:$0xff] }
 0x2ac   :  { %4776 = vmatprep.subr.bf16.mxu1 %v8960_v1  ;;  %v9000_v1 = vcombine.high %v1884_v61, %v1888_v18  ;;  %v1904_v37 = vld [vmem:[#allocation11 + $0xfa8] sm:$0xff]  ;;  %v1533_v55 = vld [vmem:[#allocation11 + $0x410] sm:$0xff] }
 0x2ad   :  { %v1780_v42 = vld [vmem:[#allocation11 + $0xbc8] sm:$0xff]  ;;  %v1537_v10 = vld [vmem:[#allocation11 + $0x430] sm:$0xff] }
 0x2ae   :  { %4736 = vmatpush1.bf16.msra.mxu0 %v8831_v13  ;;  %v8871_v13 = vcombine.low %v1756_v52, %v1760_v56  ;;  %v1784_v43 = vld [vmem:[#allocation11 + $0xbe8] sm:$0xff]  ;;  %v1413_v52 = vld [vmem:[#allocation11 + $0x50] sm:$0xff] }
 0x2af   :  { %4777 = vmatpush1.bf16.msra.mxu1 %v8959_v14  ;;  %4737 = vmatprep.subr.bf16.mxu0 %v8840_v30  ;;  %v8999_v14 = vcombine.low %v1884_v61, %v1888_v18  ;;  %v8880_v30 = vcombine.high %v1764_v4, %v1768_v5  ;;  %v1908_v34 = vld [vmem:[#allocation11 + $0xfc8] sm:$0xff]  ;;  %v1417_v56 = vld [vmem:[#allocation11 + $0x70] sm:$0xff]  ;;  %v8521_v61 = vcombine.low %v1405_v51, %v1409_v53 }
 0x2b0   :  { %4778 = vmatprep.subr.bf16.mxu1 %v8968_v22  ;;  %v9008_v22 = vcombine.high %v1892_v15, %v1896_v16  ;;  %v1912_v35 = vld [vmem:[#allocation11 + $0xfe8] sm:$0xff]  ;;  %v1541_v18 = vld [vmem:[#allocation11 + $0x450] sm:$0xff] }
 0x2b2   :  { %4738 = vmatpush1.bf16.msra.mxu0 %v8839_v38  ;;  %v8879_v38 = vcombine.low %v1764_v4, %v1768_v5  ;;  %v1425_v4 = vld [vmem:[#allocation11 + $0xb0] sm:$0xff] }
 0x2b3   :  { %4779 = vmatpush1.bf16.msra.mxu1 %v8967_v39  ;;  %4739 = vmatprep.subr.bf16.mxu0 %v8848_v20  ;;  %v9007_v39 = vcombine.low %v1892_v15, %v1896_v16  ;;  %v8888_v20 = vcombine.high %v1772_v28, %v1776_v33  ;;  %v1549_v15 = vld [vmem:[#allocation11 + $0x490] sm:$0xff] }
 0x2b4   :  { %4780 = vmatprep.subr.bf16.mxu1 %v8976_v21  ;;  %v9016_v21 = vcombine.high %v1900_v29, %v1904_v37  ;;  %v1553_v16 = vld [vmem:[#allocation11 + $0x4b0] sm:$0xff] }
 0x2b6   :  { %4740 = vmatpush1.bf16.msra.mxu0 %v8847_v44  ;;  %v8887_v44 = vcombine.low %v1772_v28, %v1776_v33  ;;  %v1429_v28 = vld [vmem:[#allocation11 + $0xd0] sm:$0xff] }
 0x2b7   :  { %4781 = vmatpush1.bf16.msra.mxu1 %v8975_v48  ;;  %4741 = vmatprep.subr.bf16.mxu0 %v8856_v50  ;;  %v9015_v48 = vcombine.low %v1900_v29, %v1904_v37  ;;  %v8896_v50 = vcombine.high %v1780_v42, %v1784_v43  ;;  %v1433_v33 = vld [vmem:[#allocation11 + $0xf0] sm:$0xff] }
 0x2b8   :  { %4782 = vmatprep.subr.bf16.mxu1 %v8984_v54  ;;  %v9024_v54 = vcombine.high %v1908_v34, %v1912_v35  ;;  %v1557_v29 = vld [vmem:[#allocation11 + $0x4d0] sm:$0xff] }
 0x2b9   :  { %v1561_v37 = vld [vmem:[#allocation11 + $0x4f0] sm:$0xff] }
 0x2ba   :  { %4742 = vmatpush1.bf16.msra.mxu0 %v8855_v36  ;;  %v8895_v36 = vcombine.low %v1780_v42, %v1784_v43  ;;  %v1437_v42 = vld [vmem:[#allocation11 + $0x110] sm:$0xff] }
 0x2bb   :  { %4783 = vmatpush1.bf16.msra.mxu1 %v8983_v17  ;;  %4743 = vmatprep.subr.bf16.mxu0 %v8864_v25  ;;  %v9023_v17 = vcombine.low %v1908_v34, %v1912_v35  ;;  %v8522_v25 = vcombine.high %v1405_v51, %v1409_v53  ;;  %v1441_v43 = vld [vmem:[#allocation11 + $0x130] sm:$0xff] }
 0x2bc   :  { %4784 = vmatprep.subr.bf16.mxu1 %v8992_v31  ;;  %v8650_v31 = vcombine.high %v1533_v55, %v1537_v10  ;;  %v1565_v34 = vld [vmem:[#allocation11 + $0x510] sm:$0xff] }
 0x2bd   :  { %v1569_v35 = vld [vmem:[#allocation11 + $0x530] sm:$0xff] }
 0x2be   :  { %4744 = vmatpush1.bf16.msra.mxu0 %v8863_v19  ;;  %v1545_v19 = vld [vmem:[#allocation11 + $0x470] sm:$0xff] }
 0x2bf   :  { %4785 = vmatpush1.bf16.msra.mxu1 %v8991_v26  ;;  %4745 = vmatprep.subr.bf16.mxu0 %v8872_v63  ;;  %v8649_v26 = vcombine.low %v1533_v55, %v1537_v10  ;;  %v8530_v63 = vcombine.high %v1413_v52, %v1417_v56  ;;  %v8658_v5 = vcombine.high %v1541_v18, %v1545_v19  ;;  %v1445_v51 = vld [vmem:[#allocation11 + $0x150] sm:$0xff] }
 0x2c0   :  { %4786 = vmatprep.subr.bf16.mxu1 %v9000_v1  ;;  %v1421_v1 = vld [vmem:[#allocation11 + $0x90] sm:$0xff] }
 0x2c1   :  { %v1449_v53 = vld [vmem:[#allocation11 + $0x170] sm:$0xff] }
 0x2c2   :  { %4746 = vmatpush1.bf16.msra.mxu0 %v8871_v13  ;;  %v8529_v13 = vcombine.low %v1413_v52, %v1417_v56  ;;  %v1573_v55 = vld [vmem:[#allocation11 + $0x550] sm:$0xff] }
 0x2c3   :  { %4787 = vmatpush1.bf16.msra.mxu1 %v8999_v14  ;;  %4747 = vmatprep.subr.bf16.mxu0 %v8880_v30  ;;  %v8657_v14 = vcombine.low %v1541_v18, %v1545_v19  ;;  %v8538_v30 = vcombine.high %v1421_v1, %v1425_v4  ;;  %v1577_v10 = vld [vmem:[#allocation11 + $0x570] sm:$0xff]  ;;  %v8561_v19 = vcombine.low %v1445_v51, %v1449_v53 }
 0x2c4   :  { %4788 = vmatprep.subr.bf16.mxu1 %v9008_v22  ;;  %v8666_v22 = vcombine.high %v1549_v15, %v1553_v16  ;;  %v1453_v52 = vld [vmem:[#allocation11 + $0x190] sm:$0xff] }
 0x2c5   :  { %v1457_v56 = vld [vmem:[#allocation11 + $0x1b0] sm:$0xff] }
 0x2c6   :  { %4748 = vmatpush1.bf16.msra.mxu0 %v8879_v38  ;;  %v8537_v38 = vcombine.low %v1421_v1, %v1425_v4  ;;  %v1585_v18 = vld [vmem:[#allocation11 + $0x5b0] sm:$0xff]  ;;  %v8570_v1 = vcombine.high %v1453_v52, %v1457_v56 }
 0x2c7   :  { %4789 = vmatpush1.bf16.msra.mxu1 %v9007_v39  ;;  %4749 = vmatprep.subr.bf16.mxu0 %v8888_v20  ;;  %v8665_v39 = vcombine.low %v1549_v15, %v1553_v16  ;;  %v8546_v20 = vcombine.high %v1429_v28, %v1433_v33  ;;  %v1461_v16 = vld [vmem:[#allocation11 + $0x1d0] sm:$0xff] }
 0x2c8   :  { %4790 = vmatprep.subr.bf16.mxu1 %v9016_v21  ;;  %v8674_v21 = vcombine.high %v1557_v29, %v1561_v37 }
 0x2ca   :  { %4750 = vmatpush1.bf16.msra.mxu0 %v8887_v44  ;;  %v8545_v44 = vcombine.low %v1429_v28, %v1433_v33  ;;  %v1589_v28 = vld [vmem:[#allocation11 + $0x5d0] sm:$0xff] }
 0x2cb   :  { %4791 = vmatpush1.bf16.msra.mxu1 %v9015_v48  ;;  %4751 = vmatprep.subr.bf16.mxu0 %v8896_v50  ;;  %v8673_v48 = vcombine.low %v1557_v29, %v1561_v37  ;;  %v8554_v50 = vcombine.high %v1437_v42, %v1441_v43  ;;  %v1593_v33 = vld [vmem:[#allocation11 + $0x5f0] sm:$0xff] }
 0x2cc   :  { %4792 = vmatprep.subr.bf16.mxu1 %v9024_v54  ;;  %v8682_v54 = vcombine.high %v1565_v34, %v1569_v35 }
 0x2ce   :  { %4752 = vmatpush1.bf16.msra.mxu0 %v8895_v36  ;;  %v8553_v36 = vcombine.low %v1437_v42, %v1441_v43  ;;  %v8706_v43 = vcombine.high %v1589_v28, %v1593_v33 }
 0x2cf   :  { %4793 = vmatpush1.bf16.msra.mxu1 %v9023_v17  ;;  %4803 = vmatprep.subr.bf16.mxu0 %v8522_v25  ;;  %v8681_v17 = vcombine.low %v1565_v34, %v1569_v35  ;;  %v8562_v25 = vcombine.high %v1445_v51, %v1449_v53  ;;  %v1469_v34 = vld [vmem:[#allocation11 + $0x210] sm:$0xff] }
 0x2d0   :  { %4844 = vmatprep.subr.bf16.mxu1 %v8650_v31  ;;  %v8690_v31 = vcombine.high %v1573_v55, %v1577_v10  ;;  %v1473_v35 = vld [vmem:[#allocation11 + $0x230] sm:$0xff] }
 0x2d1   :  { %4754 = vmatmul.mubr.bf16.vlgmr.msra.gmra.mrb[20].mxu0 %v10093_v47  ;;  %v8586_v51 = vcombine.high %v1469_v34, %v1473_v35 }
 0x2d2   :  { %4795 = vmatmul.mubr.bf16.vlgmr.msra.gmra.mrb[20].mxu1 %v10097_v49  ;;  %4804 = vmatpush1.bf16.msra.mxu0 %v8521_v61  ;;  %v1581_v61 = vld [vmem:[#allocation11 + $0x590] sm:$0xff] }
 0x2d3   :  { %4835 = vmatprep.mubr.bf16.mxu0 %v10043_v3  ;;  %4845 = vmatpush1.bf16.msra.mxu1 %v8649_v26  ;;  %v8698_v15 = vcombine.high %v1581_v61, %v1585_v18 }
 0x2d4   :  { %4876 = vmatprep.mubr.bf16.mxu1 %v10047_v12  ;;  %4805 = vmatprep.subr.bf16.mxu0 %v8530_v63  ;;  %v8689_v63 = vcombine.low %v1573_v55, %v1577_v10  ;;  %v1477_v55 = vld [vmem:[#allocation11 + $0x250] sm:$0xff] }
 0x2d5   :  { %4846 = vmatprep.subr.bf16.mxu1 %v8658_v5  ;;  %v1481_v10 = vld [vmem:[#allocation11 + $0x270] sm:$0xff] }
 0x2d6   :  { %4806 = vmatpush1.bf16.msra.mxu0 %v8529_v13  ;;  %v1465_v13 = vld [vmem:[#allocation11 + $0x1f0] sm:$0xff] }
 0x2d7   :  { %4847 = vmatpush1.bf16.msra.mxu1 %v8657_v14  ;;  %4807 = vmatprep.subr.bf16.mxu0 %v8538_v30  ;;  %v8578_v42 = vcombine.high %v1461_v16, %v1465_v13 }
 0x2d8   :  { %4848 = vmatprep.subr.bf16.mxu1 %v8666_v22 }
 0x2da   :  { %4808 = vmatpush1.bf16.msra.mxu0 %v8537_v38 }
 0x2db   :  { %4849 = vmatpush1.bf16.msra.mxu1 %v8665_v39  ;;  %4809 = vmatprep.subr.bf16.mxu0 %v8546_v20  ;;  %v8569_v39 = vcombine.low %v1453_v52, %v1457_v56  ;;  %v8594_v52 = vcombine.high %v1477_v55, %v1481_v10 }
 0x2dc   :  { %4850 = vmatprep.subr.bf16.mxu1 %v8674_v21  ;;  %v8697_v21 = vcombine.low %v1581_v61, %v1585_v18  ;;  %v1485_v61 = vld [vmem:[#allocation11 + $0x290] sm:$0xff] }
 0x2dd   :  { %v1489_v18 = vld [vmem:[#allocation11 + $0x2b0] sm:$0xff] }
 0x2de   :  { %4810 = vmatpush1.bf16.msra.mxu0 %v8545_v44  ;;  %v1597_v44 = vld [vmem:[#allocation11 + $0x610] sm:$0xff] }
 0x2df   :  { %4851 = vmatpush1.bf16.msra.mxu1 %v8673_v48  ;;  %4811 = vmatprep.subr.bf16.mxu0 %v8554_v50  ;;  %v1601_v48 = vld [vmem:[#allocation11 + $0x630] sm:$0xff]  ;;  %v8577_v50 = vcombine.low %v1461_v16, %v1465_v13 }
 0x2e0   :  { %4852 = vmatprep.subr.bf16.mxu1 %v8682_v54  ;;  %v8705_v54 = vcombine.low %v1589_v28, %v1593_v33  ;;  %v8714_v53 = vcombine.high %v1597_v44, %v1601_v48  ;;  %v1497_v16 = vld [vmem:[#allocation11 + $0x2f0] sm:$0xff] }
 0x2e1   :  { %v1621_v13 = vld [vmem:[#allocation11 + $0x6d0] sm:$0xff] }
 0x2e2   :  { %4812 = vmatpush1.bf16.msra.mxu0 %v8553_v36  ;;  %v1605_v36 = vld [vmem:[#allocation11 + $0x650] sm:$0xff] }
 0x2e3   :  { %4853 = vmatpush1.bf16.msra.mxu1 %v8681_v17  ;;  %v4509_v26 = vpop.f32.mrb[8].mxu0  ;;  %4813 = vmatprep.subr.bf16.mxu0 %v8562_v25  ;;  %v1609_v17 = vld [vmem:[#allocation11 + $0x670] sm:$0xff]  ;;  %v8585_v25 = vcombine.low %v1469_v34, %v1473_v35 }
 0x2e4   :  { %v4550_v4 = vpop.f32.mrb[8].mxu1  ;;  %4854 = vmatprep.subr.bf16.mxu1 %v8690_v31  ;;  %v4511_v5 = vpop.f32.mrb[9].mxu0  ;;  %v8713_v31 = vcombine.low %v1597_v44, %v1601_v48  ;;  %v8722_v56 = vcombine.high %v1605_v36, %v1609_v17  ;;  %v1509_v44 = vld [vmem:[#allocation11 + $0x350] sm:$0xff] }
 0x2e5   :  { %v10111_v14 = vadd.f32 %v4550_v4, %v4509_v26  ;;  %v4552_v30 = vpop.f32.mrb[9].mxu1  ;;  %v4513_v22 = vpop.f32.mrb[10].mxu0  ;;  %v1617_v26 = vld [vmem:[#allocation11 + $0x6b0] sm:$0xff]  ;;  %v8602_v4 = vcombine.high %v1485_v61, %v1489_v18 }
 0x2e6   :  { %v10113_v29 = vadd.f32 %v4552_v30, %v4511_v5  ;;  %4814 = vmatpush1.bf16.msra.mxu0 %v8561_v19  ;;  %v4554_v37 = vpop.f32.mrb[10].mxu1  ;;  %v4514_v38 = vpop.f32.mrb[11].mxu0  ;;  %v1613_v19 = vld [vmem:[#allocation11 + $0x690] sm:$0xff]  ;;  %v8601_v22 = vcombine.low %v1485_v61, %v1489_v18 }
 0x2e7   :  { %4855 = vmatpush1.bf16.msra.mxu1 %v8689_v63  ;;  %v4555_v20 = vpop.f32.mrb[11].mxu1  ;;  %4815 = vmatprep.subr.bf16.mxu0 %v8570_v1  ;;  %v8593_v63 = vcombine.low %v1477_v55, %v1481_v10  ;;  %v8721_v1 = vcombine.low %v1605_v36, %v1609_v17  ;;  %v8730_v5 = vcombine.high %v1613_v19, %v1617_v26  ;;  %v1625_v30 = vld [vmem:[#allocation11 + $0x6f0] sm:$0xff] }
 0x2e8   :  { %4856 = vmatprep.subr.bf16.mxu1 %v8698_v15  ;;  %v1493_v15 = vld [vmem:[#allocation11 + $0x2d0] sm:$0xff]  ;;  %v8729_v28 = vcombine.low %v1613_v19, %v1617_v26  ;;  %v8738_v37 = vcombine.high %v1621_v13, %v1625_v30 }
 0x2e9   :  { %v8610_v33 = vcombine.high %v1493_v15, %v1497_v16  ;;  %v1501_v38 = vld [vmem:[#allocation11 + $0x310] sm:$0xff] }
 0x2ea   :  { %4816 = vmatpush1.bf16.msra.mxu0 %v8569_v39  ;;  %v1505_v39 = vld [vmem:[#allocation11 + $0x330] sm:$0xff] }
 0x2eb   :  { %4857 = vmatpush1.bf16.msra.mxu1 %v8697_v21  ;;  %4817 = vmatprep.subr.bf16.mxu0 %v8578_v42  ;;  %v1629_v20 = vld [vmem:[#allocation11 + $0x710] sm:$0xff]  ;;  %v8609_v42 = vcombine.low %v1493_v15, %v1497_v16  ;;  %v8618_v34 = vcombine.high %v1501_v38, %v1505_v39 }
 0x2ec   :  { %4858 = vmatprep.subr.bf16.mxu1 %v8706_v43  ;;  %v1633_v21 = vld [vmem:[#allocation11 + $0x730] sm:$0xff]  ;;  %v8737_v43 = vcombine.low %v1621_v13, %v1625_v30 }
 0x2ed   :  { %v8746_v35 = vcombine.high %v1629_v20, %v1633_v21  ;;  %v1513_v48 = vld [vmem:[#allocation11 + $0x370] sm:$0xff] }
 0x2ee   :  { %4818 = vmatpush1.bf16.msra.mxu0 %v8577_v50  ;;  %v1637_v50 = vld [vmem:[#allocation11 + $0x750] sm:$0xff]  ;;  %v8626_v55 = vcombine.high %v1509_v44, %v1513_v48 }
 0x2ef   :  { %4859 = vmatpush1.bf16.msra.mxu1 %v8705_v54  ;;  %4819 = vmatprep.subr.bf16.mxu0 %v8586_v51  ;;  %v1641_v54 = vld [vmem:[#allocation11 + $0x770] sm:$0xff]  ;;  %v8617_v51 = vcombine.low %v1501_v38, %v1505_v39 }
 0x2f0   :  { %4860 = vmatprep.subr.bf16.mxu1 %v8714_v53  ;;  %v8745_v53 = vcombine.low %v1629_v20, %v1633_v21  ;;  %v8754_v10 = vcombine.high %v1637_v50, %v1641_v54  ;;  %v1517_v36 = vld [vmem:[#allocation11 + $0x390] sm:$0xff] }
 0x2f1   :  { %v1521_v17 = vld [vmem:[#allocation11 + $0x3b0] sm:$0xff] }
 0x2f2   :  { %4820 = vmatpush1.bf16.msra.mxu0 %v8585_v25  ;;  %v1645_v25 = vld [vmem:[#allocation11 + $0x790] sm:$0xff]  ;;  %v8634_v61 = vcombine.high %v1517_v36, %v1521_v17 }
 0x2f3   :  { %4861 = vmatpush1.bf16.msra.mxu1 %v8713_v31  ;;  %4821 = vmatprep.subr.bf16.mxu0 %v8594_v52  ;;  %v1649_v31 = vld [vmem:[#allocation11 + $0x7b0] sm:$0xff]  ;;  %v8625_v52 = vcombine.low %v1509_v44, %v1513_v48 }
 0x2f4   :  { %4862 = vmatprep.subr.bf16.mxu1 %v8722_v56  ;;  %v8753_v56 = vcombine.low %v1637_v50, %v1641_v54  ;;  %v8762_v18 = vcombine.high %v1645_v25, %v1649_v31  ;;  %v1525_v19 = vld [vmem:[#allocation11 + $0x3d0] sm:$0xff] }
 0x2f5   :  { %v1529_v26 = vld [vmem:[#allocation11 + $0x3f0] sm:$0xff] }
 0x2f6   :  { %4822 = vmatpush1.bf16.msra.mxu0 %v8593_v63  ;;  %v1653_v63 = vld [vmem:[#allocation11 + $0x7d0] sm:$0xff]  ;;  %v8642_v15 = vcombine.high %v1525_v19, %v1529_v26 }
 0x2f7   :  { %4863 = vmatpush1.bf16.msra.mxu1 %v8721_v1  ;;  %4823 = vmatprep.subr.bf16.mxu0 %v8602_v4  ;;  %v1657_v1 = vld [vmem:[#allocation11 + $0x7f0] sm:$0xff]  ;;  %v8633_v4 = vcombine.low %v1517_v36, %v1521_v17 }
 0x2f8   :  { %4864 = vmatprep.subr.bf16.mxu1 %v8730_v5  ;;  %v8761_v5 = vcombine.low %v1645_v25, %v1649_v31  ;;  %v8770_v16 = vcombine.high %v1653_v63, %v1657_v1  ;;  %v1661_v13 = vld [vmem:[#allocation11 + $0x810] sm:$0xff] }
 0x2f9   :  { %v1665_v30 = vld [vmem:[#allocation11 + $0x830] sm:$0xff] }
 0x2fa   :  { %4824 = vmatpush1.bf16.msra.mxu0 %v8601_v22  ;;  %v1789_v22 = vld [vmem:[#allocation11 + $0xc10] sm:$0xff]  ;;  %v8778_v38 = vcombine.high %v1661_v13, %v1665_v30 }
 0x2fb   :  { %4865 = vmatpush1.bf16.msra.mxu1 %v8729_v28  ;;  %4825 = vmatprep.subr.bf16.mxu0 %v8610_v33  ;;  %v1793_v28 = vld [vmem:[#allocation11 + $0xc30] sm:$0xff]  ;;  %v8641_v33 = vcombine.low %v1525_v19, %v1529_v26 }
 0x2fc   :  { %4866 = vmatprep.subr.bf16.mxu1 %v8738_v37  ;;  %v8769_v37 = vcombine.low %v1653_v63, %v1657_v1  ;;  %v8906_v39 = vcombine.high %v1789_v22, %v1793_v28  ;;  %v1669_v20 = vld [vmem:[#allocation11 + $0x850] sm:$0xff] }
 0x2fd   :  { %v1673_v21 = vld [vmem:[#allocation11 + $0x870] sm:$0xff] }
 0x2fe   :  { %4826 = vmatpush1.bf16.msra.mxu0 %v8609_v42  ;;  %v8777_v42 = vcombine.low %v1661_v13, %v1665_v30  ;;  %v8786_v44 = vcombine.high %v1669_v20, %v1673_v21  ;;  %v1677_v48 = vld [vmem:[#allocation11 + $0x890] sm:$0xff] }
 0x2ff   :  { %4867 = vmatpush1.bf16.msra.mxu1 %v8737_v43  ;;  %4827 = vmatprep.subr.bf16.mxu0 %v8618_v34  ;;  %v1797_v43 = vld [vmem:[#allocation11 + $0xc50] sm:$0xff] }
 0x300   :  { %4868 = vmatprep.subr.bf16.mxu1 %v8746_v35  ;;  %v1801_v34 = vld [vmem:[#allocation11 + $0xc70] sm:$0xff]  ;;  %v8905_v35 = vcombine.low %v1789_v22, %v1793_v28 }
 0x301   :  { %v1681_v50 = vld [vmem:[#allocation11 + $0x8b0] sm:$0xff]  ;;  %v8914_v54 = vcombine.high %v1797_v43, %v1801_v34 }
 0x302   :  { %4828 = vmatpush1.bf16.msra.mxu0 %v8617_v51  ;;  %v1805_v51 = vld [vmem:[#allocation11 + $0xc90] sm:$0xff]  ;;  %v8794_v36 = vcombine.high %v1677_v48, %v1681_v50 }
 0x303   :  { %4869 = vmatpush1.bf16.msra.mxu1 %v8745_v53  ;;  %4829 = vmatprep.subr.bf16.mxu0 %v8626_v55  ;;  %v1809_v53 = vld [vmem:[#allocation11 + $0xcb0] sm:$0xff]  ;;  %v8785_v55 = vcombine.low %v1669_v20, %v1673_v21 }
 0x304   :  { %4870 = vmatprep.subr.bf16.mxu1 %v8754_v10  ;;  %v8913_v10 = vcombine.low %v1797_v43, %v1801_v34  ;;  %v8922_v17 = vcombine.high %v1805_v51, %v1809_v53  ;;  %v1685_v25 = vld [vmem:[#allocation11 + $0x8d0] sm:$0xff] }
 0x305   :  { %v1689_v31 = vld [vmem:[#allocation11 + $0x8f0] sm:$0xff] }
 0x306   :  { %4830 = vmatpush1.bf16.msra.mxu0 %v8625_v52  ;;  %v1813_v52 = vld [vmem:[#allocation11 + $0xcd0] sm:$0xff]  ;;  %v8802_v19 = vcombine.high %v1685_v25, %v1689_v31 }
 0x307   :  { %4871 = vmatpush1.bf16.msra.mxu1 %v8753_v56  ;;  %4831 = vmatprep.subr.bf16.mxu0 %v8634_v61  ;;  %v1817_v56 = vld [vmem:[#allocation11 + $0xcf0] sm:$0xff]  ;;  %v8793_v61 = vcombine.low %v1677_v48, %v1681_v50 }
 0x308   :  { %4872 = vmatprep.subr.bf16.mxu1 %v8762_v18  ;;  %v8921_v18 = vcombine.low %v1805_v51, %v1809_v53  ;;  %v8930_v26 = vcombine.high %v1813_v52, %v1817_v56  ;;  %v1693_v63 = vld [vmem:[#allocation11 + $0x910] sm:$0xff] }
 0x309   :  { %v1697_v1 = vld [vmem:[#allocation11 + $0x930] sm:$0xff] }
 0x30a   :  { %4832 = vmatpush1.bf16.msra.mxu0 %v8633_v4  ;;  %v1821_v4 = vld [vmem:[#allocation11 + $0xd10] sm:$0xff]  ;;  %v8810_v13 = vcombine.high %v1693_v63, %v1697_v1 }
 0x30b   :  { %4873 = vmatpush1.bf16.msra.mxu1 %v8761_v5  ;;  %4833 = vmatprep.subr.bf16.mxu0 %v8642_v15  ;;  %v1825_v5 = vld [vmem:[#allocation11 + $0xd30] sm:$0xff]  ;;  %v8801_v15 = vcombine.low %v1685_v25, %v1689_v31 }
 0x30c   :  { %4874 = vmatprep.subr.bf16.mxu1 %v8770_v16  ;;  %v8929_v16 = vcombine.low %v1813_v52, %v1817_v56  ;;  %v8938_v30 = vcombine.high %v1821_v4, %v1825_v5  ;;  %v1701_v22 = vld [vmem:[#allocation11 + $0x950] sm:$0xff] }
 0x30d   :  { %v1705_v28 = vld [vmem:[#allocation11 + $0x970] sm:$0xff] }
 0x30e   :  { %4834 = vmatpush1.bf16.msra.mxu0 %v8641_v33  ;;  %v1829_v33 = vld [vmem:[#allocation11 + $0xd50] sm:$0xff]  ;;  %v8818_v20 = vcombine.high %v1701_v22, %v1705_v28 }
 0x30f   :  { %4875 = vmatpush1.bf16.msra.mxu1 %v8769_v37  ;;  %4885 = vmatprep.subr.bf16.mxu0 %v8778_v38  ;;  %v1833_v37 = vld [vmem:[#allocation11 + $0xd70] sm:$0xff]  ;;  %v8809_v38 = vcombine.low %v1693_v63, %v1697_v1 }
 0x310   :  { %4926 = vmatprep.subr.bf16.mxu1 %v8906_v39  ;;  %v8937_v39 = vcombine.low %v1821_v4, %v1825_v5  ;;  %v8946_v21 = vcombine.high %v1829_v33, %v1833_v37  ;;  %v1713_v43 = vld [vmem:[#allocation11 + $0x9b0] sm:$0xff]  ;;  %v8945_v48 = vcombine.low %v1829_v33, %v1833_v37 }
 0x311   :  { %4836 = vmatmul.mubr.bf16.vlgmr.msra.gmra.mrb[24].mxu0 %v10049_v32  ;;  %v1837_v34 = vld [vmem:[#allocation11 + $0xd90] sm:$0xff] }
 0x312   :  { %4877 = vmatmul.mubr.bf16.vlgmr.msra.gmra.mrb[24].mxu1 %v10051_v27  ;;  %4886 = vmatpush1.bf16.msra.mxu0 %v8777_v42  ;;  %v1709_v42 = vld [vmem:[#allocation11 + $0x990] sm:$0xff] }
 0x313   :  { %4917 = vmatprep.mubr.bf16.mxu0 %v10069_v40  ;;  %4927 = vmatpush1.bf16.msra.mxu1 %v8905_v35  ;;  %v1841_v35 = vld [vmem:[#allocation11 + $0xdb0] sm:$0xff]  ;;  %v8826_v50 = vcombine.high %v1709_v42, %v1713_v43 }
 0x314   :  { %4958 = vmatprep.mubr.bf16.mxu1 %v10073_v46  ;;  %4887 = vmatprep.subr.bf16.mxu0 %v8786_v44  ;;  %v8817_v44 = vcombine.low %v1701_v22, %v1705_v28  ;;  %v8954_v51 = vcombine.high %v1837_v34, %v1841_v35  ;;  %v1717_v53 = vld [vmem:[#allocation11 + $0x9d0] sm:$0xff]  ;;  %v8953_v1 = vcombine.low %v1837_v34, %v1841_v35 }
 0x315   :  { %4928 = vmatprep.subr.bf16.mxu1 %v8914_v54  ;;  %v1845_v25 = vld [vmem:[#allocation11 + $0xdd0] sm:$0xff] }
 0x316   :  { %4888 = vmatpush1.bf16.msra.mxu0 %v8785_v55  ;;  %v1721_v55 = vld [vmem:[#allocation11 + $0x9f0] sm:$0xff] }
 0x317   :  { %4929 = vmatpush1.bf16.msra.mxu1 %v8913_v10  ;;  %4889 = vmatprep.subr.bf16.mxu0 %v8794_v36  ;;  %v1849_v31 = vld [vmem:[#allocation11 + $0xdf0] sm:$0xff]  ;;  %v8834_v4 = vcombine.high %v1717_v53, %v1721_v55  ;;  %v8833_v22 = vcombine.low %v1717_v53, %v1721_v55 }
 0x318   :  { %4930 = vmatprep.subr.bf16.mxu1 %v8922_v17  ;;  %v8961_v28 = vcombine.low %v1845_v25, %v1849_v31 }
 0x31a   :  { %4890 = vmatpush1.bf16.msra.mxu0 %v8793_v61 }
 0x31b   :  { %4931 = vmatpush1.bf16.msra.mxu1 %v8921_v18  ;;  %4891 = vmatprep.subr.bf16.mxu0 %v8802_v19  ;;  %v8825_v18 = vcombine.low %v1709_v42, %v1713_v43 }
 0x31c   :  { %4932 = vmatprep.subr.bf16.mxu1 %v8930_v26 }
 0x31e   :  { %4892 = vmatpush1.bf16.msra.mxu0 %v8801_v15  ;;  %v8962_v15 = vcombine.high %v1845_v25, %v1849_v31  ;;  %v1877_v25 = vld [vmem:[#allocation11 + $0xed0] sm:$0xff] }
 0x31f   :  { %4933 = vmatpush1.bf16.msra.mxu1 %v8929_v16  ;;  %4893 = vmatprep.subr.bf16.mxu0 %v8810_v13  ;;  %v1725_v16 = vld [vmem:[#allocation11 + $0xa10] sm:$0xff] }
 0x320   :  { %4934 = vmatprep.subr.bf16.mxu1 %v8938_v30  ;;  %v1729_v13 = vld [vmem:[#allocation11 + $0xa30] sm:$0xff] }
 0x321   :  { %v1857_v30 = vld [vmem:[#allocation11 + $0xe30] sm:$0xff]  ;;  %v8842_v33 = vcombine.high %v1725_v16, %v1729_v13  ;;  %v8841_v42 = vcombine.low %v1725_v16, %v1729_v13 }
 0x322   :  { %4894 = vmatpush1.bf16.msra.mxu0 %v8809_v38  ;;  %v1733_v38 = vld [vmem:[#allocation11 + $0xa50] sm:$0xff] }
 0x323   :  { %4935 = vmatpush1.bf16.msra.mxu1 %v8937_v39  ;;  %4895 = vmatprep.subr.bf16.mxu0 %v8818_v20  ;;  %v1737_v39 = vld [vmem:[#allocation11 + $0xa70] sm:$0xff] }
 0x324   :  { %v4591_v54 = vpop.f32.mrb[12].mxu0  ;;  %4936 = vmatprep.subr.bf16.mxu1 %v8946_v21  ;;  %v4632_v36 = vpop.f32.mrb[12].mxu1  ;;  %v1861_v20 = vld [vmem:[#allocation11 + $0xe50] sm:$0xff]  ;;  %v8850_v34 = vcombine.high %v1733_v38, %v1737_v39 }
 0x325   :  { %v4592_v10 = vadd.f32 %v4591_v54, %v10111_v14  ;;  %v4593_v17 = vpop.f32.mrb[13].mxu0  ;;  %v4634_v56 = vpop.f32.mrb[13].mxu1  ;;  %v1865_v21 = vld [vmem:[#allocation11 + $0xe70] sm:$0xff] }
 0x326   :  { %v4594_v52 = vadd.f32 %v4593_v17, %v10113_v29  ;;  %v4595_v61 = vpop.f32.mrb[14].mxu0  ;;  %4896 = vmatpush1.bf16.msra.mxu0 %v8817_v44  ;;  %v4636_v26 = vpop.f32.mrb[14].mxu1  ;;  %v1853_v29 = vld [vmem:[#allocation11 + $0xe10] sm:$0xff]  ;;  %v8978_v35 = vcombine.high %v1861_v20, %v1865_v21  ;;  %v8977_v53 = vcombine.low %v1861_v20, %v1865_v21 }
 0x327   :  { %v10121_v19 = vadd.f32 %v4632_v36, %v4592_v10  ;;  %4937 = vmatpush1.bf16.msra.mxu1 %v8945_v48  ;;  %v4596_v63 = vpop.f32.mrb[15].mxu0  ;;  %4897 = vmatprep.subr.bf16.mxu0 %v8826_v50  ;;  %v4637_v14 = vpop.f32.mrb[15].mxu1  ;;  %v8970_v37 = vcombine.high %v1853_v29, %v1857_v30  ;;  %v8969_v43 = vcombine.low %v1853_v29, %v1857_v30  ;;  %v1741_v44 = vld [vmem:[#allocation11 + $0xa90] sm:$0xff] }
 0x328   :  { %v10123_v5 = vadd.f32 %v4634_v56, %v4594_v52  ;;  %4938 = vmatprep.subr.bf16.mxu1 %v8954_v51  ;;  %v1745_v48 = vld [vmem:[#allocation11 + $0xab0] sm:$0xff]  ;;  %v8849_v51 = vcombine.low %v1733_v38, %v1737_v39 }
 0x329   :  { %v1869_v50 = vld [vmem:[#allocation11 + $0xe90] sm:$0xff]  ;;  %v8858_v55 = vcombine.high %v1741_v44, %v1745_v48  ;;  %v8857_v52 = vcombine.low %v1741_v44, %v1745_v48 }
 0x32a   :  { %4898 = vmatpush1.bf16.msra.mxu0 %v8825_v18  ;;  %v1873_v54 = vld [vmem:[#allocation11 + $0xeb0] sm:$0xff] }
 0x32b   :  { %4939 = vmatpush1.bf16.msra.mxu1 %v8953_v1  ;;  %4899 = vmatprep.subr.bf16.mxu0 %v8834_v4  ;;  %v8986_v10 = vcombine.high %v1869_v50, %v1873_v54  ;;  %v1749_v36 = vld [vmem:[#allocation11 + $0xad0] sm:$0xff]  ;;  %v8985_v56 = vcombine.low %v1869_v50, %v1873_v54 }
 0x32c   :  { %4940 = vmatprep.subr.bf16.mxu1 %v8962_v15  ;;  %v1753_v17 = vld [vmem:[#allocation11 + $0xaf0] sm:$0xff] }
 0x32d   :  { %v1881_v31 = vld [vmem:[#allocation11 + $0xef0] sm:$0xff]  ;;  %v8866_v61 = vcombine.high %v1749_v36, %v1753_v17  ;;  %v8865_v14 = vcombine.low %v1749_v36, %v1753_v17 }
 0x32e   :  { %4900 = vmatpush1.bf16.msra.mxu0 %v8833_v22  ;;  %v8994_v18 = vcombine.high %v1877_v25, %v1881_v31  ;;  %v1757_v26 = vld [vmem:[#allocation11 + $0xb10] sm:$0xff]  ;;  %v8993_v15 = vcombine.low %v1877_v25, %v1881_v31  ;;  %v1406_v25 = vld [vmem:[#allocation11 + $0x18] sm:$0xff] }
 0x32f   :  { %4941 = vmatpush1.bf16.msra.mxu1 %v8961_v28  ;;  %4901 = vmatprep.subr.bf16.mxu0 %v8842_v33  ;;  %v1761_v63 = vld [vmem:[#allocation11 + $0xb30] sm:$0xff]  ;;  %v1410_v31 = vld [vmem:[#allocation11 + $0x38] sm:$0xff] }
 0x330   :  { %4942 = vmatprep.subr.bf16.mxu1 %v8970_v37  ;;  %v1885_v1 = vld [vmem:[#allocation11 + $0xf10] sm:$0xff]  ;;  %v8874_v16 = vcombine.high %v1757_v26, %v1761_v63  ;;  %v8873_v33 = vcombine.low %v1757_v26, %v1761_v63  ;;  %v8524_v26 = vcombine.high %v1406_v25, %v1410_v31 }
 0x331   :  { %v1889_v4 = vld [vmem:[#allocation11 + $0xf30] sm:$0xff] }
 0x332   :  { %4902 = vmatpush1.bf16.msra.mxu0 %v8841_v42  ;;  %v9002_v13 = vcombine.high %v1885_v1, %v1889_v4  ;;  %v1765_v29 = vld [vmem:[#allocation11 + $0xb50] sm:$0xff]  ;;  %v9001_v37 = vcombine.low %v1885_v1, %v1889_v4  ;;  %v1414_v1 = vld [vmem:[#allocation11 + $0x58] sm:$0xff] }
 0x333   :  { %4943 = vmatpush1.bf16.msra.mxu1 %v8969_v43  ;;  %4903 = vmatprep.subr.bf16.mxu0 %v8850_v34  ;;  %v1769_v30 = vld [vmem:[#allocation11 + $0xb70] sm:$0xff]  ;;  %v1418_v4 = vld [vmem:[#allocation11 + $0x78] sm:$0xff] }
 0x334   :  { %4944 = vmatprep.subr.bf16.mxu1 %v8978_v35  ;;  %v1893_v22 = vld [vmem:[#allocation11 + $0xf50] sm:$0xff]  ;;  %v8882_v38 = vcombine.high %v1765_v29, %v1769_v30  ;;  %v8881_v34 = vcombine.low %v1765_v29, %v1769_v30  ;;  %v8532_v29 = vcombine.high %v1414_v1, %v1418_v4  ;;  %v1422_v30 = vld [vmem:[#allocation11 + $0x98] sm:$0xff] }
 0x335   :  { %v1897_v28 = vld [vmem:[#allocation11 + $0xf70] sm:$0xff] }
 0x336   :  { %4904 = vmatpush1.bf16.msra.mxu0 %v8849_v51  ;;  %v9010_v39 = vcombine.high %v1893_v22, %v1897_v28  ;;  %v1773_v20 = vld [vmem:[#allocation11 + $0xb90] sm:$0xff]  ;;  %v9009_v35 = vcombine.low %v1893_v22, %v1897_v28  ;;  %v1426_v22 = vld [vmem:[#allocation11 + $0xb8] sm:$0xff] }
 0x337   :  { %4945 = vmatpush1.bf16.msra.mxu1 %v8977_v53  ;;  %4905 = vmatprep.subr.bf16.mxu0 %v8858_v55  ;;  %v1777_v21 = vld [vmem:[#allocation11 + $0xbb0] sm:$0xff] }
 0x338   :  { %4946 = vmatprep.subr.bf16.mxu1 %v8986_v10  ;;  %v1901_v42 = vld [vmem:[#allocation11 + $0xf90] sm:$0xff]  ;;  %v8890_v44 = vcombine.high %v1773_v20, %v1777_v21  ;;  %v8889_v55 = vcombine.low %v1773_v20, %v1777_v21  ;;  %v8540_v20 = vcombine.high %v1422_v30, %v1426_v22 }
 0x339   :  { %v1905_v43 = vld [vmem:[#allocation11 + $0xfb0] sm:$0xff] }
 0x33a   :  { %4906 = vmatpush1.bf16.msra.mxu0 %v8857_v52  ;;  %v9018_v48 = vcombine.high %v1901_v42, %v1905_v43  ;;  %v1781_v50 = vld [vmem:[#allocation11 + $0xbd0] sm:$0xff]  ;;  %v9017_v10 = vcombine.low %v1901_v42, %v1905_v43  ;;  %v1534_v52 = vld [vmem:[#allocation11 + $0x418] sm:$0xff] }
 0x33b   :  { %4947 = vmatpush1.bf16.msra.mxu1 %v8985_v56  ;;  %4907 = vmatprep.subr.bf16.mxu0 %v8866_v61  ;;  %v1785_v54 = vld [vmem:[#allocation11 + $0xbf0] sm:$0xff]  ;;  %v1538_v56 = vld [vmem:[#allocation11 + $0x438] sm:$0xff] }
 0x33c   :  { %4948 = vmatprep.subr.bf16.mxu1 %v8994_v18  ;;  %v1909_v51 = vld [vmem:[#allocation11 + $0xfd0] sm:$0xff]  ;;  %v8898_v36 = vcombine.high %v1781_v50, %v1785_v54  ;;  %v8897_v61 = vcombine.low %v1781_v50, %v1785_v54  ;;  %v8652_v63 = vcombine.high %v1534_v52, %v1538_v56  ;;  %v1430_v42 = vld [vmem:[#allocation11 + $0xd8] sm:$0xff] }
 0x33d   :  { %v1913_v53 = vld [vmem:[#allocation11 + $0xff0] sm:$0xff]  ;;  %v1434_v43 = vld [vmem:[#allocation11 + $0xf8] sm:$0xff] }
 0x33e   :  { %4908 = vmatpush1.bf16.msra.mxu0 %v8865_v14  ;;  %v9026_v17 = vcombine.high %v1909_v51, %v1913_v53  ;;  %v9025_v18 = vcombine.low %v1909_v51, %v1913_v53  ;;  %v8523_v14 = vcombine.low %v1406_v25, %v1410_v31  ;;  %v8548_v50 = vcombine.high %v1430_v42, %v1434_v43  ;;  %v1438_v54 = vld [vmem:[#allocation11 + $0x118] sm:$0xff] }
 0x33f   :  { %4949 = vmatpush1.bf16.msra.mxu1 %v8993_v15  ;;  %4909 = vmatprep.subr.bf16.mxu0 %v8874_v16  ;;  %v1542_v15 = vld [vmem:[#allocation11 + $0x458] sm:$0xff] }
 0x340   :  { %4950 = vmatprep.subr.bf16.mxu1 %v9002_v13  ;;  %v1546_v16 = vld [vmem:[#allocation11 + $0x478] sm:$0xff]  ;;  %v8651_v13 = vcombine.low %v1534_v52, %v1538_v56 }
 0x341   :  { %v8660_v28 = vcombine.high %v1542_v15, %v1546_v16  ;;  %v1442_v51 = vld [vmem:[#allocation11 + $0x138] sm:$0xff] }
 0x342   :  { %4910 = vmatpush1.bf16.msra.mxu0 %v8873_v33  ;;  %v1550_v33 = vld [vmem:[#allocation11 + $0x498] sm:$0xff] }
 0x343   :  { %4951 = vmatpush1.bf16.msra.mxu1 %v9001_v37  ;;  %4911 = vmatprep.subr.bf16.mxu0 %v8882_v38  ;;  %v1554_v37 = vld [vmem:[#allocation11 + $0x4b8] sm:$0xff]  ;;  %v8531_v38 = vcombine.low %v1414_v1, %v1418_v4 }
 0x344   :  { %4952 = vmatprep.subr.bf16.mxu1 %v9010_v39  ;;  %v8659_v39 = vcombine.low %v1542_v15, %v1546_v16  ;;  %v8668_v21 = vcombine.high %v1550_v33, %v1554_v37  ;;  %v1566_v53 = vld [vmem:[#allocation11 + $0x518] sm:$0xff] }
 0x345   :  { %v1446_v25 = vld [vmem:[#allocation11 + $0x158] sm:$0xff] }
 0x346   :  { %4912 = vmatpush1.bf16.msra.mxu0 %v8881_v34  ;;  %v1558_v34 = vld [vmem:[#allocation11 + $0x4d8] sm:$0xff] }
 0x347   :  { %4953 = vmatpush1.bf16.msra.mxu1 %v9009_v35  ;;  %4913 = vmatprep.subr.bf16.mxu0 %v8890_v44  ;;  %v1562_v35 = vld [vmem:[#allocation11 + $0x4f8] sm:$0xff]  ;;  %v8539_v44 = vcombine.low %v1422_v30, %v1426_v22 }
 0x348   :  { %4954 = vmatprep.subr.bf16.mxu1 %v9018_v48  ;;  %v8667_v48 = vcombine.low %v1550_v33, %v1554_v37  ;;  %v1450_v31 = vld [vmem:[#allocation11 + $0x178] sm:$0xff] }
 0x349   :  { %v1574_v52 = vld [vmem:[#allocation11 + $0x558] sm:$0xff]  ;;  %v8563_v16 = vcombine.low %v1446_v25, %v1450_v31 }
 0x34a   :  { %4914 = vmatpush1.bf16.msra.mxu0 %v8889_v55  ;;  %v1570_v55 = vld [vmem:[#allocation11 + $0x538] sm:$0xff] }
 0x34b   :  { %4955 = vmatpush1.bf16.msra.mxu1 %v9017_v10  ;;  %4915 = vmatprep.subr.bf16.mxu0 %v8898_v36  ;;  %v8675_v10 = vcombine.low %v1558_v34, %v1562_v35  ;;  %v8556_v36 = vcombine.high %v1438_v54, %v1442_v51  ;;  %v1578_v56 = vld [vmem:[#allocation11 + $0x578] sm:$0xff] }
 0x34c   :  { %4956 = vmatprep.subr.bf16.mxu1 %v9026_v17  ;;  %v8684_v17 = vcombine.high %v1566_v53, %v1570_v55  ;;  %v1454_v1 = vld [vmem:[#allocation11 + $0x198] sm:$0xff] }
 0x34d   :  { %v1458_v4 = vld [vmem:[#allocation11 + $0x1b8] sm:$0xff] }
 0x34e   :  { %4916 = vmatpush1.bf16.msra.mxu0 %v8897_v61  ;;  %v8555_v61 = vcombine.low %v1438_v54, %v1442_v51  ;;  %v1586_v15 = vld [vmem:[#allocation11 + $0x5b8] sm:$0xff] }
 0x34f   :  { %4957 = vmatpush1.bf16.msra.mxu1 %v9025_v18  ;;  %4967 = vmatprep.subr.bf16.mxu0 %v8524_v26  ;;  %v8683_v18 = vcombine.low %v1566_v53, %v1570_v55  ;;  %v8564_v26 = vcombine.high %v1446_v25, %v1450_v31  ;;  %v1466_v33 = vld [vmem:[#allocation11 + $0x1f8] sm:$0xff] }
 0x350   :  { %5008 = vmatprep.subr.bf16.mxu1 %v8652_v63  ;;  %v8692_v63 = vcombine.high %v1574_v52, %v1578_v56  ;;  %v1470_v53 = vld [vmem:[#allocation11 + $0x218] sm:$0xff] }
 0x351   :  { %4918 = vmatmul.mubr.bf16.vlgmr.msra.gmra.mrb[28].mxu0 %v10093_v47  ;;  %v1474_v55 = vld [vmem:[#allocation11 + $0x238] sm:$0xff] }
 0x352   :  { %4959 = vmatmul.mubr.bf16.vlgmr.msra.gmra.mrb[28].mxu1 %v10097_v49  ;;  %4968 = vmatpush1.bf16.msra.mxu0 %v8523_v14  ;;  %v1582_v14 = vld [vmem:[#allocation11 + $0x598] sm:$0xff]  ;;  %v8588_v25 = vcombine.high %v1470_v53, %v1474_v55 }
 0x353   :  { %4999 = vmatprep.mubr.bf16.mxu0 %v10043_v3  ;;  %5009 = vmatpush1.bf16.msra.mxu1 %v8651_v13  ;;  %v8676_v3 = vcombine.high %v1558_v34, %v1562_v35  ;;  %v8691_v13 = vcombine.low %v1574_v52, %v1578_v56  ;;  %v8700_v22 = vcombine.high %v1582_v14, %v1586_v15  ;;  %v1478_v52 = vld [vmem:[#allocation11 + $0x258] sm:$0xff] }
 0x354   :  { %5040 = vmatprep.mubr.bf16.mxu1 %v10047_v12  ;;  %4969 = vmatprep.subr.bf16.mxu0 %v8532_v29  ;;  %v8547_v12 = vcombine.low %v1430_v42, %v1434_v43  ;;  %v8572_v29 = vcombine.high %v1454_v1, %v1458_v4  ;;  %v8571_v34 = vcombine.low %v1454_v1, %v1458_v4  ;;  %v1482_v56 = vld [vmem:[#allocation11 + $0x278] sm:$0xff] }
 0x355   :  { %5010 = vmatprep.subr.bf16.mxu1 %v8660_v28  ;;  %v1462_v28 = vld [vmem:[#allocation11 + $0x1d8] sm:$0xff]  ;;  %v8596_v1 = vcombine.high %v1478_v52, %v1482_v56 }
 0x356   :  { %4970 = vmatpush1.bf16.msra.mxu0 %v8531_v38 }
 0x357   :  { %5011 = vmatpush1.bf16.msra.mxu1 %v8659_v39  ;;  %4971 = vmatprep.subr.bf16.mxu0 %v8540_v20  ;;  %v1590_v39 = vld [vmem:[#allocation11 + $0x5d8] sm:$0xff] }
 0x358   :  { %5012 = vmatprep.subr.bf16.mxu1 %v8668_v21  ;;  %v1594_v20 = vld [vmem:[#allocation11 + $0x5f8] sm:$0xff] }
 0x359   :  { %v8708_v51 = vcombine.high %v1590_v39, %v1594_v20 }
 0x35a   :  { %4972 = vmatpush1.bf16.msra.mxu0 %v8539_v44 }
 0x35b   :  { %5013 = vmatpush1.bf16.msra.mxu1 %v8667_v48  ;;  %4973 = vmatprep.subr.bf16.mxu0 %v8548_v50  ;;  %v8699_v50 = vcombine.low %v1582_v14, %v1586_v15  ;;  %v1486_v14 = vld [vmem:[#allocation11 + $0x298] sm:$0xff] }
 0x35c   :  { %5014 = vmatprep.subr.bf16.mxu1 %v8676_v3  ;;  %v8580_v3 = vcombine.high %v1462_v28, %v1466_v33  ;;  %v1490_v15 = vld [vmem:[#allocation11 + $0x2b8] sm:$0xff] }
 0x35e   :  { %4974 = vmatpush1.bf16.msra.mxu0 %v8547_v12  ;;  %v1598_v12 = vld [vmem:[#allocation11 + $0x618] sm:$0xff] }
 0x35f   :  { %5015 = vmatpush1.bf16.msra.mxu1 %v8675_v10  ;;  %4975 = vmatprep.subr.bf16.mxu0 %v8556_v36  ;;  %v1602_v10 = vld [vmem:[#allocation11 + $0x638] sm:$0xff]  ;;  %v8579_v36 = vcombine.low %v1462_v28, %v1466_v33 }
 0x360   :  { %5016 = vmatprep.subr.bf16.mxu1 %v8684_v17  ;;  %v8707_v17 = vcombine.low %v1590_v39, %v1594_v20  ;;  %v8716_v31 = vcombine.high %v1598_v12, %v1602_v10  ;;  %v1494_v33 = vld [vmem:[#allocation11 + $0x2d8] sm:$0xff]  ;;  %v8603_v20 = vcombine.low %v1486_v14, %v1490_v15 }
 0x361   :  { %v1626_v39 = vld [vmem:[#allocation11 + $0x6f8] sm:$0xff] }
 0x362   :  { %4976 = vmatpush1.bf16.msra.mxu0 %v8555_v61  ;;  %v1606_v61 = vld [vmem:[#allocation11 + $0x658] sm:$0xff] }
 0x363   :  { %5017 = vmatpush1.bf16.msra.mxu1 %v8683_v18  ;;  %4977 = vmatprep.subr.bf16.mxu0 %v8564_v26  ;;  %v1610_v18 = vld [vmem:[#allocation11 + $0x678] sm:$0xff]  ;;  %v8587_v26 = vcombine.low %v1470_v53, %v1474_v55 }
 0x364   :  { %v4673_v30 = vpop.f32.mrb[16].mxu0  ;;  %5018 = vmatprep.subr.bf16.mxu1 %v8692_v63  ;;  %v8715_v63 = vcombine.low %v1598_v12, %v1602_v10  ;;  %v8724_v4 = vcombine.high %v1606_v61, %v1610_v18  ;;  %v1510_v12 = vld [vmem:[#allocation11 + $0x358] sm:$0xff] }
 0x365   :  { %v4714_v37 = vpop.f32.mrb[16].mxu1  ;;  %v4675_v38 = vpop.f32.mrb[17].mxu0  ;;  %v1514_v10 = vld [vmem:[#allocation11 + $0x378] sm:$0xff] }
 0x366   :  { %v10129_v21 = vadd.f32 %v4714_v37, %v4673_v30  ;;  %v4716_v42 = vpop.f32.mrb[17].mxu1  ;;  %v4677_v43 = vpop.f32.mrb[18].mxu0  ;;  %4978 = vmatpush1.bf16.msra.mxu0 %v8563_v16  ;;  %v1614_v16 = vld [vmem:[#allocation11 + $0x698] sm:$0xff]  ;;  %v8723_v30 = vcombine.low %v1606_v61, %v1610_v18 }
 0x367   :  { %v10131_v35 = vadd.f32 %v4716_v42, %v4675_v38  ;;  %v4718_v44 = vpop.f32.mrb[18].mxu1  ;;  %5019 = vmatpush1.bf16.msra.mxu1 %v8691_v13  ;;  %v4678_v48 = vpop.f32.mrb[19].mxu0  ;;  %4979 = vmatprep.subr.bf16.mxu0 %v8572_v29  ;;  %v1618_v13 = vld [vmem:[#allocation11 + $0x6b8] sm:$0xff]  ;;  %v8595_v29 = vcombine.low %v1478_v52, %v1482_v56  ;;  %v8628_v52 = vcombine.high %v1510_v12, %v1514_v10 }
 0x368   :  { %v4719_v54 = vpop.f32.mrb[19].mxu1  ;;  %5020 = vmatprep.subr.bf16.mxu1 %v8700_v22  ;;  %v8604_v22 = vcombine.high %v1486_v14, %v1490_v15  ;;  %v8732_v28 = vcombine.high %v1614_v16, %v1618_v13  ;;  %v1498_v37 = vld [vmem:[#allocation11 + $0x2f8] sm:$0xff]  ;;  %v8731_v42 = vcombine.low %v1614_v16, %v1618_v13 }
 0x369   :  { %v1622_v38 = vld [vmem:[#allocation11 + $0x6d8] sm:$0xff]  ;;  %v8612_v43 = vcombine.high %v1494_v33, %v1498_v37  ;;  %v8611_v54 = vcombine.low %v1494_v33, %v1498_v37 }
 0x36a   :  { %4980 = vmatpush1.bf16.msra.mxu0 %v8571_v34  ;;  %v8740_v34 = vcombine.high %v1622_v38, %v1626_v39  ;;  %v1502_v44 = vld [vmem:[#allocation11 + $0x318] sm:$0xff] }
 0x36b   :  { %5021 = vmatpush1.bf16.msra.mxu1 %v8699_v50  ;;  %4981 = vmatprep.subr.bf16.mxu0 %v8580_v3  ;;  %v1506_v48 = vld [vmem:[#allocation11 + $0x338] sm:$0xff] }
 0x36c   :  { %5022 = vmatprep.subr.bf16.mxu1 %v8708_v51  ;;  %v1630_v50 = vld [vmem:[#allocation11 + $0x718] sm:$0xff]  ;;  %v8739_v51 = vcombine.low %v1622_v38, %v1626_v39  ;;  %v8620_v53 = vcombine.high %v1502_v44, %v1506_v48 }
 0x36d   :  { %v1634_v3 = vld [vmem:[#allocation11 + $0x738] sm:$0xff] }
 0x36e   :  { %4982 = vmatpush1.bf16.msra.mxu0 %v8579_v36  ;;  %v8748_v55 = vcombine.high %v1630_v50, %v1634_v3  ;;  %v1638_v36 = vld [vmem:[#allocation11 + $0x758] sm:$0xff] }
 0x36f   :  { %5023 = vmatpush1.bf16.msra.mxu1 %v8707_v17  ;;  %4983 = vmatprep.subr.bf16.mxu0 %v8588_v25  ;;  %v1642_v17 = vld [vmem:[#allocation11 + $0x778] sm:$0xff]  ;;  %v8619_v25 = vcombine.low %v1502_v44, %v1506_v48 }
 0x370   :  { %5024 = vmatprep.subr.bf16.mxu1 %v8716_v31  ;;  %v8747_v31 = vcombine.low %v1630_v50, %v1634_v3  ;;  %v8756_v56 = vcombine.high %v1638_v36, %v1642_v17  ;;  %v1518_v61 = vld [vmem:[#allocation11 + $0x398] sm:$0xff] }
 0x371   :  { %v1522_v18 = vld [vmem:[#allocation11 + $0x3b8] sm:$0xff] }
 0x372   :  { %4984 = vmatpush1.bf16.msra.mxu0 %v8587_v26  ;;  %v1646_v26 = vld [vmem:[#allocation11 + $0x798] sm:$0xff]  ;;  %v8636_v14 = vcombine.high %v1518_v61, %v1522_v18 }
 0x373   :  { %5025 = vmatpush1.bf16.msra.mxu1 %v8715_v63  ;;  %4985 = vmatprep.subr.bf16.mxu0 %v8596_v1  ;;  %v1650_v63 = vld [vmem:[#allocation11 + $0x7b8] sm:$0xff]  ;;  %v8627_v1 = vcombine.low %v1510_v12, %v1514_v10 }
 0x374   :  { %5026 = vmatprep.subr.bf16.mxu1 %v8724_v4  ;;  %v8755_v4 = vcombine.low %v1638_v36, %v1642_v17  ;;  %v8764_v15 = vcombine.high %v1646_v26, %v1650_v63  ;;  %v1526_v16 = vld [vmem:[#allocation11 + $0x3d8] sm:$0xff] }
 0x375   :  { %v1530_v13 = vld [vmem:[#allocation11 + $0x3f8] sm:$0xff] }
 0x376   :  { %4986 = vmatpush1.bf16.msra.mxu0 %v8595_v29  ;;  %v1654_v29 = vld [vmem:[#allocation11 + $0x7d8] sm:$0xff]  ;;  %v8644_v33 = vcombine.high %v1526_v16, %v1530_v13 }
 0x377   :  { %5027 = vmatpush1.bf16.msra.mxu1 %v8723_v30  ;;  %4987 = vmatprep.subr.bf16.mxu0 %v8604_v22  ;;  %v1658_v30 = vld [vmem:[#allocation11 + $0x7f8] sm:$0xff]  ;;  %v8635_v22 = vcombine.low %v1518_v61, %v1522_v18 }
 0x378   :  { %5028 = vmatprep.subr.bf16.mxu1 %v8732_v28  ;;  %v8763_v28 = vcombine.low %v1646_v26, %v1650_v63  ;;  %v8772_v37 = vcombine.high %v1654_v29, %v1658_v30  ;;  %v1662_v38 = vld [vmem:[#allocation11 + $0x818] sm:$0xff] }
 0x379   :  { %v1666_v39 = vld [vmem:[#allocation11 + $0x838] sm:$0xff] }
 0x37a   :  { %4988 = vmatpush1.bf16.msra.mxu0 %v8603_v20  ;;  %v1790_v20 = vld [vmem:[#allocation11 + $0xc18] sm:$0xff]  ;;  %v8780_v44 = vcombine.high %v1662_v38, %v1666_v39 }
 0x37b   :  { %5029 = vmatpush1.bf16.msra.mxu1 %v8731_v42  ;;  %4989 = vmatprep.subr.bf16.mxu0 %v8612_v43  ;;  %v1794_v42 = vld [vmem:[#allocation11 + $0xc38] sm:$0xff]  ;;  %v8643_v43 = vcombine.low %v1526_v16, %v1530_v13 }
 0x37c   :  { %5030 = vmatprep.subr.bf16.mxu1 %v8740_v34  ;;  %v8771_v34 = vcombine.low %v1654_v29, %v1658_v30  ;;  %v8908_v48 = vcombine.high %v1790_v20, %v1794_v42  ;;  %v1670_v50 = vld [vmem:[#allocation11 + $0x858] sm:$0xff] }
 0x37d   :  { %v1674_v3 = vld [vmem:[#allocation11 + $0x878] sm:$0xff] }
 0x37e   :  { %4990 = vmatpush1.bf16.msra.mxu0 %v8611_v54  ;;  %v8779_v54 = vcombine.low %v1662_v38, %v1666_v39  ;;  %v8788_v12 = vcombine.high %v1670_v50, %v1674_v3  ;;  %v1678_v10 = vld [vmem:[#allocation11 + $0x898] sm:$0xff] }
 0x37f   :  { %5031 = vmatpush1.bf16.msra.mxu1 %v8739_v51  ;;  %4991 = vmatprep.subr.bf16.mxu0 %v8620_v53  ;;  %v1798_v51 = vld [vmem:[#allocation11 + $0xc58] sm:$0xff] }
 0x380   :  { %5032 = vmatprep.subr.bf16.mxu1 %v8748_v55  ;;  %v1802_v53 = vld [vmem:[#allocation11 + $0xc78] sm:$0xff]  ;;  %v8907_v55 = vcombine.low %v1790_v20, %v1794_v42 }
 0x381   :  { %v1682_v36 = vld [vmem:[#allocation11 + $0x8b8] sm:$0xff]  ;;  %v8916_v17 = vcombine.high %v1798_v51, %v1802_v53 }
 0x382   :  { %4992 = vmatpush1.bf16.msra.mxu0 %v8619_v25  ;;  %v1806_v25 = vld [vmem:[#allocation11 + $0xc98] sm:$0xff]  ;;  %v8796_v61 = vcombine.high %v1678_v10, %v1682_v36 }
 0x383   :  { %5033 = vmatpush1.bf16.msra.mxu1 %v8747_v31  ;;  %4993 = vmatprep.subr.bf16.mxu0 %v8628_v52  ;;  %v1810_v31 = vld [vmem:[#allocation11 + $0xcb8] sm:$0xff]  ;;  %v8787_v52 = vcombine.low %v1670_v50, %v1674_v3 }
 0x384   :  { %5034 = vmatprep.subr.bf16.mxu1 %v8756_v56  ;;  %v8915_v56 = vcombine.low %v1798_v51, %v1802_v53  ;;  %v8924_v18 = vcombine.high %v1806_v25, %v1810_v31  ;;  %v1686_v26 = vld [vmem:[#allocation11 + $0x8d8] sm:$0xff] }
 0x385   :  { %v1690_v63 = vld [vmem:[#allocation11 + $0x8f8] sm:$0xff] }
 0x386   :  { %4994 = vmatpush1.bf16.msra.mxu0 %v8627_v1  ;;  %v1818_v1 = vld [vmem:[#allocation11 + $0xcf8] sm:$0xff] }
 0x387   :  { %5035 = vmatpush1.bf16.msra.mxu1 %v8755_v4  ;;  %4995 = vmatprep.subr.bf16.mxu0 %v8636_v14  ;;  %v8795_v4 = vcombine.low %v1678_v10, %v1682_v36  ;;  %v8804_v14 = vcombine.high %v1686_v26, %v1690_v63  ;;  %v1698_v16 = vld [vmem:[#allocation11 + $0x938] sm:$0xff] }
 0x388   :  { %5036 = vmatprep.subr.bf16.mxu1 %v8764_v15  ;;  %v1694_v15 = vld [vmem:[#allocation11 + $0x918] sm:$0xff] }
 0x389   :  { %v1822_v13 = vld [vmem:[#allocation11 + $0xd18] sm:$0xff]  ;;  %v8811_v20 = vcombine.low %v1694_v15, %v1698_v16 }
 0x38a   :  { %4996 = vmatpush1.bf16.msra.mxu0 %v8635_v22  ;;  %v1826_v29 = vld [vmem:[#allocation11 + $0xd38] sm:$0xff]  ;;  %v8812_v22 = vcombine.high %v1694_v15, %v1698_v16 }
 0x38b   :  { %5037 = vmatpush1.bf16.msra.mxu1 %v8763_v28  ;;  %4997 = vmatprep.subr.bf16.mxu0 %v8644_v33  ;;  %v8940_v28 = vcombine.high %v1822_v13, %v1826_v29  ;;  %v1702_v33 = vld [vmem:[#allocation11 + $0x958] sm:$0xff]  ;;  %v8939_v42 = vcombine.low %v1822_v13, %v1826_v29 }
 0x38c   :  { %5038 = vmatprep.subr.bf16.mxu1 %v8772_v37  ;;  %v1706_v37 = vld [vmem:[#allocation11 + $0x978] sm:$0xff] }
 0x38d   :  { %v1830_v38 = vld [vmem:[#allocation11 + $0xd58] sm:$0xff] }
 0x38e   :  { %4998 = vmatpush1.bf16.msra.mxu0 %v8643_v43  ;;  %v1834_v39 = vld [vmem:[#allocation11 + $0xd78] sm:$0xff]  ;;  %v8820_v43 = vcombine.high %v1702_v33, %v1706_v37 }
 0x38f   :  { %5039 = vmatpush1.bf16.msra.mxu1 %v8771_v34  ;;  %5049 = vmatprep.subr.bf16.mxu0 %v8780_v44  ;;  %v8948_v34 = vcombine.high %v1830_v38, %v1834_v39  ;;  %v1710_v44 = vld [vmem:[#allocation11 + $0x998] sm:$0xff]  ;;  %v8947_v51 = vcombine.low %v1830_v38, %v1834_v39 }
 0x390   :  { %5090 = vmatprep.subr.bf16.mxu1 %v8908_v48  ;;  %v1714_v48 = vld [vmem:[#allocation11 + $0x9b8] sm:$0xff] }
 0x391   :  { %5000 = vmatmul.mubr.bf16.vlgmr.msra.gmra.mrb[32].mxu0 %v10049_v32  ;;  %v1814_v32 = vld [vmem:[#allocation11 + $0xcd8] sm:$0xff]  ;;  %v8828_v53 = vcombine.high %v1710_v44, %v1714_v48 }
 0x392   :  { %5041 = vmatmul.mubr.bf16.vlgmr.msra.gmra.mrb[32].mxu1 %v10051_v27  ;;  %5050 = vmatpush1.bf16.msra.mxu0 %v8779_v54  ;;  %v8923_v27 = vcombine.low %v1806_v25, %v1810_v31  ;;  %v8931_v30 = vcombine.low %v1814_v32, %v1818_v1  ;;  %v1838_v50 = vld [vmem:[#allocation11 + $0xd98] sm:$0xff]  ;;  %v8819_v54 = vcombine.low %v1702_v33, %v1706_v37 }
 0x393   :  { %5081 = vmatprep.mubr.bf16.mxu0 %v10069_v40  ;;  %5091 = vmatpush1.bf16.msra.mxu1 %v8907_v55  ;;  %v8932_v40 = vcombine.high %v1814_v32, %v1818_v1  ;;  %v1842_v3 = vld [vmem:[#allocation11 + $0xdb8] sm:$0xff] }
 0x394   :  { %5122 = vmatprep.mubr.bf16.mxu1 %v10073_v46  ;;  %5051 = vmatprep.subr.bf16.mxu0 %v8788_v12  ;;  %v8803_v46 = vcombine.low %v1686_v26, %v1690_v63  ;;  %v8956_v12 = vcombine.high %v1838_v50, %v1842_v3  ;;  %v1718_v10 = vld [vmem:[#allocation11 + $0x9d8] sm:$0xff]  ;;  %v8827_v63 = vcombine.low %v1710_v44, %v1714_v48 }
 0x395   :  { %5092 = vmatprep.subr.bf16.mxu1 %v8916_v17  ;;  %v1722_v36 = vld [vmem:[#allocation11 + $0x9f8] sm:$0xff] }
 0x396   :  { %5052 = vmatpush1.bf16.msra.mxu0 %v8787_v52  ;;  %v1846_v52 = vld [vmem:[#allocation11 + $0xdd8] sm:$0xff] }
 0x397   :  { %5093 = vmatpush1.bf16.msra.mxu1 %v8915_v56  ;;  %5053 = vmatprep.subr.bf16.mxu0 %v8796_v61  ;;  %v1850_v56 = vld [vmem:[#allocation11 + $0xdf8] sm:$0xff] }
 0x398   :  { %5094 = vmatprep.subr.bf16.mxu1 %v8924_v18  ;;  %v8964_v15 = vcombine.high %v1846_v52, %v1850_v56  ;;  %v1726_v16 = vld [vmem:[#allocation11 + $0xa18] sm:$0xff] }
 0x399   :  { %v1730_v13 = vld [vmem:[#allocation11 + $0xa38] sm:$0xff] }
 0x39a   :  { %5054 = vmatpush1.bf16.msra.mxu0 %v8795_v4  ;;  %v1858_v29 = vld [vmem:[#allocation11 + $0xe38] sm:$0xff] }
 0x39b   :  { %5095 = vmatpush1.bf16.msra.mxu1 %v8923_v27  ;;  %5055 = vmatprep.subr.bf16.mxu0 %v8804_v14  ;;  %v8955_v27 = vcombine.low %v1838_v50, %v1842_v3  ;;  %v8836_v14 = vcombine.high %v1718_v10, %v1722_v36  ;;  %v1734_v33 = vld [vmem:[#allocation11 + $0xa58] sm:$0xff] }
 0x39c   :  { %5096 = vmatprep.subr.bf16.mxu1 %v8932_v40  ;;  %v1738_v37 = vld [vmem:[#allocation11 + $0xa78] sm:$0xff] }
 0x39d   :  { %v1862_v38 = vld [vmem:[#allocation11 + $0xe58] sm:$0xff] }
 0x39e   :  { %5056 = vmatpush1.bf16.msra.mxu0 %v8803_v46  ;;  %v8835_v46 = vcombine.low %v1718_v10, %v1722_v36  ;;  %v1866_v39 = vld [vmem:[#allocation11 + $0xe78] sm:$0xff] }
 0x39f   :  { %5097 = vmatpush1.bf16.msra.mxu1 %v8931_v30  ;;  %5057 = vmatprep.subr.bf16.mxu0 %v8812_v22  ;;  %v8963_v30 = vcombine.low %v1846_v52, %v1850_v56  ;;  %v8844_v22 = vcombine.high %v1726_v16, %v1730_v13  ;;  %v1742_v44 = vld [vmem:[#allocation11 + $0xa98] sm:$0xff] }
 0x3a0   :  { %5098 = vmatprep.subr.bf16.mxu1 %v8940_v28  ;;  %v1746_v48 = vld [vmem:[#allocation11 + $0xab8] sm:$0xff] }
 0x3a1   :  { %v1870_v50 = vld [vmem:[#allocation11 + $0xe98] sm:$0xff] }
 0x3a2   :  { %5058 = vmatpush1.bf16.msra.mxu0 %v8811_v20  ;;  %v8843_v20 = vcombine.low %v1726_v16, %v1730_v13  ;;  %v1874_v3 = vld [vmem:[#allocation11 + $0xeb8] sm:$0xff] }
 0x3a3   :  { %5099 = vmatpush1.bf16.msra.mxu1 %v8939_v42  ;;  %5059 = vmatprep.subr.bf16.mxu0 %v8820_v43  ;;  %v8852_v43 = vcombine.high %v1734_v33, %v1738_v37  ;;  %v1754_v10 = vld [vmem:[#allocation11 + $0xaf8] sm:$0xff] }
 0x3a4   :  { %v4755_v55 = vpop.f32.mrb[20].mxu0  ;;  %5100 = vmatprep.subr.bf16.mxu1 %v8948_v34  ;;  %v8980_v34 = vcombine.high %v1862_v38, %v1866_v39  ;;  %v1878_v36 = vld [vmem:[#allocation11 + $0xed8] sm:$0xff] }
 0x3a5   :  { %v4756_v17 = vadd.f32 %v4755_v55, %v10129_v21  ;;  %v4796_v25 = vpop.f32.mrb[20].mxu1  ;;  %v4757_v31 = vpop.f32.mrb[21].mxu0  ;;  %v8988_v55 = vcombine.high %v1870_v50, %v1874_v3  ;;  %v1894_v16 = vld [vmem:[#allocation11 + $0xf58] sm:$0xff] }
 0x3a6   :  { %v4758_v61 = vadd.f32 %v4757_v31, %v10131_v35  ;;  %v4798_v18 = vpop.f32.mrb[21].mxu1  ;;  %v4759_v26 = vpop.f32.mrb[22].mxu0  ;;  %5060 = vmatpush1.bf16.msra.mxu0 %v8819_v54  ;;  %v1854_v35 = vld [vmem:[#allocation11 + $0xe18] sm:$0xff]  ;;  %v8851_v54 = vcombine.low %v1734_v33, %v1738_v37  ;;  %v8987_v31 = vcombine.low %v1870_v50, %v1874_v3 }
 0x3a7   :  { %v10139_v32 = vadd.f32 %v4796_v25, %v4756_v17  ;;  %v4800_v1 = vpop.f32.mrb[22].mxu1  ;;  %5101 = vmatpush1.bf16.msra.mxu1 %v8947_v51  ;;  %v4760_v4 = vpop.f32.mrb[23].mxu0  ;;  %5061 = vmatprep.subr.bf16.mxu0 %v8828_v53  ;;  %v8972_v28 = vcombine.high %v1854_v35, %v1858_v29  ;;  %v8971_v42 = vcombine.low %v1854_v35, %v1858_v29  ;;  %v1882_v17 = vld [vmem:[#allocation11 + $0xef8] sm:$0xff] }
 0x3a8   :  { %v10141_v40 = vadd.f32 %v4798_v18, %v4758_v61  ;;  %v4801_v21 = vpop.f32.mrb[23].mxu1  ;;  %5102 = vmatprep.subr.bf16.mxu1 %v8956_v12  ;;  %v8979_v51 = vcombine.low %v1862_v38, %v1866_v39  ;;  %v8860_v53 = vcombine.high %v1742_v44, %v1746_v48  ;;  %v1750_v12 = vld [vmem:[#allocation11 + $0xad8] sm:$0xff]  ;;  %v8859_v25 = vcombine.low %v1742_v44, %v1746_v48 }
 0x3a9   :  { %v8868_v52 = vcombine.high %v1750_v12, %v1754_v10  ;;  %v8996_v56 = vcombine.high %v1878_v36, %v1882_v17  ;;  %v1758_v61 = vld [vmem:[#allocation11 + $0xb18] sm:$0xff]  ;;  %v8867_v1 = vcombine.low %v1750_v12, %v1754_v10  ;;  %v8995_v4 = vcombine.low %v1878_v36, %v1882_v17  ;;  %v1011_v12 = vld [vmem:[#allocation10 + $0x400] sm:$0xff] }
 0x3aa   :  { %5062 = vmatpush1.bf16.msra.mxu0 %v8827_v63  ;;  %v1762_v18 = vld [vmem:[#allocation11 + $0xb38] sm:$0xff]  ;;  %v1015_v10 = vld [vmem:[#allocation10 + $0x420] sm:$0xff] }
 0x3ab   :  { %5103 = vmatpush1.bf16.msra.mxu1 %v8955_v27  ;;  %5063 = vmatprep.subr.bf16.mxu0 %v8836_v14  ;;  %v1886_v26 = vld [vmem:[#allocation11 + $0xf18] sm:$0xff]  ;;  %v8876_v27 = vcombine.high %v1758_v61, %v1762_v18  ;;  %v8875_v35 = vcombine.low %v1758_v61, %v1762_v18  ;;  %v1019_v18 = vld [vmem:[#allocation10 + $0x440] sm:$0xff] }
 0x3ac   :  { %5104 = vmatprep.subr.bf16.mxu1 %v8964_v15  ;;  %v1890_v63 = vld [vmem:[#allocation11 + $0xf38] sm:$0xff] }
 0x3ad   :  { %v9004_v14 = vcombine.high %v1886_v26, %v1890_v63  ;;  %v1766_v21 = vld [vmem:[#allocation11 + $0xb58] sm:$0xff]  ;;  %v9003_v29 = vcombine.low %v1886_v26, %v1890_v63  ;;  %v1023_v26 = vld [vmem:[#allocation10 + $0x460] sm:$0xff]  ;;  %v9157_v63 = vcombine.low %v1011_v12, %v1015_v10 }
 0x3ae   :  { %5064 = vmatpush1.bf16.msra.mxu0 %v8835_v46  ;;  %v1770_v15 = vld [vmem:[#allocation11 + $0xb78] sm:$0xff] }
 0x3af   :  { %5105 = vmatpush1.bf16.msra.mxu1 %v8963_v30  ;;  %5065 = vmatprep.subr.bf16.mxu0 %v8844_v22  ;;  %v1898_v13 = vld [vmem:[#allocation11 + $0xf78] sm:$0xff]  ;;  %v8884_v46 = vcombine.high %v1766_v21, %v1770_v15  ;;  %v8883_v38 = vcombine.low %v1766_v21, %v1770_v15  ;;  %v9166_v21 = vcombine.high %v1019_v18, %v1023_v26  ;;  %v1027_v15 = vld [vmem:[#allocation10 + $0x480] sm:$0xff] }
 0x3b0   :  { %5106 = vmatprep.subr.bf16.mxu1 %v8972_v28  ;;  %v9012_v30 = vcombine.high %v1894_v16, %v1898_v13  ;;  %v1774_v22 = vld [vmem:[#allocation11 + $0xb98] sm:$0xff]  ;;  %v9011_v39 = vcombine.low %v1894_v16, %v1898_v13  ;;  %v1031_v16 = vld [vmem:[#allocation10 + $0x4a0] sm:$0xff]  ;;  %v10150_v13 = vpack.c.bf16 %v10045_v11, %v10045_v11 }
 0x3b1   :  { %v1778_v28 = vld [vmem:[#allocation11 + $0xbb8] sm:$0xff] }
 0x3b2   :  { %5066 = vmatpush1.bf16.msra.mxu0 %v8843_v20  ;;  %v1902_v33 = vld [vmem:[#allocation11 + $0xf98] sm:$0xff]  ;;  %v8892_v20 = vcombine.high %v1774_v22, %v1778_v28  ;;  %v8891_v50 = vcombine.low %v1774_v22, %v1778_v28  ;;  %v1035_v22 = vld [vmem:[#allocation10 + $0x4c0] sm:$0xff] }
 0x3b3   :  { %5107 = vmatpush1.bf16.msra.mxu1 %v8971_v42  ;;  %5067 = vmatprep.subr.bf16.mxu0 %v8852_v43  ;;  %v1906_v37 = vld [vmem:[#allocation11 + $0xfb8] sm:$0xff]  ;;  %v1039_v28 = vld [vmem:[#allocation10 + $0x4e0] sm:$0xff] }
 0x3b4   :  { %5108 = vmatprep.subr.bf16.mxu1 %v8980_v34  ;;  %v9020_v42 = vcombine.high %v1902_v33, %v1906_v37  ;;  %v1782_v43 = vld [vmem:[#allocation11 + $0xbd8] sm:$0xff]  ;;  %v9019_v3 = vcombine.low %v1902_v33, %v1906_v37  ;;  %v9182_v37 = vcombine.high %v1035_v22, %v1039_v28 }
 0x3b5   :  { %v1786_v34 = vld [vmem:[#allocation11 + $0xbf8] sm:$0xff] }
 0x3b6   :  { %5068 = vmatpush1.bf16.msra.mxu0 %v8851_v54  ;;  %v1910_v44 = vld [vmem:[#allocation11 + $0xfd8] sm:$0xff]  ;;  %v8900_v54 = vcombine.high %v1782_v43, %v1786_v34  ;;  %v8899_v36 = vcombine.low %v1782_v43, %v1786_v34  ;;  %v9181_v34 = vcombine.low %v1035_v22, %v1039_v28 }
 0x3b7   :  { %5109 = vmatpush1.bf16.msra.mxu1 %v8979_v51  ;;  %5069 = vmatprep.subr.bf16.mxu0 %v8860_v53  ;;  %v1914_v48 = vld [vmem:[#allocation11 + $0xff8] sm:$0xff]  ;;  %v883_v53 = vld [vmem:[#allocation10] sm:$0xff] }
 0x3b8   :  { %5110 = vmatprep.subr.bf16.mxu1 %v8988_v55  ;;  %v9028_v51 = vcombine.high %v1910_v44, %v1914_v48  ;;  %v887_v55 = vld [vmem:[#allocation10 + $0x20] sm:$0xff]  ;;  %v9027_v17 = vcombine.low %v1910_v44, %v1914_v48 }
 0x3b9   :  { %v9029_v61 = vcombine.low %v883_v53, %v887_v55 }
 0x3ba   :  { %5070 = vmatpush1.bf16.msra.mxu0 %v8859_v25  ;;  %v9030_v25 = vcombine.high %v883_v53, %v887_v55 }
 0x3bb   :  { %5111 = vmatpush1.bf16.msra.mxu1 %v8987_v31  ;;  %5071 = vmatprep.subr.bf16.mxu0 %v8868_v52  ;;  %v9158_v31 = vcombine.high %v1011_v12, %v1015_v10  ;;  %v891_v52 = vld [vmem:[#allocation10 + $0x40] sm:$0xff] }
 0x3bc   :  { %5112 = vmatprep.subr.bf16.mxu1 %v8996_v56  ;;  %v895_v56 = vld [vmem:[#allocation10 + $0x60] sm:$0xff] }
 0x3be   :  { %5072 = vmatpush1.bf16.msra.mxu0 %v8867_v1  ;;  %v9038_v1 = vcombine.high %v891_v52, %v895_v56 }
 0x3bf   :  { %5113 = vmatpush1.bf16.msra.mxu1 %v8995_v4  ;;  %5073 = vmatprep.subr.bf16.mxu0 %v8876_v27  ;;  %v899_v4 = vld [vmem:[#allocation10 + $0x80] sm:$0xff] }
 0x3c0   :  { %5114 = vmatprep.subr.bf16.mxu1 %v9004_v14  ;;  %v903_v27 = vld [vmem:[#allocation10 + $0xa0] sm:$0xff]  ;;  %v10145_v14 = vpack.c.bf16 %v10041_v2, %v10041_v2  ;;  %v9174_v2 = vcombine.high %v1027_v15, %v1031_v16 }
 0x3c1   :  { %v9045_v11 = vcombine.low %v899_v4, %v903_v27 }
 0x3c2   :  { %5074 = vmatpush1.bf16.msra.mxu0 %v8875_v35  ;;  %v9037_v35 = vcombine.low %v891_v52, %v895_v56 }
 0x3c3   :  { %5115 = vmatpush1.bf16.msra.mxu1 %v9003_v29  ;;  %5075 = vmatprep.subr.bf16.mxu0 %v8884_v46  ;;  %v9165_v29 = vcombine.low %v1019_v18, %v1023_v26  ;;  %v9046_v46 = vcombine.high %v899_v4, %v903_v27 }
 0x3c4   :  { %5116 = vmatprep.subr.bf16.mxu1 %v9012_v30  ;;  %v911_v30 = vld [vmem:[#allocation10 + $0xe0] sm:$0xff] }
 0x3c6   :  { %5076 = vmatpush1.bf16.msra.mxu0 %v8883_v38  ;;  %v915_v38 = vld [vmem:[#allocation10 + $0x100] sm:$0xff] }
 0x3c7   :  { %5117 = vmatpush1.bf16.msra.mxu1 %v9011_v39  ;;  %5077 = vmatprep.subr.bf16.mxu0 %v8892_v20  ;;  %v919_v39 = vld [vmem:[#allocation10 + $0x120] sm:$0xff] }
 0x3c8   :  { %5118 = vmatprep.subr.bf16.mxu1 %v9020_v42  ;;  %v1043_v20 = vld [vmem:[#allocation10 + $0x500] sm:$0xff]  ;;  %v9062_v44 = vcombine.high %v915_v38, %v919_v39  ;;  %v9061_v53 = vcombine.low %v915_v38, %v919_v39 }
 0x3c9   :  { %v1047_v42 = vld [vmem:[#allocation10 + $0x520] sm:$0xff] }
 0x3ca   :  { %5078 = vmatpush1.bf16.msra.mxu0 %v8891_v50  ;;  %v9190_v48 = vcombine.high %v1043_v20, %v1047_v42  ;;  %v923_v50 = vld [vmem:[#allocation10 + $0x140] sm:$0xff]  ;;  %v9189_v55 = vcombine.low %v1043_v20, %v1047_v42 }
 0x3cb   :  { %5119 = vmatpush1.bf16.msra.mxu1 %v9019_v3  ;;  %5079 = vmatprep.subr.bf16.mxu0 %v8900_v54  ;;  %v927_v3 = vld [vmem:[#allocation10 + $0x160] sm:$0xff] }
 0x3cc   :  { %5120 = vmatprep.subr.bf16.mxu1 %v9028_v51  ;;  %v1051_v54 = vld [vmem:[#allocation10 + $0x540] sm:$0xff]  ;;  %v9070_v12 = vcombine.high %v923_v50, %v927_v3  ;;  %v9069_v52 = vcombine.low %v923_v50, %v927_v3 }
 0x3cd   :  { %v1055_v51 = vld [vmem:[#allocation10 + $0x560] sm:$0xff] }
 0x3ce   :  { %5080 = vmatpush1.bf16.msra.mxu0 %v8899_v36  ;;  %v9198_v10 = vcombine.high %v1051_v54, %v1055_v51  ;;  %v931_v36 = vld [vmem:[#allocation10 + $0x180] sm:$0xff]  ;;  %v9197_v56 = vcombine.low %v1051_v54, %v1055_v51 }
 0x3cf   :  { %5121 = vmatpush1.bf16.msra.mxu1 %v9027_v17  ;;  %7691 = vmatprep.subr.bf16.mxu0 %v9030_v25  ;;  %v935_v17 = vld [vmem:[#allocation10 + $0x1a0] sm:$0xff] }
 0x3d0   :  { %7732 = vmatprep.subr.bf16.mxu1 %v9158_v31  ;;  %v1059_v25 = vld [vmem:[#allocation10 + $0x580] sm:$0xff] }
 0x3d1   :  { %5082 = vmatmul.mubr.bf16.vlgmr.msra.gmra.mrb[36].mxu0 %v10093_v47  ;;  %v907_v47 = vld [vmem:[#allocation10 + $0xc0] sm:$0xff] }
 0x3d2   :  { %5123 = vmatmul.mubr.bf16.vlgmr.msra.gmra.mrb[36].mxu1 %v10097_v49  ;;  %7692 = vmatpush1.bf16.msra.mxu0 %v9029_v61  ;;  %v9173_v49 = vcombine.low %v1027_v15, %v1031_v16  ;;  %v9054_v33 = vcombine.high %v907_v47, %v911_v30  ;;  %v9053_v43 = vcombine.low %v907_v47, %v911_v30  ;;  %v1063_v31 = vld [vmem:[#allocation10 + $0x5a0] sm:$0xff] }
 0x3d3   :  { %7723 = vmatprep.mubr.bf16.mxu0 %v10145_v14  ;;  %7733 = vmatpush1.bf16.msra.mxu1 %v9157_v63  ;;  %v9078_v61 = vcombine.high %v931_v36, %v935_v17  ;;  %v9206_v26 = vcombine.high %v1059_v25, %v1063_v31  ;;  %v939_v63 = vld [vmem:[#allocation10 + $0x1c0] sm:$0xff]  ;;  %v9205_v22 = vcombine.low %v1059_v25, %v1063_v31 }
 0x3d4   :  { %7764 = vmatprep.mubr.bf16.mxu1 %v10150_v13  ;;  %7693 = vmatprep.subr.bf16.mxu0 %v9038_v1  ;;  %v943_v1 = vld [vmem:[#allocation10 + $0x1e0] sm:$0xff] }
 0x3d5   :  { %7734 = vmatprep.subr.bf16.mxu1 %v9166_v21  ;;  %v1067_v21 = vld [vmem:[#allocation10 + $0x5c0] sm:$0xff]  ;;  %v9086_v28 = vcombine.high %v939_v63, %v943_v1  ;;  %v9085_v20 = vcombine.low %v939_v63, %v943_v1 }
 0x3d6   :  { %7694 = vmatpush1.bf16.msra.mxu0 %v9037_v35  ;;  %v1071_v15 = vld [vmem:[#allocation10 + $0x5e0] sm:$0xff] }
 0x3d7   :  { %7735 = vmatpush1.bf16.msra.mxu1 %v9165_v29  ;;  %7695 = vmatprep.subr.bf16.mxu0 %v9046_v46  ;;  %v9077_v46 = vcombine.low %v931_v36, %v935_v17  ;;  %v1075_v38 = vld [vmem:[#allocation10 + $0x600] sm:$0xff]  ;;  %v9213_v42 = vcombine.low %v1067_v21, %v1071_v15 }
 0x3d8   :  { %7736 = vmatprep.subr.bf16.mxu1 %v9174_v2  ;;  %v1079_v39 = vld [vmem:[#allocation10 + $0x620] sm:$0xff] }
 0x3d9   :  { %v1083_v50 = vld [vmem:[#allocation10 + $0x640] sm:$0xff]  ;;  %v9221_v51 = vcombine.low %v1075_v38, %v1079_v39 }
 0x3da   :  { %7696 = vmatpush1.bf16.msra.mxu0 %v9045_v11  ;;  %v1087_v3 = vld [vmem:[#allocation10 + $0x660] sm:$0xff] }
 0x3db   :  { %7737 = vmatpush1.bf16.msra.mxu1 %v9173_v49  ;;  %7697 = vmatprep.subr.bf16.mxu0 %v9054_v33  ;;  %v9214_v49 = vcombine.high %v1067_v21, %v1071_v15  ;;  %v947_v33 = vld [vmem:[#allocation10 + $0x200] sm:$0xff]  ;;  %v9229_v31 = vcombine.low %v1083_v50, %v1087_v3 }
 0x3dc   :  { %7738 = vmatprep.subr.bf16.mxu1 %v9182_v37  ;;  %v951_v37 = vld [vmem:[#allocation10 + $0x220] sm:$0xff] }
 0x3dd   :  { %v9093_v54 = vcombine.low %v947_v33, %v951_v37  ;;  %v1091_v36 = vld [vmem:[#allocation10 + $0x680] sm:$0xff] }
 0x3de   :  { %7698 = vmatpush1.bf16.msra.mxu0 %v9053_v43  ;;  %v9094_v43 = vcombine.high %v947_v33, %v951_v37  ;;  %v1095_v17 = vld [vmem:[#allocation10 + $0x6a0] sm:$0xff] }
 0x3df   :  { %7739 = vmatpush1.bf16.msra.mxu1 %v9181_v34  ;;  %7699 = vmatprep.subr.bf16.mxu0 %v9062_v44  ;;  %v9222_v34 = vcombine.high %v1075_v38, %v1079_v39  ;;  %v955_v44 = vld [vmem:[#allocation10 + $0x240] sm:$0xff] }
 0x3e0   :  { %7740 = vmatprep.subr.bf16.mxu1 %v9190_v48  ;;  %v959_v48 = vld [vmem:[#allocation10 + $0x260] sm:$0xff] }
 0x3e1   :  { %v9101_v25 = vcombine.low %v955_v44, %v959_v48  ;;  %v1103_v63 = vld [vmem:[#allocation10 + $0x6e0] sm:$0xff] }
 0x3e2   :  { %7700 = vmatpush1.bf16.msra.mxu0 %v9061_v53  ;;  %v9102_v53 = vcombine.high %v955_v44, %v959_v48  ;;  %v979_v15 = vld [vmem:[#allocation10 + $0x300] sm:$0xff] }
 0x3e3   :  { %7741 = vmatpush1.bf16.msra.mxu1 %v9189_v55  ;;  %7701 = vmatprep.subr.bf16.mxu0 %v9070_v12  ;;  %v9230_v55 = vcombine.high %v1083_v50, %v1087_v3  ;;  %v963_v12 = vld [vmem:[#allocation10 + $0x280] sm:$0xff] }
 0x3e4   :  { %v4837_v18 = vpop.f32.mrb[24].mxu0  ;;  %7742 = vmatprep.subr.bf16.mxu1 %v9198_v10  ;;  %v967_v10 = vld [vmem:[#allocation10 + $0x2a0] sm:$0xff] }
 0x3e5   :  { %v4878_v4 = vpop.f32.mrb[24].mxu1  ;;  %v4839_v27 = vpop.f32.mrb[25].mxu0  ;;  %v9109_v1 = vcombine.low %v963_v12, %v967_v10  ;;  %v1115_v33 = vld [vmem:[#allocation10 + $0x740] sm:$0xff] }
 0x3e6   :  { %v10155_v16 = vadd.f32 %v4878_v4, %v4837_v18  ;;  %v4880_v35 = vpop.f32.mrb[25].mxu1  ;;  %v4841_v29 = vpop.f32.mrb[26].mxu0  ;;  %7702 = vmatpush1.bf16.msra.mxu0 %v9069_v52  ;;  %v9110_v52 = vcombine.high %v963_v12, %v967_v10  ;;  %v975_v18 = vld [vmem:[#allocation10 + $0x2e0] sm:$0xff]  ;;  %v9237_v4 = vcombine.low %v1091_v36, %v1095_v17 }
 0x3e7   :  { %v10157_v2 = vadd.f32 %v4880_v35, %v4839_v27  ;;  %v4882_v47 = vpop.f32.mrb[26].mxu1  ;;  %7743 = vmatpush1.bf16.msra.mxu1 %v9197_v56  ;;  %v4842_v30 = vpop.f32.mrb[27].mxu0  ;;  %7703 = vmatprep.subr.bf16.mxu0 %v9078_v61  ;;  %v9238_v56 = vcombine.high %v1091_v36, %v1095_v17  ;;  %v971_v61 = vld [vmem:[#allocation10 + $0x2c0] sm:$0xff] }
 0x3e8   :  { %v4883_v11 = vpop.f32.mrb[27].mxu1  ;;  %7744 = vmatprep.subr.bf16.mxu1 %v9206_v26  ;;  %v1099_v26 = vld [vmem:[#allocation10 + $0x6c0] sm:$0xff]  ;;  %v9118_v27 = vcombine.high %v971_v61, %v975_v18  ;;  %v9117_v47 = vcombine.low %v971_v61, %v975_v18 }
 0x3e9   :  { %v9246_v21 = vcombine.high %v1099_v26, %v1103_v63  ;;  %v983_v35 = vld [vmem:[#allocation10 + $0x320] sm:$0xff]  ;;  %v9245_v30 = vcombine.low %v1099_v26, %v1103_v63 }
 0x3ea   :  { %7704 = vmatpush1.bf16.msra.mxu0 %v9077_v46  ;;  %v1107_v29 = vld [vmem:[#allocation10 + $0x700] sm:$0xff]  ;;  %v9125_v38 = vcombine.low %v979_v15, %v983_v35 }
 0x3eb   :  { %7745 = vmatpush1.bf16.msra.mxu1 %v9205_v22  ;;  %7705 = vmatprep.subr.bf16.mxu0 %v9086_v28  ;;  %v1111_v46 = vld [vmem:[#allocation10 + $0x720] sm:$0xff]  ;;  %v9126_v22 = vcombine.high %v979_v15, %v983_v35 }
 0x3ec   :  { %7746 = vmatprep.subr.bf16.mxu1 %v9214_v49  ;;  %v9254_v28 = vcombine.high %v1107_v29, %v1111_v46  ;;  %v987_v11 = vld [vmem:[#allocation10 + $0x340] sm:$0xff]  ;;  %v9253_v39 = vcombine.low %v1107_v29, %v1111_v46  ;;  %v10161_v46 = vpack.c.bf16 %v10037_v62, %v10037_v62 }
 0x3ed   :  { %v991_v49 = vld [vmem:[#allocation10 + $0x360] sm:$0xff] }
 0x3ee   :  { %7706 = vmatpush1.bf16.msra.mxu0 %v9085_v20  ;;  %v1119_v37 = vld [vmem:[#allocation10 + $0x760] sm:$0xff]  ;;  %v9134_v20 = vcombine.high %v987_v11, %v991_v49  ;;  %v9133_v50 = vcombine.low %v987_v11, %v991_v49  ;;  %v10169_v49 = vpack.c.bf16 %v10067_v45, %v10067_v45 }
 0x3ef   :  { %7747 = vmatpush1.bf16.msra.mxu1 %v9213_v42  ;;  %7707 = vmatprep.subr.bf16.mxu0 %v9094_v43  ;;  %v9262_v42 = vcombine.high %v1115_v33, %v1119_v37  ;;  %v995_v43 = vld [vmem:[#allocation10 + $0x380] sm:$0xff]  ;;  %v9261_v3 = vcombine.low %v1115_v33, %v1119_v37 }
 0x3f0   :  { %7748 = vmatprep.subr.bf16.mxu1 %v9222_v34  ;;  %v999_v34 = vld [vmem:[#allocation10 + $0x3a0] sm:$0xff] }
 0x3f1   :  { %v1123_v44 = vld [vmem:[#allocation10 + $0x780] sm:$0xff]  ;;  %v9141_v36 = vcombine.low %v995_v43, %v999_v34 }
 0x3f2   :  { %7708 = vmatpush1.bf16.msra.mxu0 %v9093_v54  ;;  %v1127_v48 = vld [vmem:[#allocation10 + $0x7a0] sm:$0xff]  ;;  %v9142_v54 = vcombine.high %v995_v43, %v999_v34 }
 0x3f3   :  { %7749 = vmatpush1.bf16.msra.mxu1 %v9221_v51  ;;  %7709 = vmatprep.subr.bf16.mxu0 %v9102_v53  ;;  %v9270_v51 = vcombine.high %v1123_v44, %v1127_v48  ;;  %v1003_v53 = vld [vmem:[#allocation10 + $0x3c0] sm:$0xff]  ;;  %v9269_v17 = vcombine.low %v1123_v44, %v1127_v48 }
 0x3f4   :  { %7750 = vmatprep.subr.bf16.mxu1 %v9230_v55  ;;  %v1007_v55 = vld [vmem:[#allocation10 + $0x3e0] sm:$0xff] }
 0x3f5   :  { %v1131_v12 = vld [vmem:[#allocation10 + $0x7c0] sm:$0xff]  ;;  %v9149_v26 = vcombine.low %v1003_v53, %v1007_v55 }
 0x3f6   :  { %7710 = vmatpush1.bf16.msra.mxu0 %v9101_v25  ;;  %v1135_v10 = vld [vmem:[#allocation10 + $0x7e0] sm:$0xff]  ;;  %v9150_v25 = vcombine.high %v1003_v53, %v1007_v55 }
 0x3f7   :  { %7751 = vmatpush1.bf16.msra.mxu1 %v9229_v31  ;;  %7711 = vmatprep.subr.bf16.mxu0 %v9110_v52  ;;  %v9278_v31 = vcombine.high %v1131_v12, %v1135_v10  ;;  %v1139_v52 = vld [vmem:[#allocation10 + $0x800] sm:$0xff]  ;;  %v9277_v63 = vcombine.low %v1131_v12, %v1135_v10 }
 0x3f8   :  { %7752 = vmatprep.subr.bf16.mxu1 %v9238_v56  ;;  %v1143_v56 = vld [vmem:[#allocation10 + $0x820] sm:$0xff] }
 0x3f9   :  { %v1267_v61 = vld [vmem:[#allocation10 + $0xc00] sm:$0xff]  ;;  %v9285_v15 = vcombine.low %v1139_v52, %v1143_v56 }
 0x3fa   :  { %7712 = vmatpush1.bf16.msra.mxu0 %v9109_v1  ;;  %v1271_v18 = vld [vmem:[#allocation10 + $0xc20] sm:$0xff]  ;;  %v9286_v1 = vcombine.high %v1139_v52, %v1143_v56 }
 0x3fb   :  { %7753 = vmatpush1.bf16.msra.mxu1 %v9237_v4  ;;  %7713 = vmatprep.subr.bf16.mxu0 %v9118_v27  ;;  %v9414_v4 = vcombine.high %v1267_v61, %v1271_v18  ;;  %v1147_v27 = vld [vmem:[#allocation10 + $0x840] sm:$0xff] }
 0x3fc   :  { %7754 = vmatprep.subr.bf16.mxu1 %v9246_v21  ;;  %v1151_v21 = vld [vmem:[#allocation10 + $0x860] sm:$0xff] }
 0x3fd   :  { %v1275_v35 = vld [vmem:[#allocation10 + $0xc40] sm:$0xff] }
 0x3fe   :  { %7714 = vmatpush1.bf16.msra.mxu0 %v9117_v47  ;;  %v1279_v29 = vld [vmem:[#allocation10 + $0xc60] sm:$0xff]  ;;  %v9413_v47 = vcombine.low %v1267_v61, %v1271_v18 }
 0x3ff   :  { %7755 = vmatpush1.bf16.msra.mxu1 %v9245_v30  ;;  %7715 = vmatprep.subr.bf16.mxu0 %v9126_v22  ;;  %v10165_v30 = vpack.c.bf16 %v10039_v0, %v10039_v0  ;;  %v9294_v22 = vcombine.high %v1147_v27, %v1151_v21  ;;  %v1159_v11 = vld [vmem:[#allocation10 + $0x8a0] sm:$0xff]  ;;  %v9422_v33 = vcombine.high %v1275_v35, %v1279_v29 }
 0x400   :  { %7756 = vmatprep.subr.bf16.mxu1 %v9254_v28  ;;  %v1155_v28 = vld [vmem:[#allocation10 + $0x880] sm:$0xff]  ;;  %v9293_v0 = vcombine.low %v1147_v27, %v1151_v21 }
 0x401   :  { %v1283_v62 = vld [vmem:[#allocation10 + $0xc80] sm:$0xff] }
 0x402   :  { %7716 = vmatpush1.bf16.msra.mxu0 %v9125_v38  ;;  %v1287_v37 = vld [vmem:[#allocation10 + $0xca0] sm:$0xff]  ;;  %v10174_v38 = vpack.c.bf16 %v10071_v41, %v10071_v41  ;;  %v9301_v41 = vcombine.low %v1155_v28, %v1159_v11 }
 0x403   :  { %7757 = vmatpush1.bf16.msra.mxu1 %v9253_v39  ;;  %7717 = vmatprep.subr.bf16.mxu0 %v9134_v20  ;;  %v9421_v39 = vcombine.low %v1275_v35, %v1279_v29  ;;  %v9302_v20 = vcombine.high %v1155_v28, %v1159_v11  ;;  %v9430_v45 = vcombine.high %v1283_v62, %v1287_v37  ;;  %v1167_v43 = vld [vmem:[#allocation10 + $0x8e0] sm:$0xff] }
 0x404   :  { %7758 = vmatprep.subr.bf16.mxu1 %v9262_v42  ;;  %v1163_v42 = vld [vmem:[#allocation10 + $0x8c0] sm:$0xff]  ;;  %v9429_v48 = vcombine.low %v1283_v62, %v1287_v37 }
 0x405   :  { %v1291_v34 = vld [vmem:[#allocation10 + $0xcc0] sm:$0xff]  ;;  %v9309_v12 = vcombine.low %v1163_v42, %v1167_v43 }
 0x406   :  { %7718 = vmatpush1.bf16.msra.mxu0 %v9133_v50  ;;  %v1295_v44 = vld [vmem:[#allocation10 + $0xce0] sm:$0xff]  ;;  %v9310_v50 = vcombine.high %v1163_v42, %v1167_v43 }
 0x407   :  { %7759 = vmatpush1.bf16.msra.mxu1 %v9261_v3  ;;  %7719 = vmatprep.subr.bf16.mxu0 %v9142_v54  ;;  %v9438_v3 = vcombine.high %v1291_v34, %v1295_v44  ;;  %v1171_v54 = vld [vmem:[#allocation10 + $0x900] sm:$0xff]  ;;  %v9437_v10 = vcombine.low %v1291_v34, %v1295_v44 }
 0x408   :  { %7760 = vmatprep.subr.bf16.mxu1 %v9270_v51  ;;  %v1175_v51 = vld [vmem:[#allocation10 + $0x920] sm:$0xff] }
 0x409   :  { %v1299_v53 = vld [vmem:[#allocation10 + $0xd00] sm:$0xff]  ;;  %v9317_v61 = vcombine.low %v1171_v54, %v1175_v51 }
 0x40a   :  { %7720 = vmatpush1.bf16.msra.mxu0 %v9141_v36  ;;  %v1303_v55 = vld [vmem:[#allocation10 + $0xd20] sm:$0xff]  ;;  %v9318_v36 = vcombine.high %v1171_v54, %v1175_v51 }
 0x40b   :  { %7761 = vmatpush1.bf16.msra.mxu1 %v9269_v17  ;;  %7721 = vmatprep.subr.bf16.mxu0 %v9150_v25  ;;  %v9446_v17 = vcombine.high %v1299_v53, %v1303_v55  ;;  %v1179_v25 = vld [vmem:[#allocation10 + $0x940] sm:$0xff]  ;;  %v9445_v18 = vcombine.low %v1299_v53, %v1303_v55 }
 0x40c   :  { %7762 = vmatprep.subr.bf16.mxu1 %v9278_v31  ;;  %v1183_v31 = vld [vmem:[#allocation10 + $0x960] sm:$0xff] }
 0x40d   :  { %v1307_v52 = vld [vmem:[#allocation10 + $0xd40] sm:$0xff] }
 0x40e   :  { %7722 = vmatpush1.bf16.msra.mxu0 %v9149_v26  ;;  %v1311_v56 = vld [vmem:[#allocation10 + $0xd60] sm:$0xff]  ;;  %v9326_v26 = vcombine.high %v1179_v25, %v1183_v31 }
 0x40f   :  { %7763 = vmatpush1.bf16.msra.mxu1 %v9277_v63  ;;  %7773 = vmatprep.subr.bf16.mxu0 %v9286_v1  ;;  %v9454_v63 = vcombine.high %v1307_v52, %v1311_v56  ;;  %v1187_v1 = vld [vmem:[#allocation10 + $0x980] sm:$0xff]  ;;  %v9453_v35 = vcombine.low %v1307_v52, %v1311_v56 }
 0x410   :  { %7814 = vmatprep.subr.bf16.mxu1 %v9414_v4  ;;  %v1191_v4 = vld [vmem:[#allocation10 + $0x9a0] sm:$0xff] }
 0x411   :  { %7724 = vmatmul.mubr.bf16.vlgmr.msra.gmra.mrb[40].mxu0 %v10161_v46  ;;  %v1315_v27 = vld [vmem:[#allocation10 + $0xd80] sm:$0xff]  ;;  %v9334_v29 = vcombine.high %v1187_v1, %v1191_v4  ;;  %v9333_v43 = vcombine.low %v1187_v1, %v1191_v4 }
 0x412   :  { %7765 = vmatmul.mubr.bf16.vlgmr.msra.gmra.mrb[40].mxu1 %v10165_v30  ;;  %7774 = vmatpush1.bf16.msra.mxu0 %v9285_v15  ;;  %v1319_v21 = vld [vmem:[#allocation10 + $0xda0] sm:$0xff]  ;;  %v9325_v15 = vcombine.low %v1179_v25, %v1183_v31 }
 0x413   :  { %7805 = vmatprep.mubr.bf16.mxu0 %v10169_v49  ;;  %7815 = vmatpush1.bf16.msra.mxu1 %v9413_v47  ;;  %v1195_v28 = vld [vmem:[#allocation10 + $0x9c0] sm:$0xff] }
 0x414   :  { %7846 = vmatprep.mubr.bf16.mxu1 %v10174_v38  ;;  %7775 = vmatprep.subr.bf16.mxu0 %v9294_v22  ;;  %v9462_v22 = vcombine.high %v1315_v27, %v1319_v21  ;;  %v1199_v11 = vld [vmem:[#allocation10 + $0x9e0] sm:$0xff] }
 0x415   :  { %7816 = vmatprep.subr.bf16.mxu1 %v9422_v33  ;;  %v1203_v51 = vld [vmem:[#allocation10 + $0xa00] sm:$0xff] }
 0x416   :  { %7776 = vmatpush1.bf16.msra.mxu0 %v9293_v0  ;;  %v1323_v0 = vld [vmem:[#allocation10 + $0xdc0] sm:$0xff] }
 0x417   :  { %7817 = vmatpush1.bf16.msra.mxu1 %v9421_v39  ;;  %7777 = vmatprep.subr.bf16.mxu0 %v9302_v20  ;;  %v1327_v39 = vld [vmem:[#allocation10 + $0xde0] sm:$0xff] }
 0x418   :  { %7818 = vmatprep.subr.bf16.mxu1 %v9430_v45  ;;  %v9470_v54 = vcombine.high %v1323_v0, %v1327_v39  ;;  %v1207_v53 = vld [vmem:[#allocation10 + $0xa20] sm:$0xff] }
 0x419   :  { %v1335_v55 = vld [vmem:[#allocation10 + $0xe20] sm:$0xff] }
 0x41a   :  { %7778 = vmatpush1.bf16.msra.mxu0 %v9301_v41  ;;  %v1211_v25 = vld [vmem:[#allocation10 + $0xa40] sm:$0xff] }
 0x41b   :  { %7819 = vmatpush1.bf16.msra.mxu1 %v9429_v48  ;;  %7779 = vmatprep.subr.bf16.mxu0 %v9310_v50  ;;  %v9461_v48 = vcombine.low %v1315_v27, %v1319_v21  ;;  %v9342_v50 = vcombine.high %v1195_v28, %v1199_v11  ;;  %v1215_v31 = vld [vmem:[#allocation10 + $0xa60] sm:$0xff] }
 0x41c   :  { %7820 = vmatprep.subr.bf16.mxu1 %v9438_v3  ;;  %v1339_v52 = vld [vmem:[#allocation10 + $0xe40] sm:$0xff] }
 0x41d   :  { %v1343_v56 = vld [vmem:[#allocation10 + $0xe60] sm:$0xff] }
 0x41e   :  { %7780 = vmatpush1.bf16.msra.mxu0 %v9309_v12  ;;  %v9341_v12 = vcombine.low %v1195_v28, %v1199_v11  ;;  %v1219_v1 = vld [vmem:[#allocation10 + $0xa80] sm:$0xff] }
 0x41f   :  { %7821 = vmatpush1.bf16.msra.mxu1 %v9437_v10  ;;  %7781 = vmatprep.subr.bf16.mxu0 %v9318_v36  ;;  %v9469_v10 = vcombine.low %v1323_v0, %v1327_v39  ;;  %v9350_v36 = vcombine.high %v1203_v51, %v1207_v53  ;;  %v1223_v4 = vld [vmem:[#allocation10 + $0xaa0] sm:$0xff] }
 0x420   :  { %7822 = vmatprep.subr.bf16.mxu1 %v9446_v17  ;;  %v1347_v27 = vld [vmem:[#allocation10 + $0xe80] sm:$0xff] }
 0x421   :  { %v1351_v21 = vld [vmem:[#allocation10 + $0xea0] sm:$0xff] }
 0x422   :  { %7782 = vmatpush1.bf16.msra.mxu0 %v9317_v61  ;;  %v9349_v61 = vcombine.low %v1203_v51, %v1207_v53  ;;  %v1231_v28 = vld [vmem:[#allocation10 + $0xae0] sm:$0xff] }
 0x423   :  { %7823 = vmatpush1.bf16.msra.mxu1 %v9445_v18  ;;  %7783 = vmatprep.subr.bf16.mxu0 %v9326_v26  ;;  %v9358_v26 = vcombine.high %v1211_v25, %v1215_v31  ;;  %v1355_v11 = vld [vmem:[#allocation10 + $0xec0] sm:$0xff] }
 0x424   :  { %v4919_v47 = vpop.f32.mrb[28].mxu0  ;;  %7824 = vmatprep.subr.bf16.mxu1 %v9454_v63  ;;  %v9486_v63 = vcombine.high %v1339_v52, %v1343_v56  ;;  %v1371_v51 = vld [vmem:[#allocation10 + $0xf40] sm:$0xff] }
 0x425   :  { %v4920_v33 = vadd.f32 %v4919_v47, %v10155_v16  ;;  %v4960_v62 = vpop.f32.mrb[28].mxu1  ;;  %v4921_v37 = vpop.f32.mrb[29].mxu0  ;;  %v9494_v47 = vcombine.high %v1347_v27, %v1351_v21  ;;  %v1375_v53 = vld [vmem:[#allocation10 + $0xf60] sm:$0xff] }
 0x426   :  { %v4922_v20 = vadd.f32 %v4921_v37, %v10157_v2  ;;  %v4962_v45 = vpop.f32.mrb[29].mxu1  ;;  %v4923_v42 = vpop.f32.mrb[30].mxu0  ;;  %7784 = vmatpush1.bf16.msra.mxu0 %v9325_v15  ;;  %v1331_v2 = vld [vmem:[#allocation10 + $0xe00] sm:$0xff]  ;;  %v9357_v15 = vcombine.low %v1211_v25, %v1215_v31  ;;  %v9493_v37 = vcombine.low %v1347_v27, %v1351_v21 }
 0x427   :  { %v10181_v34 = vadd.f32 %v4960_v62, %v4920_v33  ;;  %v4964_v44 = vpop.f32.mrb[30].mxu1  ;;  %7825 = vmatpush1.bf16.msra.mxu1 %v9453_v35  ;;  %v4924_v41 = vpop.f32.mrb[31].mxu0  ;;  %7785 = vmatprep.subr.bf16.mxu0 %v9334_v29  ;;  %v9478_v17 = vcombine.high %v1331_v2, %v1335_v55  ;;  %v9477_v18 = vcombine.low %v1331_v2, %v1335_v55  ;;  %v1359_v33 = vld [vmem:[#allocation10 + $0xee0] sm:$0xff] }
 0x428   :  { %v10183_v3 = vadd.f32 %v4962_v45, %v4922_v20  ;;  %v4965_v16 = vpop.f32.mrb[31].mxu1  ;;  %7826 = vmatprep.subr.bf16.mxu1 %v9462_v22  ;;  %v9485_v35 = vcombine.low %v1339_v52, %v1343_v56  ;;  %v9366_v29 = vcombine.high %v1219_v1, %v1223_v4  ;;  %v1227_v22 = vld [vmem:[#allocation10 + $0xac0] sm:$0xff]  ;;  %v9365_v62 = vcombine.low %v1219_v1, %v1223_v4 }
 0x429   :  { %v9374_v0 = vcombine.high %v1227_v22, %v1231_v28  ;;  %v9502_v39 = vcombine.high %v1355_v11, %v1359_v33  ;;  %v1235_v20 = vld [vmem:[#allocation10 + $0xb00] sm:$0xff]  ;;  %v9373_v44 = vcombine.low %v1227_v22, %v1231_v28  ;;  %v9501_v41 = vcombine.low %v1355_v11, %v1359_v33  ;;  %v1012_v22 = vld [vmem:[#allocation10 + $0x408] sm:$0xff] }
 0x42a   :  { %7786 = vmatpush1.bf16.msra.mxu0 %v9333_v43  ;;  %v1239_v45 = vld [vmem:[#allocation10 + $0xb20] sm:$0xff]  ;;  %v9517_v56 = vcombine.low %v1371_v51, %v1375_v53  ;;  %v1016_v28 = vld [vmem:[#allocation10 + $0x428] sm:$0xff] }
 0x42b   :  { %7827 = vmatpush1.bf16.msra.mxu1 %v9461_v48  ;;  %7787 = vmatprep.subr.bf16.mxu0 %v9342_v50  ;;  %v1363_v42 = vld [vmem:[#allocation10 + $0xf00] sm:$0xff]  ;;  %v9382_v48 = vcombine.high %v1235_v20, %v1239_v45  ;;  %v9381_v2 = vcombine.low %v1235_v20, %v1239_v45  ;;  %v1020_v45 = vld [vmem:[#allocation10 + $0x448] sm:$0xff] }
 0x42c   :  { %7828 = vmatprep.subr.bf16.mxu1 %v9470_v54  ;;  %v1367_v43 = vld [vmem:[#allocation10 + $0xf20] sm:$0xff] }
 0x42d   :  { %v9510_v50 = vcombine.high %v1363_v42, %v1367_v43  ;;  %v1243_v16 = vld [vmem:[#allocation10 + $0xb40] sm:$0xff]  ;;  %v9509_v55 = vcombine.low %v1363_v42, %v1367_v43  ;;  %v1024_v42 = vld [vmem:[#allocation10 + $0x468] sm:$0xff]  ;;  %v10187_v43 = vpack.c.bf16 %v10060_v23, %v10060_v23 }
 0x42e   :  { %7788 = vmatpush1.bf16.msra.mxu0 %v9341_v12  ;;  %v1247_v54 = vld [vmem:[#allocation10 + $0xb60] sm:$0xff] }
 0x42f   :  { %7829 = vmatpush1.bf16.msra.mxu1 %v9469_v10  ;;  %7789 = vmatprep.subr.bf16.mxu0 %v9350_v36  ;;  %v9390_v12 = vcombine.high %v1243_v16, %v1247_v54  ;;  %v9518_v10 = vcombine.high %v1371_v51, %v1375_v53  ;;  %v1251_v36 = vld [vmem:[#allocation10 + $0xb80] sm:$0xff]  ;;  %v9389_v52 = vcombine.low %v1243_v16, %v1247_v54  ;;  %v904_v16 = vld [vmem:[#allocation10 + $0xa8] sm:$0xff] }
 0x430   :  { %7830 = vmatprep.subr.bf16.mxu1 %v9478_v17  ;;  %v1255_v17 = vld [vmem:[#allocation10 + $0xba0] sm:$0xff]  ;;  %v9168_v54 = vcombine.high %v1020_v45, %v1024_v42  ;;  %v1028_v51 = vld [vmem:[#allocation10 + $0x488] sm:$0xff] }
 0x431   :  { %v1379_v25 = vld [vmem:[#allocation10 + $0xf80] sm:$0xff]  ;;  %v9397_v27 = vcombine.low %v1251_v36, %v1255_v17  ;;  %v1032_v53 = vld [vmem:[#allocation10 + $0x4a8] sm:$0xff] }
 0x432   :  { %7790 = vmatpush1.bf16.msra.mxu0 %v9349_v61  ;;  %v1383_v31 = vld [vmem:[#allocation10 + $0xfa0] sm:$0xff]  ;;  %v9398_v61 = vcombine.high %v1251_v36, %v1255_v17  ;;  %v1036_v36 = vld [vmem:[#allocation10 + $0x4c8] sm:$0xff] }
 0x433   :  { %7831 = vmatpush1.bf16.msra.mxu1 %v9477_v18  ;;  %7791 = vmatprep.subr.bf16.mxu0 %v9358_v26  ;;  %v9526_v18 = vcombine.high %v1379_v25, %v1383_v31  ;;  %v1259_v26 = vld [vmem:[#allocation10 + $0xbc0] sm:$0xff]  ;;  %v9525_v21 = vcombine.low %v1379_v25, %v1383_v31  ;;  %v1040_v17 = vld [vmem:[#allocation10 + $0x4e8] sm:$0xff]  ;;  %v9175_v31 = vcombine.low %v1028_v51, %v1032_v53 }
 0x434   :  { %7832 = vmatprep.subr.bf16.mxu1 %v9486_v63  ;;  %v1263_v63 = vld [vmem:[#allocation10 + $0xbe0] sm:$0xff] }
 0x435   :  { %v1387_v1 = vld [vmem:[#allocation10 + $0xfc0] sm:$0xff]  ;;  %v9405_v11 = vcombine.low %v1259_v26, %v1263_v63 }
 0x436   :  { %7792 = vmatpush1.bf16.msra.mxu0 %v9357_v15  ;;  %v1391_v4 = vld [vmem:[#allocation10 + $0xfe0] sm:$0xff]  ;;  %v9406_v15 = vcombine.high %v1259_v26, %v1263_v63  ;;  %v1044_v26 = vld [vmem:[#allocation10 + $0x508] sm:$0xff] }
 0x437   :  { %7833 = vmatpush1.bf16.msra.mxu1 %v9485_v35  ;;  %7793 = vmatprep.subr.bf16.mxu0 %v9366_v29  ;;  %v9534_v35 = vcombine.high %v1387_v1, %v1391_v4  ;;  %v884_v29 = vld [vmem:[#allocation10 + $0x8] sm:$0xff]  ;;  %v9533_v33 = vcombine.low %v1387_v1, %v1391_v4  ;;  %v9183_v4 = vcombine.low %v1036_v36, %v1040_v17 }
 0x438   :  { %7834 = vmatprep.subr.bf16.mxu1 %v9494_v47  ;;  %v888_v47 = vld [vmem:[#allocation10 + $0x28] sm:$0xff] }
 0x439   :  { %v9031_v20 = vcombine.low %v884_v29, %v888_v47  ;;  %v1048_v63 = vld [vmem:[#allocation10 + $0x528] sm:$0xff] }
 0x43a   :  { %7794 = vmatpush1.bf16.msra.mxu0 %v9365_v62  ;;  %v9032_v62 = vcombine.high %v884_v29, %v888_v47  ;;  %v1052_v29 = vld [vmem:[#allocation10 + $0x548] sm:$0xff] }
 0x43b   :  { %7835 = vmatpush1.bf16.msra.mxu1 %v9493_v37  ;;  %7795 = vmatprep.subr.bf16.mxu0 %v9374_v0  ;;  %v9160_v37 = vcombine.high %v1012_v22, %v1016_v28  ;;  %v892_v0 = vld [vmem:[#allocation10 + $0x48] sm:$0xff] }
 0x43c   :  { %7836 = vmatprep.subr.bf16.mxu1 %v9502_v39  ;;  %v896_v39 = vld [vmem:[#allocation10 + $0x68] sm:$0xff] }
 0x43d   :  { %v9039_v23 = vcombine.low %v892_v0, %v896_v39  ;;  %v1056_v47 = vld [vmem:[#allocation10 + $0x568] sm:$0xff] }
 0x43e   :  { %7796 = vmatpush1.bf16.msra.mxu0 %v9373_v44  ;;  %v9159_v44 = vcombine.low %v1012_v22, %v1016_v28  ;;  %v9191_v28 = vcombine.low %v1044_v26, %v1048_v63 }
 0x43f   :  { %7837 = vmatpush1.bf16.msra.mxu1 %v9501_v41  ;;  %7797 = vmatprep.subr.bf16.mxu0 %v9382_v48  ;;  %v10191_v41 = vpack.c.bf16 %v10062_v24, %v10062_v24  ;;  %v9040_v48 = vcombine.high %v892_v0, %v896_v39  ;;  %v9176_v24 = vcombine.high %v1028_v51, %v1032_v53  ;;  %v1060_v0 = vld [vmem:[#allocation10 + $0x588] sm:$0xff] }
 0x440   :  { %7838 = vmatprep.subr.bf16.mxu1 %v9510_v50  ;;  %v900_v50 = vld [vmem:[#allocation10 + $0x88] sm:$0xff] }
 0x441   :  { %v9047_v25 = vcombine.low %v900_v50, %v904_v16  ;;  %v1064_v39 = vld [vmem:[#allocation10 + $0x5a8] sm:$0xff] }
 0x442   :  { %7798 = vmatpush1.bf16.msra.mxu0 %v9381_v2  ;;  %v9167_v2 = vcombine.low %v1020_v45, %v1024_v42  ;;  %v9199_v45 = vcombine.low %v1052_v29, %v1056_v47  ;;  %v1068_v53 = vld [vmem:[#allocation10 + $0x5c8] sm:$0xff] }
 0x443   :  { %7839 = vmatpush1.bf16.msra.mxu1 %v9509_v55  ;;  %7799 = vmatprep.subr.bf16.mxu0 %v9390_v12  ;;  %v9048_v55 = vcombine.high %v900_v50, %v904_v16  ;;  %v908_v12 = vld [vmem:[#allocation10 + $0xc8] sm:$0xff] }
 0x444   :  { %7840 = vmatprep.subr.bf16.mxu1 %v9518_v10  ;;  %v912_v10 = vld [vmem:[#allocation10 + $0xe8] sm:$0xff] }
 0x445   :  { %v9055_v1 = vcombine.low %v908_v12, %v912_v10  ;;  %v940_v50 = vld [vmem:[#allocation10 + $0x1c8] sm:$0xff] }
 0x446   :  { %7800 = vmatpush1.bf16.msra.mxu0 %v9389_v52  ;;  %v9056_v52 = vcombine.high %v908_v12, %v912_v10  ;;  %v944_v16 = vld [vmem:[#allocation10 + $0x1e8] sm:$0xff] }
 0x447   :  { %7841 = vmatpush1.bf16.msra.mxu1 %v9517_v56  ;;  %7801 = vmatprep.subr.bf16.mxu0 %v9398_v61  ;;  %v9184_v56 = vcombine.high %v1036_v36, %v1040_v17  ;;  %v916_v61 = vld [vmem:[#allocation10 + $0x108] sm:$0xff] }
 0x448   :  { %7842 = vmatprep.subr.bf16.mxu1 %v9526_v18  ;;  %v920_v18 = vld [vmem:[#allocation10 + $0x128] sm:$0xff] }
 0x449   :  { %v9063_v22 = vcombine.low %v916_v61, %v920_v18 }
 0x44a   :  { %7802 = vmatpush1.bf16.msra.mxu0 %v9397_v27  ;;  %v9064_v27 = vcombine.high %v916_v61, %v920_v18  ;;  %v948_v61 = vld [vmem:[#allocation10 + $0x208] sm:$0xff] }
 0x44b   :  { %7843 = vmatpush1.bf16.msra.mxu1 %v9525_v21  ;;  %7803 = vmatprep.subr.bf16.mxu0 %v9406_v15  ;;  %v9192_v21 = vcombine.high %v1044_v26, %v1048_v63  ;;  %v924_v15 = vld [vmem:[#allocation10 + $0x148] sm:$0xff] }
 0x44c   :  { %7844 = vmatprep.subr.bf16.mxu1 %v9534_v35  ;;  %v928_v35 = vld [vmem:[#allocation10 + $0x168] sm:$0xff] }
 0x44d   :  { %v952_v18 = vld [vmem:[#allocation10 + $0x228] sm:$0xff] }
 0x44e   :  { %7804 = vmatpush1.bf16.msra.mxu0 %v9405_v11  ;;  %v9072_v11 = vcombine.high %v924_v15, %v928_v35  ;;  %v1076_v26 = vld [vmem:[#allocation10 + $0x608] sm:$0xff] }
 0x44f   :  { %7845 = vmatpush1.bf16.msra.mxu1 %v9533_v33  ;;  %7855 = vmatprep.subr.bf16.mxu0 %v9032_v62  ;;  %v9200_v33 = vcombine.high %v1052_v29, %v1056_v47  ;;  %v932_v62 = vld [vmem:[#allocation10 + $0x188] sm:$0xff] }
 0x450   :  { %7896 = vmatprep.subr.bf16.mxu1 %v9160_v37  ;;  %v936_v37 = vld [vmem:[#allocation10 + $0x1a8] sm:$0xff] }
 0x451   :  { %7806 = vmatmul.mubr.bf16.vlgmr.msra.gmra.mrb[44].mxu0 %v10187_v43  ;;  %v9080_v42 = vcombine.high %v932_v62, %v936_v37  ;;  %v9079_v12 = vcombine.low %v932_v62, %v936_v37  ;;  %v1080_v63 = vld [vmem:[#allocation10 + $0x628] sm:$0xff] }
 0x452   :  { %7847 = vmatmul.mubr.bf16.vlgmr.msra.gmra.mrb[44].mxu1 %v10191_v41  ;;  %7856 = vmatpush1.bf16.msra.mxu0 %v9031_v20  ;;  %v9071_v20 = vcombine.low %v924_v15, %v928_v35  ;;  %v956_v15 = vld [vmem:[#allocation10 + $0x248] sm:$0xff] }
 0x453   :  { %7887 = vmatprep.mubr.bf16.mxu0 %v10145_v14  ;;  %7897 = vmatpush1.bf16.msra.mxu1 %v9159_v44  ;;  %v960_v35 = vld [vmem:[#allocation10 + $0x268] sm:$0xff] }
 0x454   :  { %7928 = vmatprep.mubr.bf16.mxu1 %v10150_v13  ;;  %7857 = vmatprep.subr.bf16.mxu0 %v9040_v48  ;;  %v9208_v48 = vcombine.high %v1060_v0, %v1064_v39  ;;  %v1084_v29 = vld [vmem:[#allocation10 + $0x648] sm:$0xff] }
 0x455   :  { %7898 = vmatprep.subr.bf16.mxu1 %v9168_v54  ;;  %v1088_v47 = vld [vmem:[#allocation10 + $0x668] sm:$0xff] }
 0x456   :  { %7858 = vmatpush1.bf16.msra.mxu0 %v9039_v23  ;;  %v1072_v23 = vld [vmem:[#allocation10 + $0x5e8] sm:$0xff] }
 0x457   :  { %7899 = vmatpush1.bf16.msra.mxu1 %v9167_v2  ;;  %7859 = vmatprep.subr.bf16.mxu0 %v9048_v55  ;;  %v964_v62 = vld [vmem:[#allocation10 + $0x288] sm:$0xff] }
 0x458   :  { %7900 = vmatprep.subr.bf16.mxu1 %v9176_v24  ;;  %v968_v37 = vld [vmem:[#allocation10 + $0x2a8] sm:$0xff] }
 0x45a   :  { %7860 = vmatpush1.bf16.msra.mxu0 %v9047_v25  ;;  %v9207_v25 = vcombine.low %v1060_v0, %v1064_v39  ;;  %v1092_v0 = vld [vmem:[#allocation10 + $0x688] sm:$0xff] }
 0x45b   :  { %7901 = vmatpush1.bf16.msra.mxu1 %v9175_v31  ;;  %7861 = vmatprep.subr.bf16.mxu0 %v9056_v52  ;;  %v9088_v31 = vcombine.high %v940_v50, %v944_v16  ;;  %v1096_v39 = vld [vmem:[#allocation10 + $0x6a8] sm:$0xff] }
 0x45c   :  { %7902 = vmatprep.subr.bf16.mxu1 %v9184_v56  ;;  %v9216_v56 = vcombine.high %v1068_v53, %v1072_v23 }
 0x45e   :  { %7862 = vmatpush1.bf16.msra.mxu0 %v9055_v1  ;;  %v9087_v1 = vcombine.low %v940_v50, %v944_v16  ;;  %v976_v50 = vld [vmem:[#allocation10 + $0x2e8] sm:$0xff] }
 0x45f   :  { %7903 = vmatpush1.bf16.msra.mxu1 %v9183_v4  ;;  %7863 = vmatprep.subr.bf16.mxu0 %v9064_v27  ;;  %v9215_v4 = vcombine.low %v1068_v53, %v1072_v23  ;;  %v9096_v27 = vcombine.high %v948_v61, %v952_v18  ;;  %v1100_v16 = vld [vmem:[#allocation10 + $0x6c8] sm:$0xff]  ;;  %v9239_v53 = vcombine.low %v1092_v0, %v1096_v39 }
 0x460   :  { %7904 = vmatprep.subr.bf16.mxu1 %v9192_v21  ;;  %v9224_v21 = vcombine.high %v1076_v26, %v1080_v63 }
 0x462   :  { %7864 = vmatpush1.bf16.msra.mxu0 %v9063_v22  ;;  %v9095_v22 = vcombine.low %v948_v61, %v952_v18  ;;  %v988_v61 = vld [vmem:[#allocation10 + $0x348] sm:$0xff] }
 0x463   :  { %7905 = vmatpush1.bf16.msra.mxu1 %v9191_v28  ;;  %7865 = vmatprep.subr.bf16.mxu0 %v9072_v11  ;;  %v9223_v28 = vcombine.low %v1076_v26, %v1080_v63  ;;  %v9104_v11 = vcombine.high %v956_v15, %v960_v35  ;;  %v992_v18 = vld [vmem:[#allocation10 + $0x368] sm:$0xff] }
 0x464   :  { %v5001_v44 = vpop.f32.mrb[32].mxu0  ;;  %7906 = vmatprep.subr.bf16.mxu1 %v9200_v33  ;;  %v9232_v33 = vcombine.high %v1084_v29, %v1088_v47  ;;  %v1116_v26 = vld [vmem:[#allocation10 + $0x748] sm:$0xff] }
 0x465   :  { %v5042_v54 = vpop.f32.mrb[32].mxu1  ;;  %v5003_v51 = vpop.f32.mrb[33].mxu0  ;;  %v1120_v63 = vld [vmem:[#allocation10 + $0x768] sm:$0xff] }
 0x466   :  { %v10197_v2 = vadd.f32 %v5042_v54, %v5001_v44  ;;  %v5044_v55 = vpop.f32.mrb[33].mxu1  ;;  %v5005_v24 = vpop.f32.mrb[34].mxu0  ;;  %7866 = vmatpush1.bf16.msra.mxu0 %v9071_v20  ;;  %v9103_v20 = vcombine.low %v956_v15, %v960_v35  ;;  %v9240_v44 = vcombine.high %v1092_v0, %v1096_v39  ;;  %v1104_v54 = vld [vmem:[#allocation10 + $0x6e8] sm:$0xff] }
 0x467   :  { %v10199_v10 = vadd.f32 %v5044_v55, %v5003_v51  ;;  %v5046_v36 = vpop.f32.mrb[34].mxu1  ;;  %7907 = vmatpush1.bf16.msra.mxu1 %v9199_v45  ;;  %v5006_v17 = vpop.f32.mrb[35].mxu0  ;;  %7867 = vmatprep.subr.bf16.mxu0 %v9080_v42  ;;  %v9231_v45 = vcombine.low %v1084_v29, %v1088_v47  ;;  %v9112_v42 = vcombine.high %v964_v62, %v968_v37  ;;  %v980_v24 = vld [vmem:[#allocation10 + $0x308] sm:$0xff] }
 0x468   :  { %v5047_v52 = vpop.f32.mrb[35].mxu1  ;;  %7908 = vmatprep.subr.bf16.mxu1 %v9208_v48  ;;  %v972_v48 = vld [vmem:[#allocation10 + $0x2c8] sm:$0xff]  ;;  %v9111_v51 = vcombine.low %v964_v62, %v968_v37  ;;  %v9248_v55 = vcombine.high %v1100_v16, %v1104_v54 }
 0x469   :  { %v9120_v23 = vcombine.high %v972_v48, %v976_v50  ;;  %v1108_v36 = vld [vmem:[#allocation10 + $0x708] sm:$0xff] }
 0x46a   :  { %7868 = vmatpush1.bf16.msra.mxu0 %v9079_v12  ;;  %v984_v12 = vld [vmem:[#allocation10 + $0x328] sm:$0xff] }
 0x46b   :  { %7909 = vmatpush1.bf16.msra.mxu1 %v9207_v25  ;;  %7869 = vmatprep.subr.bf16.mxu0 %v9088_v31  ;;  %v1112_v17 = vld [vmem:[#allocation10 + $0x728] sm:$0xff]  ;;  %v9119_v25 = vcombine.low %v972_v48, %v976_v50  ;;  %v9247_v31 = vcombine.low %v1100_v16, %v1104_v54  ;;  %v9128_v52 = vcombine.high %v980_v24, %v984_v12 }
 0x46c   :  { %7910 = vmatprep.subr.bf16.mxu1 %v9216_v56  ;;  %v9256_v56 = vcombine.high %v1108_v36, %v1112_v17  ;;  %v996_v15 = vld [vmem:[#allocation10 + $0x388] sm:$0xff] }
 0x46d   :  { %v1000_v35 = vld [vmem:[#allocation10 + $0x3a8] sm:$0xff] }
 0x46e   :  { %7870 = vmatpush1.bf16.msra.mxu0 %v9087_v1  ;;  %v9127_v1 = vcombine.low %v980_v24, %v984_v12  ;;  %v1124_v29 = vld [vmem:[#allocation10 + $0x788] sm:$0xff] }
 0x46f   :  { %7911 = vmatpush1.bf16.msra.mxu1 %v9215_v4  ;;  %7871 = vmatprep.subr.bf16.mxu0 %v9096_v27  ;;  %v9255_v4 = vcombine.low %v1108_v36, %v1112_v17  ;;  %v9136_v27 = vcombine.high %v988_v61, %v992_v18  ;;  %v1128_v47 = vld [vmem:[#allocation10 + $0x7a8] sm:$0xff] }
 0x470   :  { %7912 = vmatprep.subr.bf16.mxu1 %v9224_v21  ;;  %v9264_v21 = vcombine.high %v1116_v26, %v1120_v63  ;;  %v1004_v62 = vld [vmem:[#allocation10 + $0x3c8] sm:$0xff] }
 0x471   :  { %v1008_v37 = vld [vmem:[#allocation10 + $0x3e8] sm:$0xff] }
 0x472   :  { %7872 = vmatpush1.bf16.msra.mxu0 %v9095_v22  ;;  %v9135_v22 = vcombine.low %v988_v61, %v992_v18  ;;  %v1132_v0 = vld [vmem:[#allocation10 + $0x7c8] sm:$0xff] }
 0x473   :  { %7913 = vmatpush1.bf16.msra.mxu1 %v9223_v28  ;;  %7873 = vmatprep.subr.bf16.mxu0 %v9104_v11  ;;  %v9263_v28 = vcombine.low %v1116_v26, %v1120_v63  ;;  %v9144_v11 = vcombine.high %v996_v15, %v1000_v35  ;;  %v1136_v39 = vld [vmem:[#allocation10 + $0x7e8] sm:$0xff] }
 0x474   :  { %7914 = vmatprep.subr.bf16.mxu1 %v9232_v33  ;;  %v9272_v33 = vcombine.high %v1124_v29, %v1128_v47  ;;  %v1140_v48 = vld [vmem:[#allocation10 + $0x808] sm:$0xff] }
 0x475   :  { %v1144_v50 = vld [vmem:[#allocation10 + $0x828] sm:$0xff] }
 0x476   :  { %7874 = vmatpush1.bf16.msra.mxu0 %v9103_v20  ;;  %v9143_v20 = vcombine.low %v996_v15, %v1000_v35  ;;  %v1268_v16 = vld [vmem:[#allocation10 + $0xc08] sm:$0xff]  ;;  %v9287_v36 = vcombine.low %v1140_v48, %v1144_v50 }
 0x477   :  { %7915 = vmatpush1.bf16.msra.mxu1 %v9231_v45  ;;  %7875 = vmatprep.subr.bf16.mxu0 %v9112_v42  ;;  %v9271_v45 = vcombine.low %v1124_v29, %v1128_v47  ;;  %v9152_v42 = vcombine.high %v1004_v62, %v1008_v37  ;;  %v1272_v54 = vld [vmem:[#allocation10 + $0xc28] sm:$0xff] }
 0x478   :  { %7916 = vmatprep.subr.bf16.mxu1 %v9240_v44  ;;  %v9280_v44 = vcombine.high %v1132_v0, %v1136_v39  ;;  %v1148_v24 = vld [vmem:[#allocation10 + $0x848] sm:$0xff] }
 0x479   :  { %v1152_v12 = vld [vmem:[#allocation10 + $0x868] sm:$0xff] }
 0x47a   :  { %7876 = vmatpush1.bf16.msra.mxu0 %v9111_v51  ;;  %v9151_v51 = vcombine.low %v1004_v62, %v1008_v37  ;;  %v1276_v17 = vld [vmem:[#allocation10 + $0xc48] sm:$0xff] }
 0x47b   :  { %7917 = vmatpush1.bf16.msra.mxu1 %v9239_v53  ;;  %7877 = vmatprep.subr.bf16.mxu0 %v9120_v23  ;;  %v9279_v53 = vcombine.low %v1132_v0, %v1136_v39  ;;  %v9288_v23 = vcombine.high %v1140_v48, %v1144_v50  ;;  %v1160_v61 = vld [vmem:[#allocation10 + $0x8a8] sm:$0xff] }
 0x47c   :  { %7918 = vmatprep.subr.bf16.mxu1 %v9248_v55  ;;  %v9416_v55 = vcombine.high %v1268_v16, %v1272_v54  ;;  %v1284_v26 = vld [vmem:[#allocation10 + $0xc88] sm:$0xff] }
 0x47d   :  { %v1288_v63 = vld [vmem:[#allocation10 + $0xca8] sm:$0xff] }
 0x47e   :  { %7878 = vmatpush1.bf16.msra.mxu0 %v9119_v25  ;;  %v1280_v25 = vld [vmem:[#allocation10 + $0xc68] sm:$0xff] }
 0x47f   :  { %7919 = vmatpush1.bf16.msra.mxu1 %v9247_v31  ;;  %7879 = vmatprep.subr.bf16.mxu0 %v9128_v52  ;;  %v9415_v31 = vcombine.low %v1268_v16, %v1272_v54  ;;  %v9296_v52 = vcombine.high %v1148_v24, %v1152_v12  ;;  %v9424_v18 = vcombine.high %v1276_v17, %v1280_v25  ;;  %v1164_v15 = vld [vmem:[#allocation10 + $0x8c8] sm:$0xff] }
 0x480   :  { %7920 = vmatprep.subr.bf16.mxu1 %v9256_v56  ;;  %v1156_v56 = vld [vmem:[#allocation10 + $0x888] sm:$0xff] }
 0x481   :  { %v1168_v35 = vld [vmem:[#allocation10 + $0x8e8] sm:$0xff] }
 0x482   :  { %7880 = vmatpush1.bf16.msra.mxu0 %v9127_v1  ;;  %v9295_v1 = vcombine.low %v1148_v24, %v1152_v12  ;;  %v1292_v29 = vld [vmem:[#allocation10 + $0xcc8] sm:$0xff] }
 0x483   :  { %7921 = vmatpush1.bf16.msra.mxu1 %v9255_v4  ;;  %7881 = vmatprep.subr.bf16.mxu0 %v9136_v27  ;;  %v9423_v4 = vcombine.low %v1276_v17, %v1280_v25  ;;  %v9304_v27 = vcombine.high %v1156_v56, %v1160_v61  ;;  %v1296_v47 = vld [vmem:[#allocation10 + $0xce8] sm:$0xff] }
 0x484   :  { %7922 = vmatprep.subr.bf16.mxu1 %v9264_v21  ;;  %v9432_v21 = vcombine.high %v1284_v26, %v1288_v63  ;;  %v1172_v62 = vld [vmem:[#allocation10 + $0x908] sm:$0xff] }
 0x485   :  { %v1176_v37 = vld [vmem:[#allocation10 + $0x928] sm:$0xff] }
 0x486   :  { %7882 = vmatpush1.bf16.msra.mxu0 %v9135_v22  ;;  %v9303_v22 = vcombine.low %v1156_v56, %v1160_v61  ;;  %v1300_v0 = vld [vmem:[#allocation10 + $0xd08] sm:$0xff] }
 0x487   :  { %7923 = vmatpush1.bf16.msra.mxu1 %v9263_v28  ;;  %7883 = vmatprep.subr.bf16.mxu0 %v9144_v11  ;;  %v9431_v28 = vcombine.low %v1284_v26, %v1288_v63  ;;  %v9312_v11 = vcombine.high %v1164_v15, %v1168_v35  ;;  %v1304_v39 = vld [vmem:[#allocation10 + $0xd28] sm:$0xff] }
 0x488   :  { %7924 = vmatprep.subr.bf16.mxu1 %v9272_v33  ;;  %v9440_v33 = vcombine.high %v1292_v29, %v1296_v47  ;;  %v1180_v48 = vld [vmem:[#allocation10 + $0x948] sm:$0xff] }
 0x489   :  { %v1184_v50 = vld [vmem:[#allocation10 + $0x968] sm:$0xff] }
 0x48a   :  { %7884 = vmatpush1.bf16.msra.mxu0 %v9143_v20  ;;  %v9311_v20 = vcombine.low %v1164_v15, %v1168_v35  ;;  %v1308_v16 = vld [vmem:[#allocation10 + $0xd48] sm:$0xff]  ;;  %v9327_v25 = vcombine.low %v1180_v48, %v1184_v50 }
 0x48b   :  { %7925 = vmatpush1.bf16.msra.mxu1 %v9271_v45  ;;  %7885 = vmatprep.subr.bf16.mxu0 %v9152_v42  ;;  %v9439_v45 = vcombine.low %v1292_v29, %v1296_v47  ;;  %v9320_v42 = vcombine.high %v1172_v62, %v1176_v37  ;;  %v1312_v54 = vld [vmem:[#allocation10 + $0xd68] sm:$0xff] }
 0x48c   :  { %7926 = vmatprep.subr.bf16.mxu1 %v9280_v44  ;;  %v9448_v44 = vcombine.high %v1300_v0, %v1304_v39  ;;  %v1188_v24 = vld [vmem:[#allocation10 + $0x988] sm:$0xff] }
 0x48d   :  { %v1192_v12 = vld [vmem:[#allocation10 + $0x9a8] sm:$0xff] }
 0x48e   :  { %7886 = vmatpush1.bf16.msra.mxu0 %v9151_v51  ;;  %v9319_v51 = vcombine.low %v1172_v62, %v1176_v37  ;;  %v1320_v17 = vld [vmem:[#allocation10 + $0xda8] sm:$0xff]  ;;  %v9335_v47 = vcombine.low %v1188_v24, %v1192_v12 }
 0x48f   :  { %7927 = vmatpush1.bf16.msra.mxu1 %v9279_v53  ;;  %7937 = vmatprep.subr.bf16.mxu0 %v9288_v23  ;;  %v9447_v53 = vcombine.low %v1300_v0, %v1304_v39  ;;  %v9328_v23 = vcombine.high %v1180_v48, %v1184_v50  ;;  %v1200_v26 = vld [vmem:[#allocation10 + $0x9e8] sm:$0xff] }
 0x490   :  { %7978 = vmatprep.subr.bf16.mxu1 %v9416_v55  ;;  %v9456_v55 = vcombine.high %v1308_v16, %v1312_v54  ;;  %v1204_v39 = vld [vmem:[#allocation10 + $0xa08] sm:$0xff] }
 0x491   :  { %7888 = vmatmul.mubr.bf16.vlgmr.msra.gmra.mrb[48].mxu0 %v10161_v46 }
 0x492   :  { %7929 = vmatmul.mubr.bf16.vlgmr.msra.gmra.mrb[48].mxu1 %v10165_v30  ;;  %7938 = vmatpush1.bf16.msra.mxu0 %v9287_v36  ;;  %v1316_v36 = vld [vmem:[#allocation10 + $0xd88] sm:$0xff] }
 0x493   :  { %7969 = vmatprep.mubr.bf16.mxu0 %v10169_v49  ;;  %7979 = vmatpush1.bf16.msra.mxu1 %v9415_v31  ;;  %v9455_v31 = vcombine.low %v1308_v16, %v1312_v54  ;;  %v9464_v61 = vcombine.high %v1316_v36, %v1320_v17  ;;  %v1212_v16 = vld [vmem:[#allocation10 + $0xa48] sm:$0xff] }
 0x494   :  { %8010 = vmatprep.mubr.bf16.mxu1 %v10174_v38  ;;  %7939 = vmatprep.subr.bf16.mxu0 %v9296_v52  ;;  %v9336_v52 = vcombine.high %v1188_v24, %v1192_v12  ;;  %v1216_v54 = vld [vmem:[#allocation10 + $0xa68] sm:$0xff] }
 0x495   :  { %7980 = vmatprep.subr.bf16.mxu1 %v9424_v18  ;;  %v1196_v18 = vld [vmem:[#allocation10 + $0x9c8] sm:$0xff]  ;;  %v9360_v24 = vcombine.high %v1212_v16, %v1216_v54 }
 0x496   :  { %7940 = vmatpush1.bf16.msra.mxu0 %v9295_v1  ;;  %v9344_v62 = vcombine.high %v1196_v18, %v1200_v26 }
 0x497   :  { %7981 = vmatpush1.bf16.msra.mxu1 %v9423_v4  ;;  %7941 = vmatprep.subr.bf16.mxu0 %v9304_v27  ;;  %v1324_v27 = vld [vmem:[#allocation10 + $0xdc8] sm:$0xff] }
 0x498   :  { %7982 = vmatprep.subr.bf16.mxu1 %v9432_v21  ;;  %v1328_v21 = vld [vmem:[#allocation10 + $0xde8] sm:$0xff] }
 0x499   :  { %v9472_v0 = vcombine.high %v1324_v27, %v1328_v21 }
 0x49a   :  { %7942 = vmatpush1.bf16.msra.mxu0 %v9303_v22 }
 0x49b   :  { %7983 = vmatpush1.bf16.msra.mxu1 %v9431_v28  ;;  %7943 = vmatprep.subr.bf16.mxu0 %v9312_v11 }
 0x49c   :  { %7984 = vmatprep.subr.bf16.mxu1 %v9440_v33  ;;  %v9463_v33 = vcombine.low %v1316_v36, %v1320_v17  ;;  %v1220_v36 = vld [vmem:[#allocation10 + $0xa88] sm:$0xff] }
 0x49d   :  { %v1224_v17 = vld [vmem:[#allocation10 + $0xaa8] sm:$0xff] }
 0x49e   :  { %7944 = vmatpush1.bf16.msra.mxu0 %v9311_v20  ;;  %v1208_v20 = vld [vmem:[#allocation10 + $0xa28] sm:$0xff] }
 0x49f   :  { %7985 = vmatpush1.bf16.msra.mxu1 %v9439_v45  ;;  %7945 = vmatprep.subr.bf16.mxu0 %v9320_v42  ;;  %v1336_v45 = vld [vmem:[#allocation10 + $0xe28] sm:$0xff]  ;;  %v9343_v42 = vcombine.low %v1196_v18, %v1200_v26  ;;  %v9352_v48 = vcombine.high %v1204_v39, %v1208_v20 }
 0x4a0   :  { %7986 = vmatprep.subr.bf16.mxu1 %v9448_v44  ;;  %v9471_v44 = vcombine.low %v1324_v27, %v1328_v21  ;;  %v1228_v26 = vld [vmem:[#allocation10 + $0xac8] sm:$0xff]  ;;  %v9367_v27 = vcombine.low %v1220_v36, %v1224_v17 }
 0x4a2   :  { %7946 = vmatpush1.bf16.msra.mxu0 %v9319_v51  ;;  %v1340_v51 = vld [vmem:[#allocation10 + $0xe48] sm:$0xff] }
 0x4a3   :  { %7987 = vmatpush1.bf16.msra.mxu1 %v9447_v53  ;;  %7947 = vmatprep.subr.bf16.mxu0 %v9328_v23  ;;  %v1344_v53 = vld [vmem:[#allocation10 + $0xe68] sm:$0xff]  ;;  %v9351_v23 = vcombine.low %v1204_v39, %v1208_v20 }
 0x4a4   :  { %v5083_v56 = vpop.f32.mrb[36].mxu0  ;;  %7988 = vmatprep.subr.bf16.mxu1 %v9456_v55  ;;  %v9488_v12 = vcombine.high %v1340_v51, %v1344_v53  ;;  %v1244_v39 = vld [vmem:[#allocation10 + $0xb48] sm:$0xff] }
 0x4a5   :  { %v5084_v63 = vadd.f32 %v5083_v56, %v10197_v2  ;;  %v5124_v1 = vpop.f32.mrb[36].mxu1  ;;  %v5085_v4 = vpop.f32.mrb[37].mxu0  ;;  %v9487_v56 = vcombine.low %v1340_v51, %v1344_v53  ;;  %v1248_v20 = vld [vmem:[#allocation10 + $0xb68] sm:$0xff] }
 0x4a6   :  { %v5086_v15 = vadd.f32 %v5085_v4, %v10199_v10  ;;  %v5126_v35 = vpop.f32.mrb[37].mxu1  ;;  %v5087_v29 = vpop.f32.mrb[38].mxu0  ;;  %7948 = vmatpush1.bf16.msra.mxu0 %v9327_v25  ;;  %v1332_v10 = vld [vmem:[#allocation10 + $0xe08] sm:$0xff] }
 0x4a7   :  { %v10207_v22 = vadd.f32 %v5124_v1, %v5084_v63  ;;  %v5128_v28 = vpop.f32.mrb[38].mxu1  ;;  %7989 = vmatpush1.bf16.msra.mxu1 %v9455_v31  ;;  %v5088_v11 = vpop.f32.mrb[39].mxu0  ;;  %7949 = vmatprep.subr.bf16.mxu0 %v9336_v52  ;;  %v9480_v50 = vcombine.high %v1332_v10, %v1336_v45  ;;  %v9479_v55 = vcombine.low %v1332_v10, %v1336_v45  ;;  %v1348_v25 = vld [vmem:[#allocation10 + $0xe88] sm:$0xff] }
 0x4a8   :  { %v10209_v37 = vadd.f32 %v5126_v35, %v5086_v15  ;;  %v5129_v2 = vpop.f32.mrb[39].mxu1  ;;  %7990 = vmatprep.subr.bf16.mxu1 %v9464_v61  ;;  %v1352_v31 = vld [vmem:[#allocation10 + $0xea8] sm:$0xff]  ;;  %v9359_v52 = vcombine.low %v1212_v16, %v1216_v54  ;;  %v9368_v61 = vcombine.high %v1220_v36, %v1224_v17 }
 0x4a9   :  { %v9496_v18 = vcombine.high %v1348_v25, %v1352_v31  ;;  %v1232_v63 = vld [vmem:[#allocation10 + $0xae8] sm:$0xff]  ;;  %v9495_v21 = vcombine.low %v1348_v25, %v1352_v31 }
 0x4aa   :  { %7950 = vmatpush1.bf16.msra.mxu0 %v9335_v47  ;;  %v1356_v1 = vld [vmem:[#allocation10 + $0xec8] sm:$0xff]  ;;  %v9376_v15 = vcombine.high %v1228_v26, %v1232_v63 }
 0x4ab   :  { %7991 = vmatpush1.bf16.msra.mxu1 %v9463_v33  ;;  %7951 = vmatprep.subr.bf16.mxu0 %v9344_v62  ;;  %v1360_v4 = vld [vmem:[#allocation10 + $0xee8] sm:$0xff]  ;;  %v9375_v33 = vcombine.low %v1228_v26, %v1232_v63  ;;  %v885_v26 = vld [vmem:[#allocation10 + $0x10] sm:$0xff] }
 0x4ac   :  { %7992 = vmatprep.subr.bf16.mxu1 %v9472_v0  ;;  %v9504_v35 = vcombine.high %v1356_v1, %v1360_v4  ;;  %v1236_v29 = vld [vmem:[#allocation10 + $0xb08] sm:$0xff]  ;;  %v9503_v62 = vcombine.low %v1356_v1, %v1360_v4  ;;  %v889_v63 = vld [vmem:[#allocation10 + $0x30] sm:$0xff] }
 0x4ad   :  { %v1240_v47 = vld [vmem:[#allocation10 + $0xb28] sm:$0xff]  ;;  %v1013_v1 = vld [vmem:[#allocation10 + $0x410] sm:$0xff] }
 0x4ae   :  { %7952 = vmatpush1.bf16.msra.mxu0 %v9343_v42  ;;  %v1364_v28 = vld [vmem:[#allocation10 + $0xf08] sm:$0xff]  ;;  %v9384_v2 = vcombine.high %v1236_v29, %v1240_v47  ;;  %v9383_v42 = vcombine.low %v1236_v29, %v1240_v47  ;;  %v1017_v4 = vld [vmem:[#allocation10 + $0x430] sm:$0xff] }
 0x4af   :  { %7993 = vmatpush1.bf16.msra.mxu1 %v9471_v44  ;;  %7953 = vmatprep.subr.bf16.mxu0 %v9352_v48  ;;  %v1368_v11 = vld [vmem:[#allocation10 + $0xf28] sm:$0xff]  ;;  %v9392_v48 = vcombine.high %v1244_v39, %v1248_v20  ;;  %v893_v29 = vld [vmem:[#allocation10 + $0x50] sm:$0xff] }
 0x4b0   :  { %7994 = vmatprep.subr.bf16.mxu1 %v9480_v50  ;;  %v9512_v0 = vcombine.high %v1364_v28, %v1368_v11  ;;  %v1372_v10 = vld [vmem:[#allocation10 + $0xf48] sm:$0xff]  ;;  %v9511_v44 = vcombine.low %v1364_v28, %v1368_v11  ;;  %v897_v47 = vld [vmem:[#allocation10 + $0x70] sm:$0xff]  ;;  %v9033_v28 = vcombine.low %v885_v26, %v889_v63 }
 0x4b1   :  { %v1376_v45 = vld [vmem:[#allocation10 + $0xf68] sm:$0xff]  ;;  %v1021_v11 = vld [vmem:[#allocation10 + $0x450] sm:$0xff] }
 0x4b2   :  { %7954 = vmatpush1.bf16.msra.mxu0 %v9351_v23  ;;  %v9520_v50 = vcombine.high %v1372_v10, %v1376_v45  ;;  %v1252_v16 = vld [vmem:[#allocation10 + $0xb88] sm:$0xff]  ;;  %v9391_v23 = vcombine.low %v1244_v39, %v1248_v20  ;;  %v905_v39 = vld [vmem:[#allocation10 + $0xb0] sm:$0xff] }
 0x4b3   :  { %7995 = vmatpush1.bf16.msra.mxu1 %v9479_v55  ;;  %7955 = vmatprep.subr.bf16.mxu0 %v9360_v24  ;;  %v1256_v54 = vld [vmem:[#allocation10 + $0xba8] sm:$0xff]  ;;  %v9519_v55 = vcombine.low %v1372_v10, %v1376_v45  ;;  %v1029_v10 = vld [vmem:[#allocation10 + $0x490] sm:$0xff] }
 0x4b4   :  { %7996 = vmatprep.subr.bf16.mxu1 %v9488_v12  ;;  %v1380_v51 = vld [vmem:[#allocation10 + $0xf88] sm:$0xff]  ;;  %v9400_v24 = vcombine.high %v1252_v16, %v1256_v54  ;;  %v1033_v45 = vld [vmem:[#allocation10 + $0x4b0] sm:$0xff] }
 0x4b5   :  { %v1384_v53 = vld [vmem:[#allocation10 + $0xfa8] sm:$0xff] }
 0x4b6   :  { %7956 = vmatpush1.bf16.msra.mxu0 %v9359_v52  ;;  %v9528_v12 = vcombine.high %v1380_v51, %v1384_v53  ;;  %v1260_v36 = vld [vmem:[#allocation10 + $0xbc8] sm:$0xff]  ;;  %v9399_v52 = vcombine.low %v1252_v16, %v1256_v54  ;;  %v909_v16 = vld [vmem:[#allocation10 + $0xd0] sm:$0xff] }
 0x4b7   :  { %7997 = vmatpush1.bf16.msra.mxu1 %v9487_v56  ;;  %7957 = vmatprep.subr.bf16.mxu0 %v9368_v61  ;;  %v1264_v17 = vld [vmem:[#allocation10 + $0xbe8] sm:$0xff]  ;;  %v9527_v56 = vcombine.low %v1380_v51, %v1384_v53  ;;  %v913_v54 = vld [vmem:[#allocation10 + $0xf0] sm:$0xff] }
 0x4b8   :  { %7998 = vmatprep.subr.bf16.mxu1 %v9496_v18  ;;  %v1388_v25 = vld [vmem:[#allocation10 + $0xfc8] sm:$0xff]  ;;  %v9408_v61 = vcombine.high %v1260_v36, %v1264_v17  ;;  %v1037_v51 = vld [vmem:[#allocation10 + $0x4d0] sm:$0xff] }
 0x4b9   :  { %v1392_v31 = vld [vmem:[#allocation10 + $0xfe8] sm:$0xff]  ;;  %v1041_v53 = vld [vmem:[#allocation10 + $0x4f0] sm:$0xff] }
 0x4ba   :  { %7958 = vmatpush1.bf16.msra.mxu0 %v9367_v27  ;;  %v9536_v18 = vcombine.high %v1388_v25, %v1392_v31  ;;  %v9407_v27 = vcombine.low %v1260_v36, %v1264_v17  ;;  %v917_v36 = vld [vmem:[#allocation10 + $0x110] sm:$0xff] }
 0x4bb   :  { %7999 = vmatpush1.bf16.msra.mxu1 %v9495_v21  ;;  %7959 = vmatprep.subr.bf16.mxu0 %v9376_v15  ;;  %v9535_v21 = vcombine.low %v1388_v25, %v1392_v31  ;;  %v9034_v15 = vcombine.high %v885_v26, %v889_v63  ;;  %v921_v17 = vld [vmem:[#allocation10 + $0x130] sm:$0xff] }
 0x4bc   :  { %8000 = vmatprep.subr.bf16.mxu1 %v9504_v35  ;;  %v9162_v35 = vcombine.high %v1013_v1, %v1017_v4  ;;  %v1045_v25 = vld [vmem:[#allocation10 + $0x510] sm:$0xff] }
 0x4bd   :  { %v1049_v31 = vld [vmem:[#allocation10 + $0x530] sm:$0xff] }
 0x4be   :  { %7960 = vmatpush1.bf16.msra.mxu0 %v9375_v33  ;;  %v1025_v33 = vld [vmem:[#allocation10 + $0x470] sm:$0xff] }
 0x4bf   :  { %8001 = vmatpush1.bf16.msra.mxu1 %v9503_v62  ;;  %7961 = vmatprep.subr.bf16.mxu0 %v9384_v2  ;;  %v9161_v62 = vcombine.low %v1013_v1, %v1017_v4  ;;  %v9042_v2 = vcombine.high %v893_v29, %v897_v47  ;;  %v9170_v20 = vcombine.high %v1021_v11, %v1025_v33  ;;  %v925_v26 = vld [vmem:[#allocation10 + $0x150] sm:$0xff] }
 0x4c0   :  { %8002 = vmatprep.subr.bf16.mxu1 %v9512_v0  ;;  %v901_v0 = vld [vmem:[#allocation10 + $0x90] sm:$0xff] }
 0x4c1   :  { %v929_v63 = vld [vmem:[#allocation10 + $0x170] sm:$0xff] }
 0x4c2   :  { %7962 = vmatpush1.bf16.msra.mxu0 %v9383_v42  ;;  %v9041_v42 = vcombine.low %v893_v29, %v897_v47  ;;  %v1053_v1 = vld [vmem:[#allocation10 + $0x550] sm:$0xff] }
 0x4c3   :  { %8003 = vmatpush1.bf16.msra.mxu1 %v9511_v44  ;;  %7963 = vmatprep.subr.bf16.mxu0 %v9392_v48  ;;  %v9169_v44 = vcombine.low %v1021_v11, %v1025_v33  ;;  %v9050_v48 = vcombine.high %v901_v0, %v905_v39  ;;  %v1057_v4 = vld [vmem:[#allocation10 + $0x570] sm:$0xff]  ;;  %v9073_v33 = vcombine.low %v925_v26, %v929_v63 }
 0x4c4   :  { %8004 = vmatprep.subr.bf16.mxu1 %v9520_v50  ;;  %v9178_v50 = vcombine.high %v1029_v10, %v1033_v45  ;;  %v933_v29 = vld [vmem:[#allocation10 + $0x190] sm:$0xff] }
 0x4c5   :  { %v937_v47 = vld [vmem:[#allocation10 + $0x1b0] sm:$0xff] }
 0x4c6   :  { %7964 = vmatpush1.bf16.msra.mxu0 %v9391_v23  ;;  %v9049_v23 = vcombine.low %v901_v0, %v905_v39  ;;  %v1065_v11 = vld [vmem:[#allocation10 + $0x5b0] sm:$0xff] }
 0x4c7   :  { %8005 = vmatpush1.bf16.msra.mxu1 %v9519_v55  ;;  %7965 = vmatprep.subr.bf16.mxu0 %v9400_v24  ;;  %v9177_v55 = vcombine.low %v1029_v10, %v1033_v45  ;;  %v9058_v24 = vcombine.high %v909_v16, %v913_v54  ;;  %v945_v10 = vld [vmem:[#allocation10 + $0x1f0] sm:$0xff] }
 0x4c8   :  { %8006 = vmatprep.subr.bf16.mxu1 %v9528_v12  ;;  %v9186_v12 = vcombine.high %v1037_v51, %v1041_v53 }
 0x4ca   :  { %7966 = vmatpush1.bf16.msra.mxu0 %v9399_v52  ;;  %v9057_v52 = vcombine.low %v909_v16, %v913_v54 }
 0x4cb   :  { %8007 = vmatpush1.bf16.msra.mxu1 %v9527_v56  ;;  %7967 = vmatprep.subr.bf16.mxu0 %v9408_v61  ;;  %v9185_v56 = vcombine.low %v1037_v51, %v1041_v53  ;;  %v9066_v61 = vcombine.high %v917_v36, %v921_v17  ;;  %v9081_v53 = vcombine.low %v933_v29, %v937_v47 }
 0x4cc   :  { %8008 = vmatprep.subr.bf16.mxu1 %v9536_v18  ;;  %v9194_v18 = vcombine.high %v1045_v25, %v1049_v31 }
 0x4ce   :  { %7968 = vmatpush1.bf16.msra.mxu0 %v9407_v27  ;;  %v9065_v27 = vcombine.low %v917_v36, %v921_v17 }
 0x4cf   :  { %8009 = vmatpush1.bf16.msra.mxu1 %v9535_v21  ;;  %8019 = vmatprep.subr.bf16.mxu0 %v9034_v15  ;;  %v9193_v21 = vcombine.low %v1045_v25, %v1049_v31  ;;  %v9074_v15 = vcombine.high %v925_v26, %v929_v63  ;;  %v949_v31 = vld [vmem:[#allocation10 + $0x210] sm:$0xff] }
 0x4d0   :  { %8060 = vmatprep.subr.bf16.mxu1 %v9162_v35  ;;  %v9202_v35 = vcombine.high %v1053_v1, %v1057_v4 }
 0x4d1   :  { %7970 = vmatmul.mubr.bf16.vlgmr.msra.gmra.mrb[52].mxu0 %v10187_v43 }
 0x4d2   :  { %8011 = vmatmul.mubr.bf16.vlgmr.msra.gmra.mrb[52].mxu1 %v10191_v41  ;;  %8020 = vmatpush1.bf16.msra.mxu0 %v9033_v28  ;;  %v1061_v28 = vld [vmem:[#allocation10 + $0x590] sm:$0xff] }
 0x4d3   :  { %8051 = vmatprep.mubr.bf16.mxu0 %v10145_v14  ;;  %8061 = vmatpush1.bf16.msra.mxu1 %v9161_v62  ;;  %v9201_v62 = vcombine.low %v1053_v1, %v1057_v4  ;;  %v9210_v39 = vcombine.high %v1061_v28, %v1065_v11  ;;  %v957_v1 = vld [vmem:[#allocation10 + $0x250] sm:$0xff] }
 0x4d4   :  { %8092 = vmatprep.mubr.bf16.mxu1 %v10150_v13  ;;  %8021 = vmatprep.subr.bf16.mxu0 %v9042_v2  ;;  %v9082_v2 = vcombine.high %v933_v29, %v937_v47  ;;  %v961_v4 = vld [vmem:[#allocation10 + $0x270] sm:$0xff] }
 0x4d5   :  { %8062 = vmatprep.subr.bf16.mxu1 %v9170_v20  ;;  %v941_v20 = vld [vmem:[#allocation10 + $0x1d0] sm:$0xff]  ;;  %v9106_v29 = vcombine.high %v957_v1, %v961_v4 }
 0x4d6   :  { %8022 = vmatpush1.bf16.msra.mxu0 %v9041_v42  ;;  %v9090_v36 = vcombine.high %v941_v20, %v945_v10 }
 0x4d7   :  { %8063 = vmatpush1.bf16.msra.mxu1 %v9169_v44  ;;  %8023 = vmatprep.subr.bf16.mxu0 %v9050_v48  ;;  %v1069_v48 = vld [vmem:[#allocation10 + $0x5d0] sm:$0xff] }
 0x4d8   :  { %8064 = vmatprep.subr.bf16.mxu1 %v9178_v50  ;;  %v1073_v50 = vld [vmem:[#allocation10 + $0x5f0] sm:$0xff] }
 0x4d9   :  { %v9218_v25 = vcombine.high %v1069_v48, %v1073_v50 }
 0x4da   :  { %8024 = vmatpush1.bf16.msra.mxu0 %v9049_v23 }
 0x4db   :  { %8065 = vmatpush1.bf16.msra.mxu1 %v9177_v55  ;;  %8025 = vmatprep.subr.bf16.mxu0 %v9058_v24 }
 0x4dc   :  { %8066 = vmatprep.subr.bf16.mxu1 %v9186_v12  ;;  %v9209_v12 = vcombine.low %v1061_v28, %v1065_v11  ;;  %v965_v28 = vld [vmem:[#allocation10 + $0x290] sm:$0xff] }
 0x4dd   :  { %v969_v11 = vld [vmem:[#allocation10 + $0x2b0] sm:$0xff] }
 0x4de   :  { %8026 = vmatpush1.bf16.msra.mxu0 %v9057_v52  ;;  %v953_v52 = vld [vmem:[#allocation10 + $0x230] sm:$0xff] }
 0x4df   :  { %8067 = vmatpush1.bf16.msra.mxu1 %v9185_v56  ;;  %8027 = vmatprep.subr.bf16.mxu0 %v9066_v61  ;;  %v1081_v56 = vld [vmem:[#allocation10 + $0x630] sm:$0xff]  ;;  %v9089_v61 = vcombine.low %v941_v20, %v945_v10  ;;  %v9098_v26 = vcombine.high %v949_v31, %v953_v52 }
 0x4e0   :  { %8068 = vmatprep.subr.bf16.mxu1 %v9194_v18  ;;  %v9217_v18 = vcombine.low %v1069_v48, %v1073_v50  ;;  %v973_v10 = vld [vmem:[#allocation10 + $0x2d0] sm:$0xff]  ;;  %v9113_v48 = vcombine.low %v965_v28, %v969_v11 }
 0x4e2   :  { %8028 = vmatpush1.bf16.msra.mxu0 %v9065_v27  ;;  %v1085_v27 = vld [vmem:[#allocation10 + $0x650] sm:$0xff] }
 0x4e3   :  { %8069 = vmatpush1.bf16.msra.mxu1 %v9193_v21  ;;  %8029 = vmatprep.subr.bf16.mxu0 %v9074_v15  ;;  %v1089_v21 = vld [vmem:[#allocation10 + $0x670] sm:$0xff]  ;;  %v9097_v15 = vcombine.low %v949_v31, %v953_v52 }
 0x4e4   :  { %v7725_v0 = vpop.f32.mrb[40].mxu0  ;;  %8070 = vmatprep.subr.bf16.mxu1 %v9202_v35  ;;  %v9234_v47 = vcombine.high %v1085_v27, %v1089_v21  ;;  %v989_v31 = vld [vmem:[#allocation10 + $0x350] sm:$0xff] }
 0x4e5   :  { %v7726_v45 = vadd.f32 %v7725_v0, %v10121_v19  ;;  %v7766_v42 = vpop.f32.mrb[40].mxu1  ;;  %v7727_v44 = vpop.f32.mrb[41].mxu0  ;;  %v9233_v0 = vcombine.low %v1085_v27, %v1089_v21  ;;  %v993_v52 = vld [vmem:[#allocation10 + $0x370] sm:$0xff] }
 0x4e6   :  { %v7728_v16 = vadd.f32 %v7727_v44, %v10123_v5  ;;  %v7768_v54 = vpop.f32.mrb[41].mxu1  ;;  %v7729_v51 = vpop.f32.mrb[42].mxu0  ;;  %8030 = vmatpush1.bf16.msra.mxu0 %v9073_v33  ;;  %v1077_v5 = vld [vmem:[#allocation10 + $0x610] sm:$0xff] }
 0x4e7   :  { %v10217_v23 = vadd.f32 %v7766_v42, %v7726_v45  ;;  %v7770_v55 = vpop.f32.mrb[42].mxu1  ;;  %8071 = vmatpush1.bf16.msra.mxu1 %v9201_v62  ;;  %v7730_v24 = vpop.f32.mrb[43].mxu0  ;;  %8031 = vmatprep.subr.bf16.mxu0 %v9082_v2  ;;  %v9226_v63 = vcombine.high %v1077_v5, %v1081_v56  ;;  %v9225_v35 = vcombine.low %v1077_v5, %v1081_v56  ;;  %v1093_v33 = vld [vmem:[#allocation10 + $0x690] sm:$0xff] }
 0x4e8   :  { %v10219_v17 = vadd.f32 %v7768_v54, %v7728_v16  ;;  %v7771_v19 = vpop.f32.mrb[43].mxu1  ;;  %8072 = vmatprep.subr.bf16.mxu1 %v9210_v39  ;;  %v1097_v62 = vld [vmem:[#allocation10 + $0x6b0] sm:$0xff]  ;;  %v9105_v2 = vcombine.low %v957_v1, %v961_v4  ;;  %v9114_v39 = vcombine.high %v965_v28, %v969_v11 }
 0x4e9   :  { %v9242_v20 = vcombine.high %v1093_v33, %v1097_v62  ;;  %v977_v45 = vld [vmem:[#allocation10 + $0x2f0] sm:$0xff]  ;;  %v9241_v50 = vcombine.low %v1093_v33, %v1097_v62 }
 0x4ea   :  { %8032 = vmatpush1.bf16.msra.mxu0 %v9081_v53  ;;  %v1101_v42 = vld [vmem:[#allocation10 + $0x6d0] sm:$0xff]  ;;  %v9122_v16 = vcombine.high %v973_v10, %v977_v45 }
 0x4eb   :  { %8073 = vmatpush1.bf16.msra.mxu1 %v9209_v12  ;;  %8033 = vmatprep.subr.bf16.mxu0 %v9090_v36  ;;  %v1105_v44 = vld [vmem:[#allocation10 + $0x6f0] sm:$0xff]  ;;  %v9121_v12 = vcombine.low %v973_v10, %v977_v45 }
 0x4ec   :  { %8074 = vmatprep.subr.bf16.mxu1 %v9218_v25  ;;  %v9250_v54 = vcombine.high %v1101_v42, %v1105_v44  ;;  %v981_v51 = vld [vmem:[#allocation10 + $0x310] sm:$0xff]  ;;  %v9249_v36 = vcombine.low %v1101_v42, %v1105_v44 }
 0x4ed   :  { %v985_v53 = vld [vmem:[#allocation10 + $0x330] sm:$0xff] }
 0x4ee   :  { %8034 = vmatpush1.bf16.msra.mxu0 %v9089_v61  ;;  %v1109_v55 = vld [vmem:[#allocation10 + $0x710] sm:$0xff]  ;;  %v9130_v19 = vcombine.high %v981_v51, %v985_v53  ;;  %v9129_v61 = vcombine.low %v981_v51, %v985_v53 }
 0x4ef   :  { %8075 = vmatpush1.bf16.msra.mxu1 %v9217_v18  ;;  %8035 = vmatprep.subr.bf16.mxu0 %v9098_v26  ;;  %v1113_v24 = vld [vmem:[#allocation10 + $0x730] sm:$0xff]  ;;  %v9138_v26 = vcombine.high %v989_v31, %v993_v52 }
 0x4f0   :  { %8076 = vmatprep.subr.bf16.mxu1 %v9226_v63  ;;  %v9258_v25 = vcombine.high %v1109_v55, %v1113_v24  ;;  %v1117_v5 = vld [vmem:[#allocation10 + $0x750] sm:$0xff]  ;;  %v9257_v18 = vcombine.low %v1109_v55, %v1113_v24 }
 0x4f1   :  { %v1121_v56 = vld [vmem:[#allocation10 + $0x770] sm:$0xff] }
 0x4f2   :  { %8036 = vmatpush1.bf16.msra.mxu0 %v9097_v15  ;;  %v9266_v63 = vcombine.high %v1117_v5, %v1121_v56  ;;  %v997_v1 = vld [vmem:[#allocation10 + $0x390] sm:$0xff]  ;;  %v9137_v15 = vcombine.low %v989_v31, %v993_v52 }
 0x4f3   :  { %8077 = vmatpush1.bf16.msra.mxu1 %v9225_v35  ;;  %8037 = vmatprep.subr.bf16.mxu0 %v9106_v29  ;;  %v1001_v4 = vld [vmem:[#allocation10 + $0x3b0] sm:$0xff]  ;;  %v9265_v35 = vcombine.low %v1117_v5, %v1121_v56 }
 0x4f4   :  { %8078 = vmatprep.subr.bf16.mxu1 %v9234_v47  ;;  %v1125_v27 = vld [vmem:[#allocation10 + $0x790] sm:$0xff]  ;;  %v9146_v29 = vcombine.high %v997_v1, %v1001_v4 }
 0x4f5   :  { %v1129_v21 = vld [vmem:[#allocation10 + $0x7b0] sm:$0xff] }
 0x4f6   :  { %8038 = vmatpush1.bf16.msra.mxu0 %v9105_v2  ;;  %v9274_v47 = vcombine.high %v1125_v27, %v1129_v21  ;;  %v1005_v28 = vld [vmem:[#allocation10 + $0x3d0] sm:$0xff]  ;;  %v9145_v2 = vcombine.low %v997_v1, %v1001_v4 }
 0x4f7   :  { %8079 = vmatpush1.bf16.msra.mxu1 %v9233_v0  ;;  %8039 = vmatprep.subr.bf16.mxu0 %v9114_v39  ;;  %v1009_v11 = vld [vmem:[#allocation10 + $0x3f0] sm:$0xff]  ;;  %v9273_v0 = vcombine.low %v1125_v27, %v1129_v21 }
 0x4f8   :  { %8080 = vmatprep.subr.bf16.mxu1 %v9242_v20  ;;  %v1133_v33 = vld [vmem:[#allocation10 + $0x7d0] sm:$0xff]  ;;  %v9154_v39 = vcombine.high %v1005_v28, %v1009_v11 }
 0x4f9   :  { %v1137_v62 = vld [vmem:[#allocation10 + $0x7f0] sm:$0xff] }
 0x4fa   :  { %8040 = vmatpush1.bf16.msra.mxu0 %v9113_v48  ;;  %v9282_v20 = vcombine.high %v1133_v33, %v1137_v62  ;;  %v1141_v10 = vld [vmem:[#allocation10 + $0x810] sm:$0xff]  ;;  %v9153_v48 = vcombine.low %v1005_v28, %v1009_v11 }
 0x4fb   :  { %8081 = vmatpush1.bf16.msra.mxu1 %v9241_v50  ;;  %8041 = vmatprep.subr.bf16.mxu0 %v9122_v16  ;;  %v1145_v45 = vld [vmem:[#allocation10 + $0x830] sm:$0xff]  ;;  %v9281_v50 = vcombine.low %v1133_v33, %v1137_v62 }
 0x4fc   :  { %8082 = vmatprep.subr.bf16.mxu1 %v9250_v54  ;;  %v1269_v42 = vld [vmem:[#allocation10 + $0xc10] sm:$0xff]  ;;  %v9290_v16 = vcombine.high %v1141_v10, %v1145_v45  ;;  %v9289_v55 = vcombine.low %v1141_v10, %v1145_v45 }
 0x4fd   :  { %v1273_v44 = vld [vmem:[#allocation10 + $0xc30] sm:$0xff] }
 0x4fe   :  { %8042 = vmatpush1.bf16.msra.mxu0 %v9121_v12  ;;  %v9418_v54 = vcombine.high %v1269_v42, %v1273_v44  ;;  %v1149_v51 = vld [vmem:[#allocation10 + $0x850] sm:$0xff] }
 0x4ff   :  { %8083 = vmatpush1.bf16.msra.mxu1 %v9249_v36  ;;  %8043 = vmatprep.subr.bf16.mxu0 %v9130_v19  ;;  %v1153_v53 = vld [vmem:[#allocation10 + $0x870] sm:$0xff]  ;;  %v9417_v36 = vcombine.low %v1269_v42, %v1273_v44 }
 0x500   :  { %8084 = vmatprep.subr.bf16.mxu1 %v9258_v25  ;;  %v1277_v24 = vld [vmem:[#allocation10 + $0xc50] sm:$0xff]  ;;  %v9298_v19 = vcombine.high %v1149_v51, %v1153_v53 }
 0x501   :  { %v1281_v12 = vld [vmem:[#allocation10 + $0xc70] sm:$0xff] }
 0x502   :  { %8044 = vmatpush1.bf16.msra.mxu0 %v9129_v61  ;;  %v1157_v25 = vld [vmem:[#allocation10 + $0x890] sm:$0xff]  ;;  %v9426_v52 = vcombine.high %v1277_v24, %v1281_v12  ;;  %v9297_v61 = vcombine.low %v1149_v51, %v1153_v53 }
 0x503   :  { %8085 = vmatpush1.bf16.msra.mxu1 %v9257_v18  ;;  %8045 = vmatprep.subr.bf16.mxu0 %v9138_v26  ;;  %v1161_v31 = vld [vmem:[#allocation10 + $0x8b0] sm:$0xff]  ;;  %v9425_v18 = vcombine.low %v1277_v24, %v1281_v12  ;;  %v10225_v12 = vld [vmem:[#allocation13] sm:$0xff] }
 0x504   :  { %8086 = vmatprep.subr.bf16.mxu1 %v9266_v63  ;;  %v1285_v5 = vld [vmem:[#allocation10 + $0xc90] sm:$0xff]  ;;  %v9306_v26 = vcombine.high %v1157_v25, %v1161_v31 }
 0x505   :  { %v1289_v56 = vld [vmem:[#allocation10 + $0xcb0] sm:$0xff] }
 0x506   :  { %8046 = vmatpush1.bf16.msra.mxu0 %v9137_v15  ;;  %v9434_v63 = vcombine.high %v1285_v5, %v1289_v56  ;;  %v1165_v1 = vld [vmem:[#allocation10 + $0x8d0] sm:$0xff]  ;;  %v9305_v15 = vcombine.low %v1157_v25, %v1161_v31 }
 0x507   :  { %8087 = vmatpush1.bf16.msra.mxu1 %v9265_v35  ;;  %8047 = vmatprep.subr.bf16.mxu0 %v9146_v29  ;;  %v1169_v4 = vld [vmem:[#allocation10 + $0x8f0] sm:$0xff]  ;;  %v9433_v35 = vcombine.low %v1285_v5, %v1289_v56 }
 0x508   :  { %8088 = vmatprep.subr.bf16.mxu1 %v9274_v47  ;;  %v1293_v27 = vld [vmem:[#allocation10 + $0xcd0] sm:$0xff]  ;;  %v9314_v29 = vcombine.high %v1165_v1, %v1169_v4 }
 0x509   :  { %v1297_v21 = vld [vmem:[#allocation10 + $0xcf0] sm:$0xff] }
 0x50a   :  { %8048 = vmatpush1.bf16.msra.mxu0 %v9145_v2  ;;  %v9442_v47 = vcombine.high %v1293_v27, %v1297_v21  ;;  %v1173_v28 = vld [vmem:[#allocation10 + $0x910] sm:$0xff]  ;;  %v9313_v2 = vcombine.low %v1165_v1, %v1169_v4 }
 0x50b   :  { %8089 = vmatpush1.bf16.msra.mxu1 %v9273_v0  ;;  %8049 = vmatprep.subr.bf16.mxu0 %v9154_v39  ;;  %v1177_v11 = vld [vmem:[#allocation10 + $0x930] sm:$0xff]  ;;  %v9441_v0 = vcombine.low %v1293_v27, %v1297_v21  ;;  %v10230_v27 = vld [vmem:[#allocation14] sm:$0xff] }
 0x50c   :  { %8090 = vmatprep.subr.bf16.mxu1 %v9282_v20  ;;  %v1301_v33 = vld [vmem:[#allocation10 + $0xd10] sm:$0xff]  ;;  %v9322_v39 = vcombine.high %v1173_v28, %v1177_v11 }
 0x50d   :  { %v1305_v62 = vld [vmem:[#allocation10 + $0xd30] sm:$0xff] }
 0x50e   :  { %8050 = vmatpush1.bf16.msra.mxu0 %v9153_v48  ;;  %v9450_v20 = vcombine.high %v1301_v33, %v1305_v62  ;;  %v1181_v10 = vld [vmem:[#allocation10 + $0x950] sm:$0xff]  ;;  %v9321_v48 = vcombine.low %v1173_v28, %v1177_v11 }
 0x50f   :  { %8091 = vmatpush1.bf16.msra.mxu1 %v9281_v50  ;;  %8101 = vmatprep.subr.bf16.mxu0 %v9290_v16  ;;  %v1185_v45 = vld [vmem:[#allocation10 + $0x970] sm:$0xff]  ;;  %v9449_v50 = vcombine.low %v1301_v33, %v1305_v62 }
 0x510   :  { %8142 = vmatprep.subr.bf16.mxu1 %v9418_v54  ;;  %v1309_v42 = vld [vmem:[#allocation10 + $0xd50] sm:$0xff]  ;;  %v9330_v16 = vcombine.high %v1181_v10, %v1185_v45 }
 0x511   :  { %8052 = vmatmul.mubr.bf16.vlgmr.msra.gmra.mrb[56].mxu0 %v10161_v46  ;;  %v1313_v44 = vld [vmem:[#allocation10 + $0xd70] sm:$0xff] }
 0x512   :  { %8093 = vmatmul.mubr.bf16.vlgmr.msra.gmra.mrb[56].mxu1 %v10165_v30  ;;  %8102 = vmatpush1.bf16.msra.mxu0 %v9289_v55  ;;  %v9458_v54 = vcombine.high %v1309_v42, %v1313_v44  ;;  %v1189_v51 = vld [vmem:[#allocation10 + $0x990] sm:$0xff] }
 0x513   :  { %8133 = vmatprep.mubr.bf16.mxu0 %v10169_v49  ;;  %8143 = vmatpush1.bf16.msra.mxu1 %v9417_v36  ;;  %v1193_v53 = vld [vmem:[#allocation10 + $0x9b0] sm:$0xff]  ;;  %v9329_v36 = vcombine.low %v1181_v10, %v1185_v45  ;;  %v8410_v45 = vrot.slane %v10230_v27, %v9994_v57 }
 0x514   :  { %8174 = vmatprep.mubr.bf16.mxu1 %v10174_v38  ;;  %8103 = vmatprep.subr.bf16.mxu0 %v9298_v19  ;;  %v1317_v55 = vld [vmem:[#allocation10 + $0xd90] sm:$0xff]  ;;  %v9457_v19 = vcombine.low %v1309_v42, %v1313_v44  ;;  %v9338_v25 = vcombine.high %v1189_v51, %v1193_v53 }
 0x515   :  { %8144 = vmatprep.subr.bf16.mxu1 %v9426_v52  ;;  %v1321_v24 = vld [vmem:[#allocation10 + $0xdb0] sm:$0xff] }
 0x516   :  { %8104 = vmatpush1.bf16.msra.mxu0 %v9297_v61  ;;  %v9466_v52 = vcombine.high %v1317_v55, %v1321_v24  ;;  %v1197_v5 = vld [vmem:[#allocation10 + $0x9d0] sm:$0xff]  ;;  %v9465_v33 = vcombine.low %v1317_v55, %v1321_v24 }
 0x517   :  { %8145 = vmatpush1.bf16.msra.mxu1 %v9425_v18  ;;  %8105 = vmatprep.subr.bf16.mxu0 %v9306_v26  ;;  %v1201_v56 = vld [vmem:[#allocation10 + $0x9f0] sm:$0xff]  ;;  %v8352_v26 = vrot.slane %v10225_v12, %v9994_v57 }
 0x518   :  { %8146 = vmatprep.subr.bf16.mxu1 %v9434_v63  ;;  %v1325_v1 = vld [vmem:[#allocation10 + $0xdd0] sm:$0xff]  ;;  %v9346_v62 = vcombine.high %v1197_v5, %v1201_v56 }
 0x519   :  { %v1329_v4 = vld [vmem:[#allocation10 + $0xdf0] sm:$0xff] }
 0x51a   :  { %8106 = vmatpush1.bf16.msra.mxu0 %v9305_v15  ;;  %v1333_v42 = vld [vmem:[#allocation10 + $0xe10] sm:$0xff] }
 0x51b   :  { %8147 = vmatpush1.bf16.msra.mxu1 %v9433_v35  ;;  %8107 = vmatprep.subr.bf16.mxu0 %v9314_v29  ;;  %v8356_v35 = vrot.slane %v10225_v12, %v10000_v59  ;;  %v1337_v44 = vld [vmem:[#allocation10 + $0xe30] sm:$0xff] }
 0x51c   :  { %8148 = vmatprep.subr.bf16.mxu1 %v9442_v47  ;;  %v9337_v47 = vcombine.low %v1189_v51, %v1193_v53  ;;  %v9473_v51 = vcombine.low %v1325_v1, %v1329_v4  ;;  %v9482_v24 = vcombine.high %v1333_v42, %v1337_v44 }
 0x51e   :  { %8108 = vmatpush1.bf16.msra.mxu0 %v9313_v2 }
 0x51f   :  { %8149 = vmatpush1.bf16.msra.mxu1 %v9441_v0  ;;  %8109 = vmatprep.subr.bf16.mxu0 %v9322_v39  ;;  %v9474_v39 = vcombine.high %v1325_v1, %v1329_v4  ;;  %v1225_v1 = vld [vmem:[#allocation10 + $0xab0] sm:$0xff] }
 0x520   :  { %8150 = vmatprep.subr.bf16.mxu1 %v9450_v20  ;;  %v1205_v20 = vld [vmem:[#allocation10 + $0xa10] sm:$0xff] }
 0x522   :  { %8110 = vmatpush1.bf16.msra.mxu0 %v9321_v48 }
 0x523   :  { %8151 = vmatpush1.bf16.msra.mxu1 %v9449_v50  ;;  %8111 = vmatprep.subr.bf16.mxu0 %v9330_v16  ;;  %v8414_v50 = vrot.slane %v10230_v27, %v10000_v59  ;;  %v9345_v16 = vcombine.low %v1197_v5, %v1201_v56  ;;  %v9481_v5 = vcombine.low %v1333_v42, %v1337_v44  ;;  %v1369_v42 = vld [vmem:[#allocation10 + $0xf30] sm:$0xff] }
 0x524   :  { %v7807_v31 = vpop.f32.mrb[44].mxu0  ;;  %8152 = vmatprep.subr.bf16.mxu1 %v9458_v54 }
 0x525   :  { %v7808_v61 = vadd.f32 %v7807_v31, %v10217_v23  ;;  %v7848_v18 = vpop.f32.mrb[44].mxu1  ;;  %v7809_v63 = vpop.f32.mrb[45].mxu0  ;;  %v1345_v31 = vld [vmem:[#allocation10 + $0xe70] sm:$0xff] }
 0x526   :  { %v7810_v21 = vadd.f32 %v7809_v63, %v10219_v17  ;;  %v7850_v15 = vpop.f32.mrb[45].mxu1  ;;  %v7811_v29 = vpop.f32.mrb[46].mxu0  ;;  %8112 = vmatpush1.bf16.msra.mxu0 %v9329_v36  ;;  %v1209_v17 = vld [vmem:[#allocation10 + $0xa30] sm:$0xff] }
 0x527   :  { %v7849_v28 = vadd.f32 %v7848_v18, %v7808_v61  ;;  %v7852_v23 = vpop.f32.mrb[46].mxu1  ;;  %8153 = vmatpush1.bf16.msra.mxu1 %v9457_v19  ;;  %v7812_v11 = vpop.f32.mrb[47].mxu0  ;;  %8113 = vmatprep.subr.bf16.mxu0 %v9338_v25  ;;  %v9354_v53 = vcombine.high %v1205_v20, %v1209_v17  ;;  %v1213_v36 = vld [vmem:[#allocation10 + $0xa50] sm:$0xff]  ;;  %v9353_v61 = vcombine.low %v1205_v20, %v1209_v17 }
 0x528   :  { %v7851_v2 = vadd.f32 %v7850_v15, %v7810_v21  ;;  %v7853_v0 = vpop.f32.mrb[47].mxu1  ;;  %8154 = vmatprep.subr.bf16.mxu1 %v9466_v52  ;;  %v1217_v19 = vld [vmem:[#allocation10 + $0xa70] sm:$0xff] }
 0x529   :  { %v8389_v10 = vadd.f32 %v8352_v26, %v7849_v28  ;;  %v1341_v25 = vld [vmem:[#allocation10 + $0xe50] sm:$0xff]  ;;  %v9362_v56 = vcombine.high %v1213_v36, %v1217_v19 }
 0x52a   :  { %v8390_v48 = vadd.f32 %v8356_v35, %v7851_v2  ;;  %8114 = vmatpush1.bf16.msra.mxu0 %v9337_v47  ;;  %v9490_v26 = vcombine.high %v1341_v25, %v1345_v31  ;;  %v1221_v63 = vld [vmem:[#allocation10 + $0xa90] sm:$0xff]  ;;  %v9361_v35 = vcombine.low %v1213_v36, %v1217_v19  ;;  %v9489_v29 = vcombine.low %v1341_v25, %v1345_v31 }
 0x52b   :  { %v8397_v54 = vmax.f32 %v8389_v10, 0.0  ;;  %8155 = vmatpush1.bf16.msra.mxu1 %v9465_v33  ;;  %8115 = vmatprep.subr.bf16.mxu0 %v9346_v62  ;;  %v1349_v21 = vld [vmem:[#allocation10 + $0xe90] sm:$0xff]  ;;  %v9370_v47 = vcombine.high %v1221_v63, %v1225_v1  ;;  %v9369_v2 = vcombine.low %v1221_v63, %v1225_v1 }
 0x52c   :  { %v8398_v55 = vmax.f32 %v8390_v48, 0.0  ;;  %8156 = vmatprep.subr.bf16.mxu1 %v9474_v39  ;;  %v1353_v15 = vld [vmem:[#allocation10 + $0xeb0] sm:$0xff] }
 0x52d   :  { %v8447_v57 = vmul.f32 %v8410_v45, %v8397_v54  ;;  %v9498_v28 = vcombine.high %v1349_v21, %v1353_v15  ;;  %v1229_v23 = vld [vmem:[#allocation10 + $0xad0] sm:$0xff]  ;;  %v9497_v0 = vcombine.low %v1349_v21, %v1353_v15 }
 0x52e   :  { %v8448_v52 = vmul.f32 %v8414_v50, %v8398_v55  ;;  %8116 = vmatpush1.bf16.msra.mxu0 %v9345_v16  ;;  %v1233_v11 = vld [vmem:[#allocation10 + $0xaf0] sm:$0xff] }
 0x52f   :  { %v8456_v59 = vsel %vm8455_vm3, %v8447_v57, 0.0  ;;  %8157 = vmatpush1.bf16.msra.mxu1 %v9473_v51  ;;  %8117 = vmatprep.subr.bf16.mxu0 %v9354_v53  ;;  %v1357_v33 = vld [vmem:[#allocation10 + $0xed0] sm:$0xff]  ;;  %v9378_v39 = vcombine.high %v1229_v23, %v1233_v11  ;;  %v9377_v44 = vcombine.low %v1229_v23, %v1233_v11  ;;  %v890_v23 = vld [vmem:[#allocation10 + $0x38] sm:$0xff] }
 0x530   :  { %v8457_v18 = vsel %vm8455_vm3, %v8448_v52, 0.0  ;;  %8158 = vmatprep.subr.bf16.mxu1 %v9482_v24  ;;  %v1361_v62 = vld [vmem:[#allocation10 + $0xef0] sm:$0xff]  ;;  %v1014_v11 = vld [vmem:[#allocation10 + $0x418] sm:$0xff] }
 0x531   :  { %v10241_v4 = vadd.f32 %v8457_v18, %v8456_v59  ;;  %v9506_v20 = vcombine.high %v1357_v33, %v1361_v62  ;;  %v1237_v17 = vld [vmem:[#allocation10 + $0xb10] sm:$0xff]  ;;  %v9505_v48 = vcombine.low %v1357_v33, %v1361_v62  ;;  %v1018_v33 = vld [vmem:[#allocation10 + $0x438] sm:$0xff] }
 0x532   :  { %8118 = vmatpush1.bf16.msra.mxu0 %v9353_v61  ;;  %v1241_v10 = vld [vmem:[#allocation10 + $0xb30] sm:$0xff] }
 0x533   :  { %8159 = vmatpush1.bf16.msra.mxu1 %v9481_v5  ;;  %8119 = vmatprep.subr.bf16.mxu0 %v9362_v56  ;;  %v1365_v45 = vld [vmem:[#allocation10 + $0xf10] sm:$0xff]  ;;  %v9386_v50 = vcombine.high %v1237_v17, %v1241_v10  ;;  %v9385_v24 = vcombine.low %v1237_v17, %v1241_v10  ;;  %v898_v17 = vld [vmem:[#allocation10 + $0x78] sm:$0xff] }
 0x534   :  { %8160 = vmatprep.subr.bf16.mxu1 %v9490_v26  ;;  %v9514_v16 = vcombine.high %v1365_v45, %v1369_v42  ;;  %v1245_v54 = vld [vmem:[#allocation10 + $0xb50] sm:$0xff]  ;;  %v9513_v36 = vcombine.low %v1365_v45, %v1369_v42  ;;  %v1022_v45 = vld [vmem:[#allocation10 + $0x458] sm:$0xff] }
 0x535   :  { %v1249_v51 = vld [vmem:[#allocation10 + $0xb70] sm:$0xff]  ;;  %v1026_v42 = vld [vmem:[#allocation10 + $0x478] sm:$0xff] }
 0x536   :  { %8120 = vmatpush1.bf16.msra.mxu0 %v9361_v35  ;;  %v1373_v53 = vld [vmem:[#allocation10 + $0xf50] sm:$0xff]  ;;  %v9394_v19 = vcombine.high %v1245_v54, %v1249_v51  ;;  %v9393_v59 = vcombine.low %v1245_v54, %v1249_v51  ;;  %v9172_v54 = vcombine.high %v1022_v45, %v1026_v42  ;;  %v1030_v51 = vld [vmem:[#allocation10 + $0x498] sm:$0xff] }
 0x537   :  { %8161 = vmatpush1.bf16.msra.mxu1 %v9489_v29  ;;  %8121 = vmatprep.subr.bf16.mxu0 %v9370_v47  ;;  %v1377_v55 = vld [vmem:[#allocation10 + $0xf70] sm:$0xff] }
 0x538   :  { %8162 = vmatprep.subr.bf16.mxu1 %v9498_v28  ;;  %v9522_v57 = vcombine.high %v1373_v53, %v1377_v55  ;;  %v1253_v25 = vld [vmem:[#allocation10 + $0xb90] sm:$0xff]  ;;  %v9521_v5 = vcombine.low %v1373_v53, %v1377_v55  ;;  %v886_v28 = vld [vmem:[#allocation10 + $0x18] sm:$0xff] }
 0x539   :  { %v1257_v31 = vld [vmem:[#allocation10 + $0xbb0] sm:$0xff]  ;;  %v9035_v10 = vcombine.low %v886_v28, %v890_v23  ;;  %v1034_v53 = vld [vmem:[#allocation10 + $0x4b8] sm:$0xff] }
 0x53a   :  { %8122 = vmatpush1.bf16.msra.mxu0 %v9369_v2  ;;  %v1381_v52 = vld [vmem:[#allocation10 + $0xf90] sm:$0xff]  ;;  %v9402_v56 = vcombine.high %v1253_v25, %v1257_v31  ;;  %v9401_v15 = vcombine.low %v1253_v25, %v1257_v31  ;;  %v914_v25 = vld [vmem:[#allocation10 + $0xf8] sm:$0xff] }
 0x53b   :  { %8163 = vmatpush1.bf16.msra.mxu1 %v9497_v0  ;;  %8123 = vmatprep.subr.bf16.mxu0 %v9378_v39  ;;  %v1385_v61 = vld [vmem:[#allocation10 + $0xfb0] sm:$0xff]  ;;  %v9036_v0 = vcombine.high %v886_v28, %v890_v23  ;;  %v9164_v39 = vcombine.high %v1014_v11, %v1018_v33  ;;  %v1038_v31 = vld [vmem:[#allocation10 + $0x4d8] sm:$0xff] }
 0x53c   :  { %8164 = vmatprep.subr.bf16.mxu1 %v9506_v20  ;;  %v9530_v18 = vcombine.high %v1381_v52, %v1385_v61  ;;  %v1261_v26 = vld [vmem:[#allocation10 + $0xbd0] sm:$0xff]  ;;  %v9529_v35 = vcombine.low %v1381_v52, %v1385_v61  ;;  %v894_v20 = vld [vmem:[#allocation10 + $0x58] sm:$0xff] }
 0x53d   :  { %v1265_v63 = vld [vmem:[#allocation10 + $0xbf0] sm:$0xff]  ;;  %v9043_v55 = vcombine.low %v894_v20, %v898_v17  ;;  %v1042_v52 = vld [vmem:[#allocation10 + $0x4f8] sm:$0xff] }
 0x53e   :  { %8124 = vmatpush1.bf16.msra.mxu0 %v9377_v44  ;;  %v1389_v1 = vld [vmem:[#allocation10 + $0xfd0] sm:$0xff]  ;;  %v9410_v29 = vcombine.high %v1261_v26, %v1265_v63  ;;  %v9409_v62 = vcombine.low %v1261_v26, %v1265_v63  ;;  %v9163_v44 = vcombine.low %v1014_v11, %v1018_v33  ;;  %v1046_v26 = vld [vmem:[#allocation10 + $0x518] sm:$0xff] }
 0x53f   :  { %8165 = vmatpush1.bf16.msra.mxu1 %v9505_v48  ;;  %8125 = vmatprep.subr.bf16.mxu0 %v9386_v50  ;;  %v1393_v21 = vld [vmem:[#allocation10 + $0xff0] sm:$0xff]  ;;  %v9044_v48 = vcombine.high %v894_v20, %v898_v17  ;;  %v902_v50 = vld [vmem:[#allocation10 + $0x98] sm:$0xff] }
 0x540   :  { %8166 = vmatprep.subr.bf16.mxu1 %v9514_v16  ;;  %v9538_v47 = vcombine.high %v1389_v1, %v1393_v21  ;;  %v9537_v2 = vcombine.low %v1389_v1, %v1393_v21  ;;  %v906_v16 = vld [vmem:[#allocation10 + $0xb8] sm:$0xff]  ;;  %v9187_v1 = vcombine.low %v1038_v31, %v1042_v52 }
 0x541   :  { %v9051_v61 = vcombine.low %v902_v50, %v906_v16  ;;  %v1050_v63 = vld [vmem:[#allocation10 + $0x538] sm:$0xff] }
 0x542   :  { %8126 = vmatpush1.bf16.msra.mxu0 %v9385_v24  ;;  %v9171_v24 = vcombine.low %v1022_v45, %v1026_v42  ;;  %v1058_v28 = vld [vmem:[#allocation10 + $0x578] sm:$0xff]  ;;  %v9195_v11 = vcombine.low %v1046_v26, %v1050_v63 }
 0x543   :  { %8167 = vmatpush1.bf16.msra.mxu1 %v9513_v36  ;;  %8127 = vmatprep.subr.bf16.mxu0 %v9394_v19  ;;  %v9052_v36 = vcombine.high %v902_v50, %v906_v16  ;;  %v9180_v19 = vcombine.high %v1030_v51, %v1034_v53  ;;  %v1066_v20 = vld [vmem:[#allocation10 + $0x5b8] sm:$0xff] }
 0x544   :  { %8168 = vmatprep.subr.bf16.mxu1 %v9522_v57  ;;  %v910_v57 = vld [vmem:[#allocation10 + $0xd8] sm:$0xff] }
 0x545   :  { %v946_v50 = vld [vmem:[#allocation10 + $0x1f8] sm:$0xff] }
 0x546   :  { %8128 = vmatpush1.bf16.msra.mxu0 %v9393_v59  ;;  %v9179_v59 = vcombine.low %v1030_v51, %v1034_v53  ;;  %v1070_v53 = vld [vmem:[#allocation10 + $0x5d8] sm:$0xff] }
 0x547   :  { %8169 = vmatpush1.bf16.msra.mxu1 %v9521_v5  ;;  %8129 = vmatprep.subr.bf16.mxu0 %v9402_v56  ;;  %v9060_v5 = vcombine.high %v910_v57, %v914_v25  ;;  %v918_v56 = vld [vmem:[#allocation10 + $0x118] sm:$0xff] }
 0x548   :  { %8170 = vmatprep.subr.bf16.mxu1 %v9530_v18  ;;  %v922_v18 = vld [vmem:[#allocation10 + $0x138] sm:$0xff] }
 0x549   :  { %v9068_v21 = vcombine.high %v918_v56, %v922_v18  ;;  %v9067_v23 = vcombine.low %v918_v56, %v922_v18  ;;  %v950_v56 = vld [vmem:[#allocation10 + $0x218] sm:$0xff] }
 0x54a   :  { %8130 = vmatpush1.bf16.msra.mxu0 %v9401_v15  ;;  %v9196_v15 = vcombine.high %v1046_v26, %v1050_v63  ;;  %v954_v18 = vld [vmem:[#allocation10 + $0x238] sm:$0xff] }
 0x54b   :  { %8171 = vmatpush1.bf16.msra.mxu1 %v9529_v35  ;;  %8131 = vmatprep.subr.bf16.mxu0 %v9410_v29  ;;  %v926_v35 = vld [vmem:[#allocation10 + $0x158] sm:$0xff] }
 0x54c   :  { %8172 = vmatprep.subr.bf16.mxu1 %v9538_v47  ;;  %v930_v29 = vld [vmem:[#allocation10 + $0x178] sm:$0xff] }
 0x54d   :  { %v1054_v47 = vld [vmem:[#allocation10 + $0x558] sm:$0xff]  ;;  %v9076_v33 = vcombine.high %v926_v35, %v930_v29  ;;  %v9075_v17 = vcombine.low %v926_v35, %v930_v29 }
 0x54e   :  { %8132 = vmatpush1.bf16.msra.mxu0 %v9409_v62  ;;  %v9204_v62 = vcombine.high %v1054_v47, %v1058_v28  ;;  %v1082_v26 = vld [vmem:[#allocation10 + $0x638] sm:$0xff] }
 0x54f   :  { %8173 = vmatpush1.bf16.msra.mxu1 %v9537_v2  ;;  %8183 = vmatprep.subr.bf16.mxu0 %v9036_v0  ;;  %v934_v2 = vld [vmem:[#allocation10 + $0x198] sm:$0xff] }
 0x550   :  { %8224 = vmatprep.subr.bf16.mxu1 %v9164_v39  ;;  %v938_v0 = vld [vmem:[#allocation10 + $0x1b8] sm:$0xff] }
 0x551   :  { %8134 = vmatmul.mubr.bf16.vlgmr.msra.gmra.mrb[60].mxu0 %v10187_v43  ;;  %v1062_v39 = vld [vmem:[#allocation10 + $0x598] sm:$0xff]  ;;  %v9084_v45 = vcombine.high %v934_v2, %v938_v0 }
 0x552   :  { %8175 = vmatmul.mubr.bf16.vlgmr.msra.gmra.mrb[60].mxu1 %v10191_v41  ;;  %8184 = vmatpush1.bf16.msra.mxu0 %v9035_v10  ;;  %v9203_v10 = vcombine.low %v1054_v47, %v1058_v28  ;;  %v962_v35 = vld [vmem:[#allocation10 + $0x278] sm:$0xff]  ;;  %v9099_v28 = vcombine.low %v950_v56, %v954_v18 }
 0x553   :  { %8215 = vmatprep.mubr.bf16.mxu0 %v10145_v14  ;;  %8225 = vmatpush1.bf16.msra.mxu1 %v9163_v44  ;;  %v9188_v14 = vcombine.high %v1038_v31, %v1042_v52  ;;  %v9212_v44 = vcombine.high %v1062_v39, %v1066_v20  ;;  %v1086_v29 = vld [vmem:[#allocation10 + $0x658] sm:$0xff] }
 0x554   :  { %8256 = vmatprep.mubr.bf16.mxu1 %v10150_v13  ;;  %8185 = vmatprep.subr.bf16.mxu0 %v9044_v48  ;;  %v9059_v13 = vcombine.low %v910_v57, %v914_v25  ;;  %v942_v48 = vld [vmem:[#allocation10 + $0x1d8] sm:$0xff]  ;;  %v9083_v57 = vcombine.low %v934_v2, %v938_v0 }
 0x555   :  { %8226 = vmatprep.subr.bf16.mxu1 %v9172_v54  ;;  %v9091_v63 = vcombine.low %v942_v48, %v946_v50  ;;  %v1090_v47 = vld [vmem:[#allocation10 + $0x678] sm:$0xff] }
 0x556   :  { %8186 = vmatpush1.bf16.msra.mxu0 %v9043_v55  ;;  %v1074_v55 = vld [vmem:[#allocation10 + $0x5f8] sm:$0xff] }
 0x557   :  { %8227 = vmatpush1.bf16.msra.mxu1 %v9171_v24  ;;  %8187 = vmatprep.subr.bf16.mxu0 %v9052_v36  ;;  %v970_v2 = vld [vmem:[#allocation10 + $0x2b8] sm:$0xff] }
 0x558   :  { %8228 = vmatprep.subr.bf16.mxu1 %v9180_v19  ;;  %v1094_v0 = vld [vmem:[#allocation10 + $0x698] sm:$0xff] }
 0x55a   :  { %8188 = vmatpush1.bf16.msra.mxu0 %v9051_v61  ;;  %v9211_v61 = vcombine.low %v1062_v39, %v1066_v20  ;;  %v1098_v39 = vld [vmem:[#allocation10 + $0x6b8] sm:$0xff] }
 0x55b   :  { %8229 = vmatpush1.bf16.msra.mxu1 %v9179_v59  ;;  %8189 = vmatprep.subr.bf16.mxu0 %v9060_v5  ;;  %v9092_v59 = vcombine.high %v942_v48, %v946_v50  ;;  %v1102_v48 = vld [vmem:[#allocation10 + $0x6d8] sm:$0xff] }
 0x55c   :  { %8230 = vmatprep.subr.bf16.mxu1 %v9188_v14  ;;  %v9220_v14 = vcombine.high %v1070_v53, %v1074_v55  ;;  %v1106_v50 = vld [vmem:[#allocation10 + $0x6f8] sm:$0xff] }
 0x55e   :  { %8190 = vmatpush1.bf16.msra.mxu0 %v9059_v13  ;;  %v9219_v13 = vcombine.low %v1070_v53, %v1074_v55  ;;  %v9252_v53 = vcombine.high %v1102_v48, %v1106_v50  ;;  %v982_v55 = vld [vmem:[#allocation10 + $0x318] sm:$0xff] }
 0x55f   :  { %8231 = vmatpush1.bf16.msra.mxu1 %v9187_v1  ;;  %8191 = vmatprep.subr.bf16.mxu0 %v9068_v21  ;;  %v9100_v1 = vcombine.high %v950_v56, %v954_v18  ;;  %v1122_v56 = vld [vmem:[#allocation10 + $0x778] sm:$0xff] }
 0x560   :  { %8232 = vmatprep.subr.bf16.mxu1 %v9196_v15  ;;  %v958_v15 = vld [vmem:[#allocation10 + $0x258] sm:$0xff] }
 0x561   :  { %v9107_v20 = vcombine.low %v958_v15, %v962_v35 }
 0x562   :  { %8192 = vmatpush1.bf16.msra.mxu0 %v9067_v23 }
 0x563   :  { %8233 = vmatpush1.bf16.msra.mxu1 %v9195_v11  ;;  %8193 = vmatprep.subr.bf16.mxu0 %v9076_v33  ;;  %v9108_v11 = vcombine.high %v958_v15, %v962_v35  ;;  %v9236_v33 = vcombine.high %v1086_v29, %v1090_v47  ;;  %v1130_v15 = vld [vmem:[#allocation10 + $0x7b8] sm:$0xff] }
 0x564   :  { %v7889_v42 = vpop.f32.mrb[48].mxu0  ;;  %8234 = vmatprep.subr.bf16.mxu1 %v9204_v62  ;;  %v966_v62 = vld [vmem:[#allocation10 + $0x298] sm:$0xff] }
 0x565   :  { %v7890_v16 = vadd.f32 %v7889_v42, %v10139_v32  ;;  %v7930_v54 = vpop.f32.mrb[48].mxu1  ;;  %v7891_v51 = vpop.f32.mrb[49].mxu0  ;;  %v974_v42 = vld [vmem:[#allocation10 + $0x2d8] sm:$0xff] }
 0x566   :  { %v7892_v24 = vadd.f32 %v7891_v51, %v10141_v40  ;;  %v7932_v36 = vpop.f32.mrb[49].mxu1  ;;  %v7893_v19 = vpop.f32.mrb[50].mxu0  ;;  %8194 = vmatpush1.bf16.msra.mxu0 %v9075_v17  ;;  %v1078_v40 = vld [vmem:[#allocation10 + $0x618] sm:$0xff]  ;;  %v9235_v17 = vcombine.low %v1086_v29, %v1090_v47 }
 0x567   :  { %v10249_v25 = vadd.f32 %v7930_v54, %v7890_v16  ;;  %v7934_v31 = vpop.f32.mrb[50].mxu1  ;;  %8235 = vmatpush1.bf16.msra.mxu1 %v9203_v10  ;;  %v7894_v52 = vpop.f32.mrb[51].mxu0  ;;  %8195 = vmatprep.subr.bf16.mxu0 %v9084_v45  ;;  %v9228_v21 = vcombine.high %v1078_v40, %v1082_v26  ;;  %v9227_v23 = vcombine.low %v1078_v40, %v1082_v26  ;;  %v1114_v19 = vld [vmem:[#allocation10 + $0x738] sm:$0xff] }
 0x568   :  { %v10251_v5 = vadd.f32 %v7932_v36, %v7892_v24  ;;  %v7935_v32 = vpop.f32.mrb[51].mxu1  ;;  %8236 = vmatprep.subr.bf16.mxu1 %v9212_v44  ;;  %v9116_v10 = vcombine.high %v966_v62, %v970_v2  ;;  %v9244_v45 = vcombine.high %v1094_v0, %v1098_v39  ;;  %v978_v44 = vld [vmem:[#allocation10 + $0x2f8] sm:$0xff]  ;;  %v9115_v16 = vcombine.low %v966_v62, %v970_v2 }
 0x569   :  { %v9243_v54 = vcombine.low %v1094_v0, %v1098_v39  ;;  %v9124_v51 = vcombine.high %v974_v42, %v978_v44  ;;  %v986_v24 = vld [vmem:[#allocation10 + $0x338] sm:$0xff]  ;;  %v9251_v31 = vcombine.low %v1102_v48, %v1106_v50 }
 0x56a   :  { %8196 = vmatpush1.bf16.msra.mxu0 %v9083_v57  ;;  %v1110_v36 = vld [vmem:[#allocation10 + $0x718] sm:$0xff]  ;;  %v9123_v57 = vcombine.low %v974_v42, %v978_v44  ;;  %v9132_v52 = vcombine.high %v982_v55, %v986_v24  ;;  %v9131_v18 = vcombine.low %v982_v55, %v986_v24 }
 0x56b   :  { %8237 = vmatpush1.bf16.msra.mxu1 %v9211_v61  ;;  %8197 = vmatprep.subr.bf16.mxu0 %v9092_v59  ;;  %v9260_v61 = vcombine.high %v1110_v36, %v1114_v19  ;;  %v990_v59 = vld [vmem:[#allocation10 + $0x358] sm:$0xff]  ;;  %v9259_v40 = vcombine.low %v1110_v36, %v1114_v19 }
 0x56c   :  { %8238 = vmatprep.subr.bf16.mxu1 %v9220_v14  ;;  %v994_v32 = vld [vmem:[#allocation10 + $0x378] sm:$0xff] }
 0x56d   :  { %v1118_v14 = vld [vmem:[#allocation10 + $0x758] sm:$0xff]  ;;  %v9140_v26 = vcombine.high %v990_v59, %v994_v32  ;;  %v9139_v35 = vcombine.low %v990_v59, %v994_v32 }
 0x56e   :  { %8198 = vmatpush1.bf16.msra.mxu0 %v9091_v63  ;;  %v9268_v63 = vcombine.high %v1118_v14, %v1122_v56  ;;  %v9267_v29 = vcombine.low %v1118_v14, %v1122_v56  ;;  %v1138_v62 = vld [vmem:[#allocation10 + $0x7f8] sm:$0xff] }
 0x56f   :  { %8239 = vmatpush1.bf16.msra.mxu1 %v9219_v13  ;;  %8199 = vmatprep.subr.bf16.mxu0 %v9100_v1  ;;  %v998_v13 = vld [vmem:[#allocation10 + $0x398] sm:$0xff] }
 0x570   :  { %8240 = vmatprep.subr.bf16.mxu1 %v9228_v21  ;;  %v1002_v1 = vld [vmem:[#allocation10 + $0x3b8] sm:$0xff] }
 0x571   :  { %v1126_v21 = vld [vmem:[#allocation10 + $0x798] sm:$0xff]  ;;  %v9148_v47 = vcombine.high %v998_v13, %v1002_v1  ;;  %v9147_v2 = vcombine.low %v998_v13, %v1002_v1 }
 0x572   :  { %8200 = vmatpush1.bf16.msra.mxu0 %v9099_v28  ;;  %v9276_v28 = vcombine.high %v1126_v21, %v1130_v15  ;;  %v9275_v0 = vcombine.low %v1126_v21, %v1130_v15  ;;  %v1274_v42 = vld [vmem:[#allocation10 + $0xc38] sm:$0xff] }
 0x573   :  { %8241 = vmatpush1.bf16.msra.mxu1 %v9227_v23  ;;  %8201 = vmatprep.subr.bf16.mxu0 %v9108_v11  ;;  %v1006_v23 = vld [vmem:[#allocation10 + $0x3d8] sm:$0xff] }
 0x574   :  { %8242 = vmatprep.subr.bf16.mxu1 %v9236_v33  ;;  %v1010_v11 = vld [vmem:[#allocation10 + $0x3f8] sm:$0xff] }
 0x575   :  { %v1134_v33 = vld [vmem:[#allocation10 + $0x7d8] sm:$0xff]  ;;  %v9156_v39 = vcombine.high %v1006_v23, %v1010_v11  ;;  %v9155_v44 = vcombine.low %v1006_v23, %v1010_v11 }
 0x576   :  { %8202 = vmatpush1.bf16.msra.mxu0 %v9107_v20  ;;  %v9284_v20 = vcombine.high %v1134_v33, %v1138_v62  ;;  %v9283_v48 = vcombine.low %v1134_v33, %v1138_v62  ;;  %v1278_v55 = vld [vmem:[#allocation10 + $0xc58] sm:$0xff] }
 0x577   :  { %8243 = vmatpush1.bf16.msra.mxu1 %v9235_v17  ;;  %8203 = vmatprep.subr.bf16.mxu0 %v9116_v10  ;;  %v1142_v17 = vld [vmem:[#allocation10 + $0x818] sm:$0xff] }
 0x578   :  { %8244 = vmatprep.subr.bf16.mxu1 %v9244_v45  ;;  %v1146_v10 = vld [vmem:[#allocation10 + $0x838] sm:$0xff] }
 0x579   :  { %v1270_v45 = vld [vmem:[#allocation10 + $0xc18] sm:$0xff]  ;;  %v9292_v50 = vcombine.high %v1142_v17, %v1146_v10 }
 0x57a   :  { %8204 = vmatpush1.bf16.msra.mxu0 %v9115_v16  ;;  %v9420_v16 = vcombine.high %v1270_v45, %v1274_v42  ;;  %v1282_v24 = vld [vmem:[#allocation10 + $0xc78] sm:$0xff]  ;;  %v9419_v36 = vcombine.low %v1270_v45, %v1274_v42 }
 0x57b   :  { %8245 = vmatpush1.bf16.msra.mxu1 %v9243_v54  ;;  %8205 = vmatprep.subr.bf16.mxu0 %v9124_v51  ;;  %v1150_v54 = vld [vmem:[#allocation10 + $0x858] sm:$0xff]  ;;  %v9427_v14 = vcombine.low %v1278_v55, %v1282_v24 }
 0x57c   :  { %8246 = vmatprep.subr.bf16.mxu1 %v9252_v53  ;;  %v1154_v51 = vld [vmem:[#allocation10 + $0x878] sm:$0xff]  ;;  %v9291_v53 = vcombine.low %v1142_v17, %v1146_v10 }
 0x57d   :  { %v9300_v19 = vcombine.high %v1150_v54, %v1154_v51  ;;  %v1290_v59 = vld [vmem:[#allocation10 + $0xcb8] sm:$0xff]  ;;  %v9299_v32 = vcombine.low %v1150_v54, %v1154_v51 }
 0x57e   :  { %8206 = vmatpush1.bf16.msra.mxu0 %v9123_v57  ;;  %v1158_v57 = vld [vmem:[#allocation10 + $0x898] sm:$0xff] }
 0x57f   :  { %8247 = vmatpush1.bf16.msra.mxu1 %v9251_v31  ;;  %8207 = vmatprep.subr.bf16.mxu0 %v9132_v52  ;;  %v1162_v31 = vld [vmem:[#allocation10 + $0x8b8] sm:$0xff]  ;;  %v9428_v52 = vcombine.high %v1278_v55, %v1282_v24 }
 0x580   :  { %8248 = vmatprep.subr.bf16.mxu1 %v9260_v61  ;;  %v1286_v61 = vld [vmem:[#allocation10 + $0xc98] sm:$0xff]  ;;  %v9308_v56 = vcombine.high %v1158_v57, %v1162_v31  ;;  %v9307_v13 = vcombine.low %v1158_v57, %v1162_v31 }
 0x581   :  { %v1174_v21 = vld [vmem:[#allocation10 + $0x918] sm:$0xff] }
 0x582   :  { %8208 = vmatpush1.bf16.msra.mxu0 %v9131_v18  ;;  %v9436_v18 = vcombine.high %v1286_v61, %v1290_v59  ;;  %v1178_v15 = vld [vmem:[#allocation10 + $0x938] sm:$0xff] }
 0x583   :  { %8249 = vmatpush1.bf16.msra.mxu1 %v9259_v40  ;;  %8209 = vmatprep.subr.bf16.mxu0 %v9140_v26  ;;  %v1166_v40 = vld [vmem:[#allocation10 + $0x8d8] sm:$0xff] }
 0x584   :  { %8250 = vmatprep.subr.bf16.mxu1 %v9268_v63  ;;  %v1170_v26 = vld [vmem:[#allocation10 + $0x8f8] sm:$0xff] }
 0x585   :  { %v1298_v63 = vld [vmem:[#allocation10 + $0xcf8] sm:$0xff]  ;;  %v9316_v1 = vcombine.high %v1166_v40, %v1170_v26 }
 0x586   :  { %8210 = vmatpush1.bf16.msra.mxu0 %v9139_v35  ;;  %v1302_v35 = vld [vmem:[#allocation10 + $0xd18] sm:$0xff] }
 0x587   :  { %8251 = vmatpush1.bf16.msra.mxu1 %v9267_v29  ;;  %8211 = vmatprep.subr.bf16.mxu0 %v9148_v47  ;;  %v1306_v29 = vld [vmem:[#allocation10 + $0xd38] sm:$0xff] }
 0x588   :  { %8252 = vmatprep.subr.bf16.mxu1 %v9276_v28  ;;  %v9324_v28 = vcombine.high %v1174_v21, %v1178_v15  ;;  %v9452_v23 = vcombine.high %v1302_v35, %v1306_v29  ;;  %v1182_v11 = vld [vmem:[#allocation10 + $0x958] sm:$0xff] }
 0x589   :  { %v1186_v33 = vld [vmem:[#allocation10 + $0x978] sm:$0xff] }
 0x58a   :  { %8212 = vmatpush1.bf16.msra.mxu0 %v9147_v2  ;;  %v1310_v62 = vld [vmem:[#allocation10 + $0xd58] sm:$0xff] }
 0x58b   :  { %8253 = vmatpush1.bf16.msra.mxu1 %v9275_v0  ;;  %8213 = vmatprep.subr.bf16.mxu0 %v9156_v39  ;;  %v1314_v2 = vld [vmem:[#allocation10 + $0xd78] sm:$0xff]  ;;  %v9323_v0 = vcombine.low %v1174_v21, %v1178_v15  ;;  %v9451_v39 = vcombine.low %v1302_v35, %v1306_v29  ;;  %v8422_v29 = vrot.slane %v10230_v27, %v10003_v60 }
 0x58c   :  { %8254 = vmatprep.subr.bf16.mxu1 %v9284_v20  ;;  %v9332_v20 = vcombine.high %v1182_v11, %v1186_v33  ;;  %v9460_v17 = vcombine.high %v1310_v62, %v1314_v2  ;;  %v1190_v10 = vld [vmem:[#allocation10 + $0x998] sm:$0xff] }
 0x58d   :  { %v1194_v45 = vld [vmem:[#allocation10 + $0x9b8] sm:$0xff] }
 0x58e   :  { %8214 = vmatpush1.bf16.msra.mxu0 %v9155_v44  ;;  %v1318_v42 = vld [vmem:[#allocation10 + $0xd98] sm:$0xff] }
 0x58f   :  { %8255 = vmatpush1.bf16.msra.mxu1 %v9283_v48  ;;  %8265 = vmatprep.subr.bf16.mxu0 %v9292_v50  ;;  %v1322_v44 = vld [vmem:[#allocation10 + $0xdb8] sm:$0xff]  ;;  %v9331_v48 = vcombine.low %v1182_v11, %v1186_v33  ;;  %v9459_v50 = vcombine.low %v1310_v62, %v1314_v2 }
 0x590   :  { %8306 = vmatprep.subr.bf16.mxu1 %v9420_v16  ;;  %v9340_v16 = vcombine.high %v1190_v10, %v1194_v45  ;;  %v9468_v51 = vcombine.high %v1318_v42, %v1322_v44  ;;  %v1202_v55 = vld [vmem:[#allocation10 + $0x9f8] sm:$0xff] }
 0x591   :  { %8216 = vmatmul.mubr.bf16.vlgmr.msra.gmra.mrb[64].mxu0 %v10161_v46  ;;  %v1294_v46 = vld [vmem:[#allocation10 + $0xcd8] sm:$0xff] }
 0x592   :  { %8257 = vmatmul.mubr.bf16.vlgmr.msra.gmra.mrb[64].mxu1 %v10165_v30  ;;  %8266 = vmatpush1.bf16.msra.mxu0 %v9291_v53  ;;  %v9435_v30 = vcombine.low %v1286_v61, %v1290_v59  ;;  %v9443_v47 = vcombine.low %v1294_v46, %v1298_v63  ;;  %v1198_v53 = vld [vmem:[#allocation10 + $0x9d8] sm:$0xff] }
 0x593   :  { %8297 = vmatprep.mubr.bf16.mxu0 %v10169_v49  ;;  %8307 = vmatpush1.bf16.msra.mxu1 %v9419_v36  ;;  %v9444_v49 = vcombine.high %v1294_v46, %v1298_v63  ;;  %v1326_v31 = vld [vmem:[#allocation10 + $0xdd8] sm:$0xff]  ;;  %v9348_v46 = vcombine.high %v1198_v53, %v1202_v55 }
 0x594   :  { %8338 = vmatprep.mubr.bf16.mxu1 %v10174_v38  ;;  %8267 = vmatprep.subr.bf16.mxu0 %v9300_v19  ;;  %v9315_v38 = vcombine.low %v1166_v40, %v1170_v26  ;;  %v8360_v19 = vrot.slane %v10225_v12, %v9997_v58  ;;  %v9467_v26 = vcombine.low %v1318_v42, %v1322_v44  ;;  %v1334_v21 = vld [vmem:[#allocation10 + $0xe18] sm:$0xff] }
 0x595   :  { %8308 = vmatprep.subr.bf16.mxu1 %v9428_v52  ;;  %v1330_v52 = vld [vmem:[#allocation10 + $0xdf8] sm:$0xff] }
 0x596   :  { %8268 = vmatpush1.bf16.msra.mxu0 %v9299_v32  ;;  %v8364_v32 = vrot.slane %v10225_v12, %v10003_v60  ;;  %v8418_v12 = vrot.slane %v10230_v27, %v9997_v58  ;;  %v1338_v15 = vld [vmem:[#allocation10 + $0xe38] sm:$0xff] }
 0x597   :  { %8309 = vmatpush1.bf16.msra.mxu1 %v9427_v14  ;;  %8269 = vmatprep.subr.bf16.mxu0 %v9308_v56  ;;  %v9339_v56 = vcombine.low %v1190_v10, %v1194_v45  ;;  %v9484_v33 = vcombine.high %v1334_v21, %v1338_v15  ;;  %v1214_v62 = vld [vmem:[#allocation10 + $0xa58] sm:$0xff]  ;;  %v9483_v27 = vcombine.low %v1334_v21, %v1338_v15 }
 0x598   :  { %8310 = vmatprep.subr.bf16.mxu1 %v9436_v18  ;;  %v1218_v2 = vld [vmem:[#allocation10 + $0xa78] sm:$0xff] }
 0x599   :  { %v1342_v58 = vld [vmem:[#allocation10 + $0xe58] sm:$0xff]  ;;  %v9364_v10 = vcombine.high %v1214_v62, %v1218_v2 }
 0x59a   :  { %8270 = vmatpush1.bf16.msra.mxu0 %v9307_v13 }
 0x59b   :  { %8311 = vmatpush1.bf16.msra.mxu1 %v9435_v30  ;;  %8271 = vmatprep.subr.bf16.mxu0 %v9316_v1  ;;  %v9476_v30 = vcombine.high %v1326_v31, %v1330_v52  ;;  %v1206_v1 = vld [vmem:[#allocation10 + $0xa18] sm:$0xff] }
 0x59c   :  { %8312 = vmatprep.subr.bf16.mxu1 %v9444_v49 }
 0x59e   :  { %8272 = vmatpush1.bf16.msra.mxu0 %v9315_v38  ;;  %v9347_v38 = vcombine.low %v1198_v53, %v1202_v55  ;;  %v9363_v53 = vcombine.low %v1214_v62, %v1218_v2  ;;  %v1262_v62 = vld [vmem:[#allocation10 + $0xbd8] sm:$0xff] }
 0x59f   :  { %8313 = vmatpush1.bf16.msra.mxu1 %v9443_v47  ;;  %8273 = vmatprep.subr.bf16.mxu0 %v9324_v28  ;;  %v9475_v28 = vcombine.low %v1326_v31, %v1330_v52  ;;  %v1362_v31 = vld [vmem:[#allocation10 + $0xef8] sm:$0xff] }
 0x5a0   :  { %8314 = vmatprep.subr.bf16.mxu1 %v9452_v23  ;;  %v1266_v2 = vld [vmem:[#allocation10 + $0xbf8] sm:$0xff] }
 0x5a2   :  { %8274 = vmatpush1.bf16.msra.mxu0 %v9323_v0 }
 0x5a3   :  { %8315 = vmatpush1.bf16.msra.mxu1 %v9451_v39  ;;  %8275 = vmatprep.subr.bf16.mxu0 %v9332_v20  ;;  %v1346_v39 = vld [vmem:[#allocation10 + $0xe78] sm:$0xff] }
 0x5a4   :  { %v7971_v54 = vpop.f32.mrb[52].mxu0  ;;  %8316 = vmatprep.subr.bf16.mxu1 %v9460_v17  ;;  %v9492_v44 = vcombine.high %v1342_v58, %v1346_v39  ;;  %v9491_v55 = vcombine.low %v1342_v58, %v1346_v39  ;;  %v1394_v58 = vld [vmem:[#allocation10 + $0xff8] sm:$0xff] }
 0x5a5   :  { %v7972_v24 = vadd.f32 %v7971_v54, %v10249_v25  ;;  %v8012_v36 = vpop.f32.mrb[52].mxu1  ;;  %v7973_v57 = vpop.f32.mrb[53].mxu0  ;;  %v1354_v54 = vld [vmem:[#allocation10 + $0xeb8] sm:$0xff] }
 0x5a6   :  { %v7974_v61 = vadd.f32 %v7973_v57, %v10251_v5  ;;  %v8014_v59 = vpop.f32.mrb[53].mxu1  ;;  %v7975_v14 = vpop.f32.mrb[54].mxu0  ;;  %8276 = vmatpush1.bf16.msra.mxu0 %v9331_v48  ;;  %v1210_v5 = vld [vmem:[#allocation10 + $0xa38] sm:$0xff] }
 0x5a7   :  { %v8013_v18 = vadd.f32 %v8012_v36, %v7972_v24  ;;  %v8016_v40 = vpop.f32.mrb[54].mxu1  ;;  %8317 = vmatpush1.bf16.msra.mxu1 %v9459_v50  ;;  %v7976_v25 = vpop.f32.mrb[55].mxu0  ;;  %8277 = vmatprep.subr.bf16.mxu0 %v9340_v16  ;;  %v9356_v23 = vcombine.high %v1206_v1, %v1210_v5  ;;  %v9355_v17 = vcombine.low %v1206_v1, %v1210_v5  ;;  %v1222_v48 = vld [vmem:[#allocation10 + $0xa98] sm:$0xff] }
 0x5a8   :  { %v8015_v63 = vadd.f32 %v8014_v59, %v7974_v61  ;;  %v8017_v13 = vpop.f32.mrb[55].mxu1  ;;  %8318 = vmatprep.subr.bf16.mxu1 %v9468_v51  ;;  %v1226_v50 = vld [vmem:[#allocation10 + $0xab8] sm:$0xff] }
 0x5a9   :  { %v8391_v49 = vadd.f32 %v8360_v19, %v8013_v18  ;;  %v1350_v16 = vld [vmem:[#allocation10 + $0xe98] sm:$0xff]  ;;  %v9372_v24 = vcombine.high %v1222_v48, %v1226_v50  ;;  %v9371_v52 = vcombine.low %v1222_v48, %v1226_v50 }
 0x5aa   :  { %v8392_v35 = vadd.f32 %v8364_v32, %v8015_v63  ;;  %8278 = vmatpush1.bf16.msra.mxu0 %v9339_v56  ;;  %v9500_v36 = vcombine.high %v1350_v16, %v1354_v54  ;;  %v1230_v19 = vld [vmem:[#allocation10 + $0xad8] sm:$0xff]  ;;  %v9499_v61 = vcombine.low %v1350_v16, %v1354_v54 }
 0x5ab   :  { %v8399_v47 = vmax.f32 %v8391_v49, 0.0  ;;  %8319 = vmatpush1.bf16.msra.mxu1 %v9467_v26  ;;  %8279 = vmatprep.subr.bf16.mxu0 %v9348_v46  ;;  %v1358_v57 = vld [vmem:[#allocation10 + $0xed8] sm:$0xff] }
 0x5ac   :  { %v8400_v11 = vmax.f32 %v8392_v35, 0.0  ;;  %8320 = vmatprep.subr.bf16.mxu1 %v9476_v30  ;;  %v9508_v32 = vcombine.high %v1358_v57, %v1362_v31  ;;  %v1238_v14 = vld [vmem:[#allocation10 + $0xb18] sm:$0xff]  ;;  %v9507_v26 = vcombine.low %v1358_v57, %v1362_v31 }
 0x5ad   :  { %v8449_v0 = vmul.f32 %v8418_v12, %v8399_v47  ;;  %v1242_v56 = vld [vmem:[#allocation10 + $0xb38] sm:$0xff] }
 0x5ae   :  { %v8450_v20 = vmul.f32 %v8422_v29, %v8400_v11  ;;  %8280 = vmatpush1.bf16.msra.mxu0 %v9347_v38  ;;  %v1366_v18 = vld [vmem:[#allocation10 + $0xf18] sm:$0xff]  ;;  %v9388_v46 = vcombine.high %v1238_v14, %v1242_v56  ;;  %v9387_v49 = vcombine.low %v1238_v14, %v1242_v56 }
 0x5af   :  { %v8459_v60 = vsel %vm8455_vm3, %v8449_v0, 0.0  ;;  %8321 = vmatpush1.bf16.msra.mxu1 %v9475_v28  ;;  %8281 = vmatprep.subr.bf16.mxu0 %v9356_v23  ;;  %v1370_v40 = vld [vmem:[#allocation10 + $0xf38] sm:$0xff] }
 0x5b0   :  { %v8460_v45 = vadd.f32 %v8459_v60, %v10241_v4  ;;  %v8461_v42 = vsel %vm8455_vm3, %v8450_v20, 0.0  ;;  %8322 = vmatprep.subr.bf16.mxu1 %v9484_v33  ;;  %v1234_v4 = vld [vmem:[#allocation10 + $0xaf8] sm:$0xff]  ;;  %v9516_v63 = vcombine.high %v1366_v18, %v1370_v40  ;;  %v9515_v12 = vcombine.low %v1366_v18, %v1370_v40 }
 0x5b1   :  { %v9380_v59 = vcombine.high %v1230_v19, %v1234_v4  ;;  %v9379_v25 = vcombine.low %v1230_v19, %v1234_v4  ;;  %v1246_v13 = vld [vmem:[#allocation10 + $0xb58] sm:$0xff] }
 0x5b2   :  { %v10270_v51 = vadd.f32 %v8461_v42, %v8460_v45  ;;  %8282 = vmatpush1.bf16.msra.mxu0 %v9355_v17  ;;  %v1250_v30 = vld [vmem:[#allocation10 + $0xb78] sm:$0xff]  ;;  %v9412_v17 = vcombine.high %v1262_v62, %v1266_v2 }
 0x5b3   :  { %8323 = vmatpush1.bf16.msra.mxu1 %v9483_v27  ;;  %8283 = vmatprep.subr.bf16.mxu0 %v9364_v10  ;;  %v1374_v1 = vld [vmem:[#allocation10 + $0xf58] sm:$0xff]  ;;  %v9396_v21 = vcombine.high %v1246_v13, %v1250_v30  ;;  %v9395_v28 = vcombine.low %v1246_v13, %v1250_v30  ;;  %v9411_v27 = vcombine.low %v1262_v62, %v1266_v2 }
 0x5b4   :  { %8324 = vmatprep.subr.bf16.mxu1 %v9492_v44  ;;  %v1378_v5 = vld [vmem:[#allocation10 + $0xf78] sm:$0xff] }
 0x5b5   :  { %v9524_v15 = vcombine.high %v1374_v1, %v1378_v5  ;;  %v1254_v35 = vld [vmem:[#allocation10 + $0xb98] sm:$0xff]  ;;  %v9523_v23 = vcombine.low %v1374_v1, %v1378_v5 }
 0x5b6   :  { %8284 = vmatpush1.bf16.msra.mxu0 %v9363_v53  ;;  %v1258_v29 = vld [vmem:[#allocation10 + $0xbb8] sm:$0xff] }
 0x5b7   :  { %8325 = vmatpush1.bf16.msra.mxu1 %v9491_v55  ;;  %8285 = vmatprep.subr.bf16.mxu0 %v9372_v24  ;;  %v1382_v38 = vld [vmem:[#allocation10 + $0xf98] sm:$0xff]  ;;  %v9404_v11 = vcombine.high %v1254_v35, %v1258_v29  ;;  %v9403_v39 = vcombine.low %v1254_v35, %v1258_v29 }
 0x5b8   :  { %8326 = vmatprep.subr.bf16.mxu1 %v9500_v36  ;;  %v1386_v47 = vld [vmem:[#allocation10 + $0xfb8] sm:$0xff] }
 0x5b9   :  { %v9532_v33 = vcombine.high %v1382_v38, %v1386_v47  ;;  %v1390_v0 = vld [vmem:[#allocation10 + $0xfd8] sm:$0xff]  ;;  %v9531_v20 = vcombine.low %v1382_v38, %v1386_v47 }
 0x5ba   :  { %8286 = vmatpush1.bf16.msra.mxu0 %v9371_v52  ;;  %v9540_v60 = vcombine.high %v1390_v0, %v1394_v58  ;;  %v9539_v10 = vcombine.low %v1390_v0, %v1394_v58 }
 0x5bb   :  { %8327 = vmatpush1.bf16.msra.mxu1 %v9499_v61  ;;  %8287 = vmatprep.subr.bf16.mxu0 %v9380_v59 }
 0x5bc   :  { %8328 = vmatprep.subr.bf16.mxu1 %v9508_v32 }
 0x5be   :  { %8288 = vmatpush1.bf16.msra.mxu0 %v9379_v25 }
 0x5bf   :  { %8329 = vmatpush1.bf16.msra.mxu1 %v9507_v26  ;;  %8289 = vmatprep.subr.bf16.mxu0 %v9388_v46  ;;  %v9568_v26 = vld [vmem:[#allocation14] sm:$0xff] }
 0x5c0   :  { %8330 = vmatprep.subr.bf16.mxu1 %v9516_v63  ;;  %v8426_v46 = vrot.slane %v9568_v26, %v10010_v6  ;;  %v8430_v13 = vrot.slane %v9568_v26, %v10016_v8 }
 0x5c2   :  { %8290 = vmatpush1.bf16.msra.mxu0 %v9387_v49 }
 0x5c3   :  { %8331 = vmatpush1.bf16.msra.mxu1 %v9515_v12  ;;  %8291 = vmatprep.subr.bf16.mxu0 %v9396_v21 }
 0x5c4   :  { %8332 = vmatprep.subr.bf16.mxu1 %v9524_v15 }
 0x5c6   :  { %8292 = vmatpush1.bf16.msra.mxu0 %v9395_v28 }
 0x5c7   :  { %8333 = vmatpush1.bf16.msra.mxu1 %v9523_v23  ;;  %8293 = vmatprep.subr.bf16.mxu0 %v9404_v11 }
 0x5c8   :  { %8334 = vmatprep.subr.bf16.mxu1 %v9532_v33 }
 0x5ca   :  { %8294 = vmatpush1.bf16.msra.mxu0 %v9403_v39 }
 0x5cb   :  { %8335 = vmatpush1.bf16.msra.mxu1 %v9531_v20  ;;  %8295 = vmatprep.subr.bf16.mxu0 %v9412_v17 }
 0x5cc   :  { %8336 = vmatprep.subr.bf16.mxu1 %v9540_v60 }
 0x5ce   :  { %8296 = vmatpush1.bf16.msra.mxu0 %v9411_v27 }
 0x5cf   :  { %8337 = vmatpush1.bf16.msra.mxu1 %v9539_v10 }
 0x5d1   :  { %8298 = vmatmul.mubr.bf16.vlgmr.msra.gmra.mrb[68].mxu0 %v10187_v43  ;;  %v9567_v43 = vld [vmem:[#allocation13] sm:$0xff] }
 0x5d2   :  { %8339 = vmatmul.mubr.bf16.vlgmr.msra.gmra.mrb[68].mxu1 %v10191_v41  ;;  %v8368_v41 = vrot.slane %v9567_v43, %v10010_v6  ;;  %v8372_v59 = vrot.slane %v9567_v43, %v10016_v8  ;;  %v8376_v20 = vrot.slane %v9567_v43, %v10013_v7 }
 0x5e4   :  { %v8053_v45 = vpop.f32.mrb[56].mxu0 }
 0x5e5   :  { %v8054_v42 = vadd.f32 %v8053_v45, %v10181_v34  ;;  %v8094_v44 = vpop.f32.mrb[56].mxu1  ;;  %v8055_v48 = vpop.f32.mrb[57].mxu0 }
 0x5e6   :  { %v8056_v50 = vadd.f32 %v8055_v48, %v10183_v3  ;;  %v8096_v16 = vpop.f32.mrb[57].mxu1  ;;  %v8057_v54 = vpop.f32.mrb[58].mxu0 }
 0x5e7   :  { %v8095_v53 = vadd.f32 %v8094_v44, %v8054_v42  ;;  %v8098_v55 = vpop.f32.mrb[58].mxu1  ;;  %v8058_v24 = vpop.f32.mrb[59].mxu0 }
 0x5e8   :  { %v8097_v36 = vadd.f32 %v8096_v16, %v8056_v50  ;;  %v8099_v19 = vpop.f32.mrb[59].mxu1  ;;  %v8434_v16 = vrot.slane %v9568_v26, %v10013_v7 }
 0x624   :  { %v8135_v4 = vpop.f32.mrb[60].mxu0 }
 0x625   :  { %v8136_v57 = vadd.f32 %v8135_v4, %v8095_v53  ;;  %v8176_v31 = vpop.f32.mrb[60].mxu1  ;;  %v8137_v52 = vpop.f32.mrb[61].mxu0  ;;  %v8438_v53 = vrot.slane %v9568_v26, %v10019_v9 }
 0x626   :  { %v8138_v61 = vadd.f32 %v8137_v52, %v8097_v36  ;;  %v8178_v34 = vpop.f32.mrb[61].mxu1  ;;  %v8139_v32 = vpop.f32.mrb[62].mxu0 }
 0x627   :  { %v8177_v3 = vadd.f32 %v8176_v31, %v8136_v57  ;;  %v8180_v14 = vpop.f32.mrb[62].mxu1  ;;  %v8140_v56 = vpop.f32.mrb[63].mxu0 }
 0x628   :  { %v8179_v18 = vadd.f32 %v8178_v34, %v8138_v61  ;;  %v8181_v40 = vpop.f32.mrb[63].mxu1 }
 0x629   :  { %v8393_v25 = vadd.f32 %v8368_v41, %v8177_v3  ;;  %v8474_v41 = vstv %s10305_s8 }
 0x62a   :  { %v8394_v63 = vadd.f32 %v8372_v59, %v8179_v18 }
 0x62b   :  { %v8401_v30 = vmax.f32 %v8393_v25, 0.0 }
 0x62c   :  { %v8402_v1 = vmax.f32 %v8394_v63, 0.0 }
 0x62d   :  { %v8451_v5 = vmul.f32 %v8426_v46, %v8401_v30 }
 0x62e   :  { %v8452_v49 = vmul.f32 %v8430_v13, %v8402_v1 }
 0x62f   :  { %v8463_v12 = vsel %vm8455_vm3, %v8451_v5, 0.0 }
 0x630   :  { %v8464_v21 = vadd.f32 %v8463_v12, %v10270_v51  ;;  %v8465_v15 = vsel %vm8455_vm3, %v8452_v49, 0.0 }
 0x632   :  { %v8466_v35 = vadd.f32 %v8465_v15, %v8464_v21 }
 0x664   :  { %v8217_v29 = vpop.f32.mrb[64].mxu0 }
 0x665   :  { %v8218_v38 = vadd.f32 %v8217_v29, %v10207_v22  ;;  %v8258_v47 = vpop.f32.mrb[64].mxu1  ;;  %v8219_v28 = vpop.f32.mrb[65].mxu0  ;;  %v8380_v22 = vrot.slane %v9567_v43, %v10019_v9 }
 0x666   :  { %v8220_v6 = vadd.f32 %v8219_v28, %v10209_v37  ;;  %v8260_v23 = vpop.f32.mrb[65].mxu1  ;;  %v8221_v8 = vpop.f32.mrb[66].mxu0 }
 0x667   :  { %v8259_v11 = vadd.f32 %v8258_v47, %v8218_v38  ;;  %v8262_v33 = vpop.f32.mrb[66].mxu1  ;;  %v8222_v62 = vpop.f32.mrb[67].mxu0 }
 0x668   :  { %v8261_v2 = vadd.f32 %v8260_v23, %v8220_v6  ;;  %v8263_v0 = vpop.f32.mrb[67].mxu1 }
 0x6a4   :  { %v8299_v58 = vpop.f32.mrb[68].mxu0 }
 0x6a5   :  { %v8300_v39 = vadd.f32 %v8299_v58, %v8259_v11  ;;  %v8340_v51 = vpop.f32.mrb[68].mxu1  ;;  %v8301_v17 = vpop.f32.mrb[69].mxu0 }
 0x6a6   :  { %v8302_v60 = vadd.f32 %v8301_v17, %v8261_v2  ;;  %v8342_v27 = vpop.f32.mrb[69].mxu1  ;;  %v8303_v10 = vpop.f32.mrb[70].mxu0 }
 0x6a7   :  { %v8341_v45 = vadd.f32 %v8340_v51, %v8300_v39  ;;  %v8344_v37 = vpop.f32.mrb[70].mxu1  ;;  %v8304_v42 = vpop.f32.mrb[71].mxu0 }
 0x6a8   :  { %v8343_v44 = vadd.f32 %v8342_v27, %v8302_v60  ;;  %v8345_v48 = vpop.f32.mrb[71].mxu1 }
 0x6a9   :  { %v8395_v50 = vadd.f32 %v8376_v20, %v8341_v45 }
 0x6aa   :  { %v8396_v54 = vadd.f32 %v8380_v22, %v8343_v44 }
 0x6ab   :  { %v8403_v55 = vmax.f32 %v8395_v50, 0.0 }
 0x6ac   :  { %v8404_v24 = vmax.f32 %v8396_v54, 0.0 }
 0x6ad   :  { %v8453_v36 = vmul.f32 %v8434_v16, %v8403_v55 }
 0x6ae   :  { %v8454_v19 = vmul.f32 %v8438_v53, %v8404_v24 }
 0x6af   :  { %v8467_v4 = vsel %vm8455_vm3, %v8453_v36, 0.0 }
 0x6b0   :  { %v8468_v57 = vadd.f32 %v8467_v4, %v8466_v35  ;;  %v8469_v31 = vsel %vm8455_vm3, %v8454_v19, 0.0 }
 0x6b2   :  { %v8470_v43 = vadd.f32 %v8469_v31, %v8468_v57 }
 0x6b4   :  { %8471 = vadd.xlane.f32.xlu0 %v8470_v43 }
 0x741   :  { %v8472_v52 = vpop.xlane.xlu0 %8471 }
 0x742   :  { %v8475_v7 = vadd.f32 %v8474_v41, %v8472_v52 }
 0x744   :  { %v9541_v61 = vmul.f32 -1.442695, %v8475_v7 }
 0x746   :  { %9563 = vpow2.f32 %v9541_v61 }
 0x750   :  { %v9564_v9 = vpop.eup %9563 }
 0x751   :  { %v8479_v34 = vadd.f32 1.0, %v9564_v9 }
 0x753   :  { %9565 = vrcp.f32 %v8479_v34 }
 0x75d   :  { %v9566_v59 = vpop.eup %9565 }
 0x75e   :  { %8483 = vst.msk [vmem:[%s10306_s9] sm:$0x3] %vm8482_vm4, %v9566_v59 }
 0x75f   :  { %8488 = vsyncpa [#allocation4], 1 }
 0x760   :  { %8489 = vsyncpa [#allocation6], 1 }
 0x761   :  { %8490 = vsyncpa [#allocation9], 1 }
 0x762   :  { %8491 = vsyncpa [#allocation12], 1 }
 0x763   :  { %8492 = vsyncpa [#allocation15], 1 }

</bundles_post_ra>
